<compile_context>
chip_gen: v6e
topology: v6e:2x2x1
jax: 0.10.0
libtpu: 0.0.40
codegen_flags: <defaults>
</compile_context>

<pallas_src>
from functools import partial

import jax
import jax.numpy as jnp
from jax.experimental import pallas as pl
from jax.experimental.pallas import tpu as pltpu

KSIZE = 3      # depthwise conv kernel size (stride=1, padding=1)
EPS = 1e-5     # BatchNorm2d eps


def _lane_group_sum(v, group, ngroups):
    """v: (..., group*ngroups).  Returns the same shape where every lane holds
    the sum over its residue class (lane % group) -- i.e. per-channel totals,
    already tiled across the `ngroups` lane blocks.  log2(ngroups) roll+adds
    (XLU + VPU); wrap-around of the roll is what makes the result tiled."""
    k = ngroups
    while k > 1:
        k //= 2
        v = v + pltpu.roll(v, k * group, v.ndim - 1)
    return v


def _basic_block_kernel(x_ref, dw1_ref, pw1_ref, g1_ref, b1_ref,
                        dw2_ref, pw2_ref, g2_ref, b2_ref,
                        o_ref, padA, padB, *, H, W, Cin, Cout, Ho, Wo):
    N = x_ref.shape[0]
    L1 = W * Cin           # packed lane width, stage-1 channels
    L2 = W * Cout          # packed lane width, stage-2 channels

    # One-time zero fill of the padded scratch slabs.  Borders stay zero for
    # the rest of the kernel; only the interiors are rewritten below.
    padA[...] = jnp.zeros(padA.shape, padA.dtype)
    padB[...] = jnp.zeros(padB.shape, padB.dtype)

    def dw_conv(pad_ref, dwt_ref, C, L):
        """Depthwise 3x3 conv (pad=1) on the packed (N, H+2, (W+2)*C) slab."""
        dwt = dwt_ref[...]                                      # (9, L) tiled taps
        acc = None
        for di in range(KSIZE):
            for dj in range(KSIZE):
                tap = pad_ref[:, di:di + H, dj * C:dj * C + L]  # (N, H, L)
                term = tap * dwt[3 * di + dj:3 * di + dj + 1, :]
                acc = term if acc is None else acc + term       # seeded by tap 0
        return acc.reshape(N * H, L)

    def pw_bn(a2d, pwbd_ref, g_ref, b_ref):
        """Pointwise 1x1 conv + BatchNorm (batch stats) in the packed layout.

        The 1x1 conv is one matmul against the host-built block-diagonal
        kron(I_W, pw) weight, so the packed activations feed the (otherwise
        idle) MXU directly with no relayout.  HIGHEST precision is kept so the
        f32 correctness check stays tight; at this size the extra MXU passes
        are negligible (use bf16/DEFAULT in production).
        """
        y = jnp.dot(a2d, pwbd_ref[...],
                    preferred_element_type=jnp.float32,
                    precision=jax.lax.Precision.HIGHEST)        # (N*H, L2)
        inv_cnt = 1.0 / (a2d.shape[0] * W)
        s1 = _lane_group_sum(jnp.sum(y, axis=0, keepdims=True), Cout, W)
        s2 = _lane_group_sum(jnp.sum(y * y, axis=0, keepdims=True), Cout, W)
        mean = s1 * inv_cnt                                     # per-channel, tiled
        var = s2 * inv_cnt - mean * mean                        # biased batch var
        scale = g_ref[...] * jax.lax.rsqrt(var + EPS)
        bias = b_ref[...] - mean * scale
        return y * scale + bias                                 # one FMA pass

    # stage 0: ReLU fused into the padded-interior write.
    padA[:, 1:H + 1, Cin:Cin + L1] = jnp.maximum(x_ref[...], 0.0)

    # DSConv 1 -> ReLU, written into padB's interior.
    a1 = pw_bn(dw_conv(padA, dw1_ref, Cin, L1), pw1_ref, g1_ref, b1_ref)
    padB[:, 1:H + 1, Cout:Cout + L2] = jnp.maximum(a1, 0.0).reshape(N, H, L2)

    # DSConv 2 -> ReLU, written back into padB's interior (border still zero).
    a2 = pw_bn(dw_conv(padB, dw2_ref, Cout, L2), pw2_ref, g2_ref, b2_ref)
    padB[:, 1:H + 1, Cout:Cout + L2] = jnp.maximum(a2, 0.0).reshape(N, H, L2)

    # MaxPool2d(3, stride=2, padding=1): stride-1 9-tap max over the zero-
    # bordered slab, then in-kernel stride-2 subsample of rows and of
    # Cout-wide lane blocks; stored as one lane-dense slab.
    m = None
    for di in range(KSIZE):
        for dj in range(KSIZE):
            tap = padB[:, di:di + H, dj * Cout:dj * Cout + L2]
            m = tap if m is None else jnp.maximum(m, tap)
    m = jnp.concatenate([m[:, 2 * r:2 * r + 1, :] for r in range(Ho)], axis=1)
    m = jnp.concatenate([m[:, :, (2 * c) * Cout:(2 * c + 1) * Cout]
                         for c in range(Wo)], axis=2)
    o_ref[...] = m                                              # (N, Ho, Wo*Cout)


def init_params(key, cin, cout):
    ks = jax.random.split(key, 8)
    return {
        # depthwise weights (kh, kw, C)  == torch (C,1,kh,kw) permuted
        'dw1': 0.2 * jax.random.normal(ks[0], (KSIZE, KSIZE, cin), jnp.float32),
        # pointwise weights (Cin, Cout)  == torch (Cout,Cin,1,1) transposed
        'pw1': 0.2 * jax.random.normal(ks[1], (cin, cout), jnp.float32),
        'g1': 1.0 + 0.1 * jax.random.normal(ks[2], (1, cout), jnp.float32),
        'b1': 0.1 * jax.random.normal(ks[3], (1, cout), jnp.float32),
        'dw2': 0.2 * jax.random.normal(ks[4], (KSIZE, KSIZE, cout), jnp.float32),
        'pw2': 0.2 * jax.random.normal(ks[5], (cout, cout), jnp.float32),
        'g2': 1.0 + 0.1 * jax.random.normal(ks[6], (1, cout), jnp.float32),
        'b2': 0.1 * jax.random.normal(ks[7], (1, cout), jnp.float32),
    }


def basic_block_entry(x, p):
    """x: (N, H, W, Cin) float32 NHWC (torch equivalent: NCHW (N, Cin, H, W))."""
    N, H, W, Cin = x.shape
    Cout = p['pw1'].shape[1]
    assert W & (W - 1) == 0, "packed-lane BN reduction assumes power-of-two W"
    Ho = (H + 2 - KSIZE) // 2 + 1
    Wo = (W + 2 - KSIZE) // 2 + 1

    # Host-side repacking (tiny tensors, plain XLA):
    #   activations   : (N, H, W, C)  -> lane-packed (N, H, W*C)
    #   depthwise taps: (3, 3, C)     -> (9, W*C)        (tiled across W)
    #   pointwise     : (Cin, Cout)   -> block-diag (W*Cin, W*Cout)
    #   BN gamma/beta : (1, Cout)     -> (1, W*Cout)     (tiled across W)
    xp = x.reshape(N, H, W * Cin)
    dw1t = jnp.tile(p['dw1'].reshape(KSIZE * KSIZE, Cin), (1, W))
    dw2t = jnp.tile(p['dw2'].reshape(KSIZE * KSIZE, Cout), (1, W))
    eye_w = jnp.eye(W, dtype=jnp.float32)
    pw1bd = jnp.kron(eye_w, p['pw1'])
    pw2bd = jnp.kron(eye_w, p['pw2'])
    g1t = jnp.tile(p['g1'], (1, W))
    b1t = jnp.tile(p['b1'], (1, W))
    g2t = jnp.tile(p['g2'], (1, W))
    b2t = jnp.tile(p['b2'], (1, W))

    args = (xp, dw1t, pw1bd, g1t, b1t, dw2t, pw2bd, g2t, b2t)

    def full(shape):
        return pl.BlockSpec(shape, lambda i: (0,) * len(shape))

    kernel = partial(_basic_block_kernel,
                     H=H, W=W, Cin=Cin, Cout=Cout, Ho=Ho, Wo=Wo)

    # TODO(synk): at real Xception sizes (e.g. 150x150, C>=64) add a grid over
    # H with a 1-row halo marked "parallel" (v7x megacore), raise
    # vmem_limit_bytes, and switch BatchNorm to a two-pass / cross-tile
    # reduction so the batch statistics stay global.
    out_packed = pl.pallas_call(
        kernel,
        out_shape=jax.ShapeDtypeStruct((N, Ho, Wo * Cout), jnp.float32),
        grid=(1,),
        in_specs=[full(a.shape) for a in args],
        out_specs=full((N, Ho, Wo * Cout)),
        scratch_shapes=[
            pltpu.VMEM((N, H + 2, (W + 2) * Cin), jnp.float32),   # conv1 pad slab
            pltpu.VMEM((N, H + 2, (W + 2) * Cout), jnp.float32),  # conv2/pool pad slab
        ],
        compiler_params=pltpu.CompilerParams(
            dimension_semantics=("arbitrary",)),
    )(*args)

    # lane-dense (N, Ho, Wo*Cout) slab -> NHWC
    return out_packed.reshape(N, Ho, Wo, Cout)


# ---- pure-JAX reference (for correctness check only) ----
def _reference(x, p):
    def dsconv_bn(a, dw, pw, g, b):
        cin = dw.shape[-1]
        y = jax.lax.conv_general_dilated(
            a, dw.reshape(KSIZE, KSIZE, 1, cin), (1, 1), ((1, 1), (1, 1)),
            dimension_numbers=('NHWC', 'HWIO', 'NHWC'),
            feature_group_count=cin, precision=jax.lax.Precision.HIGHEST)
        y = jax.lax.conv_general_dilated(
            y, pw.reshape(1, 1, *pw.shape), (1, 1), 'VALID',
            dimension_numbers=('NHWC', 'HWIO', 'NHWC'),
            precision=jax.lax.Precision.HIGHEST)
        mean = jnp.mean(y, axis=(0, 1, 2), keepdims=True)
        var = jnp.mean(jnp.square(y - mean), axis=(0, 1, 2), keepdims=True)
        return (y - mean) * jax.lax.rsqrt(var + EPS) * g.reshape(1, 1, 1, -1) \
            + b.reshape(1, 1, 1, -1)

    a = jax.nn.relu(x)
    y = dsconv_bn(a, p['dw1'], p['pw1'], p['g1'], p['b1'])
    y = jax.nn.relu(y)
    y = dsconv_bn(y, p['dw2'], p['pw2'], p['g2'], p['b2'])
    y = jax.nn.relu(y)
    return jax.lax.reduce_window(
        y, -jnp.inf, jax.lax.max, (1, 3, 3, 1), (1, 2, 2, 1),
        padding=((0, 0), (1, 1), (1, 1), (0, 0)))


if __name__ == "__main__":
    key = jax.random.PRNGKey(0)
    kx, kp = jax.random.split(key)

    N, H, W, Cin, Cout = 2, 16, 16, 4, 8
    # NHWC input (torch NCHW equivalent: (2, 4, 16, 16))
    x = jax.random.normal(kx, (N, H, W, Cin), jnp.float32)
    params = init_params(kp, Cin, Cout)

    out = jax.block_until_ready(basic_block_entry(x, params))
    assert out.shape == (N, H // 2, W // 2, Cout), out.shape

    ref = jax.block_until_ready(_reference(x, params))
    assert jnp.allclose(out, ref, atol=1e-3, rtol=1e-3), \
        float(jnp.max(jnp.abs(out - ref)))

    print("KERNEL_OK")
</pallas_src>

<mosaic_0001>
module attributes {stable_mosaic.version = 11 : i64} {
  func.func @_basic_block_kernel(%arg0: i32, %arg1: memref<2x16x64xf32, #tpu.memory_space<vmem>>, %arg2: memref<9x64xf32, #tpu.memory_space<vmem>>, %arg3: memref<64x128xf32, #tpu.memory_space<vmem>>, %arg4: memref<1x128xf32, #tpu.memory_space<vmem>>, %arg5: memref<1x128xf32, #tpu.memory_space<vmem>>, %arg6: memref<9x128xf32, #tpu.memory_space<vmem>>, %arg7: memref<128x128xf32, #tpu.memory_space<vmem>>, %arg8: memref<1x128xf32, #tpu.memory_space<vmem>>, %arg9: memref<1x128xf32, #tpu.memory_space<vmem>>, %arg10: memref<2x8x64xf32, #tpu.memory_space<vmem>>, %arg11: memref<2x18x72xf32, #tpu.memory_space<vmem>>, %arg12: memref<2x18x144xf32, #tpu.memory_space<vmem>>) attributes {dimension_semantics = [#tpu.dimension_semantics<arbitrary>], iteration_bounds = array<i64: 1>, scalar_prefetch = 0 : i64, scratch_operands = 2 : i64, tpu.core_type = #tpu.core_type<tc>, window_params = [{pipeline_mode = #tpu.pipeline_mode<synchronous>, transform_indices = @transform_0, window_bounds = array<i64: 2, 16, 64>}, {pipeline_mode = #tpu.pipeline_mode<synchronous>, transform_indices = @transform_1, window_bounds = array<i64: 9, 64>}, {pipeline_mode = #tpu.pipeline_mode<synchronous>, transform_indices = @transform_2, window_bounds = array<i64: 64, 128>}, {pipeline_mode = #tpu.pipeline_mode<synchronous>, transform_indices = @transform_3, window_bounds = array<i64: 1, 128>}, {pipeline_mode = #tpu.pipeline_mode<synchronous>, transform_indices = @transform_4, window_bounds = array<i64: 1, 128>}, {pipeline_mode = #tpu.pipeline_mode<synchronous>, transform_indices = @transform_5, window_bounds = array<i64: 9, 128>}, {pipeline_mode = #tpu.pipeline_mode<synchronous>, transform_indices = @transform_6, window_bounds = array<i64: 128, 128>}, {pipeline_mode = #tpu.pipeline_mode<synchronous>, transform_indices = @transform_7, window_bounds = array<i64: 1, 128>}, {pipeline_mode = #tpu.pipeline_mode<synchronous>, transform_indices = @transform_8, window_bounds = array<i64: 1, 128>}, {pipeline_mode = #tpu.pipeline_mode<synchronous>, transform_indices = @transform_9, window_bounds = array<i64: 2, 8, 64>}]} {
    %cst = arith.constant 0.000000e+00 : f32
    %0 = vector.broadcast %cst : f32 to vector<2x18x72xf32>
    %c0 = arith.constant 0 : index
    %c0_0 = arith.constant 0 : index
    %c0_1 = arith.constant 0 : index
    %1 = vector.load %arg11[%c0, %c0_0, %c0_1] : memref<2x18x72xf32, #tpu.memory_space<vmem>>, vector<2x18x72xf32>
    tpu.vector_store %arg11[%c0, %c0_0, %c0_1], %0 {strides = array<i32>} : memref<2x18x72xf32, #tpu.memory_space<vmem>>, vector<2x18x72xf32>,
    %cst_2 = arith.constant 0.000000e+00 : f32
    %2 = vector.broadcast %cst_2 : f32 to vector<2x18x144xf32>
    %c0_3 = arith.constant 0 : index
    %c0_4 = arith.constant 0 : index
    %c0_5 = arith.constant 0 : index
    %3 = vector.load %arg12[%c0_3, %c0_4, %c0_5] : memref<2x18x144xf32, #tpu.memory_space<vmem>>, vector<2x18x144xf32>
    tpu.vector_store %arg12[%c0_3, %c0_4, %c0_5], %2 {strides = array<i32>} : memref<2x18x144xf32, #tpu.memory_space<vmem>>, vector<2x18x144xf32>,
    %c0_6 = arith.constant 0 : index
    %c0_7 = arith.constant 0 : index
    %c0_8 = arith.constant 0 : index
    %4 = vector.load %arg1[%c0_6, %c0_7, %c0_8] : memref<2x16x64xf32, #tpu.memory_space<vmem>>, vector<2x16x64xf32>
    %cst_9 = arith.constant 0.000000e+00 : f32
    %5 = vector.broadcast %cst_9 : f32 to vector<2x16x64xf32>
    %6 = arith.maximumf %4, %5 : vector<2x16x64xf32>
    %c0_10 = arith.constant 0 : index
    %c1 = arith.constant 1 : index
    %c4 = arith.constant 4 : index
    %7 = vector.load %arg11[%c0_10, %c1, %c4] : memref<2x18x72xf32, #tpu.memory_space<vmem>>, vector<2x16x64xf32>
    tpu.vector_store %arg11[%c0_10, %c1, %c4], %6 {strides = array<i32>} : memref<2x18x72xf32, #tpu.memory_space<vmem>>, vector<2x16x64xf32>,
    %c0_11 = arith.constant 0 : index
    %c0_12 = arith.constant 0 : index
    %8 = vector.load %arg2[%c0_11, %c0_12] : memref<9x64xf32, #tpu.memory_space<vmem>>, vector<9x64xf32>
    %c0_13 = arith.constant 0 : index
    %c0_14 = arith.constant 0 : index
    %c0_15 = arith.constant 0 : index
    %9 = vector.load %arg11[%c0_13, %c0_14, %c0_15] : memref<2x18x72xf32, #tpu.memory_space<vmem>>, vector<2x16x64xf32>
    %10 = vector.extract_strided_slice %8 {offsets = [0, 0], sizes = [1, 64], strides = [1, 1]} : vector<9x64xf32> to vector<1x64xf32>
    %11 = vector.shape_cast %10 : vector<1x64xf32> to vector<1x1x64xf32>
    %12 = vector.broadcast %11 : vector<1x1x64xf32> to vector<2x16x64xf32>
    %13 = arith.mulf %9, %12 : vector<2x16x64xf32>
    %c0_16 = arith.constant 0 : index
    %c0_17 = arith.constant 0 : index
    %c4_18 = arith.constant 4 : index
    %14 = vector.load %arg11[%c0_16, %c0_17, %c4_18] : memref<2x18x72xf32, #tpu.memory_space<vmem>>, vector<2x16x64xf32>
    %15 = vector.extract_strided_slice %8 {offsets = [1, 0], sizes = [1, 64], strides = [1, 1]} : vector<9x64xf32> to vector<1x64xf32>
    %16 = vector.shape_cast %15 : vector<1x64xf32> to vector<1x1x64xf32>
    %17 = vector.broadcast %16 : vector<1x1x64xf32> to vector<2x16x64xf32>
    %18 = arith.mulf %14, %17 : vector<2x16x64xf32>
    %19 = arith.addf %13, %18 : vector<2x16x64xf32>
    %c0_19 = arith.constant 0 : index
    %c0_20 = arith.constant 0 : index
    %c8 = arith.constant 8 : index
    %20 = vector.load %arg11[%c0_19, %c0_20, %c8] : memref<2x18x72xf32, #tpu.memory_space<vmem>>, vector<2x16x64xf32>
    %21 = vector.extract_strided_slice %8 {offsets = [2, 0], sizes = [1, 64], strides = [1, 1]} : vector<9x64xf32> to vector<1x64xf32>
    %22 = vector.shape_cast %21 : vector<1x64xf32> to vector<1x1x64xf32>
    %23 = vector.broadcast %22 : vector<1x1x64xf32> to vector<2x16x64xf32>
    %24 = arith.mulf %20, %23 : vector<2x16x64xf32>
    %25 = arith.addf %19, %24 : vector<2x16x64xf32>
    %c0_21 = arith.constant 0 : index
    %c1_22 = arith.constant 1 : index
    %c0_23 = arith.constant 0 : index
    %26 = vector.load %arg11[%c0_21, %c1_22, %c0_23] : memref<2x18x72xf32, #tpu.memory_space<vmem>>, vector<2x16x64xf32>
    %27 = vector.extract_strided_slice %8 {offsets = [3, 0], sizes = [1, 64], strides = [1, 1]} : vector<9x64xf32> to vector<1x64xf32>
    %28 = vector.shape_cast %27 : vector<1x64xf32> to vector<1x1x64xf32>
    %29 = vector.broadcast %28 : vector<1x1x64xf32> to vector<2x16x64xf32>
    %30 = arith.mulf %26, %29 : vector<2x16x64xf32>
    %31 = arith.addf %25, %30 : vector<2x16x64xf32>
    %c0_24 = arith.constant 0 : index
    %c1_25 = arith.constant 1 : index
    %c4_26 = arith.constant 4 : index
    %32 = vector.load %arg11[%c0_24, %c1_25, %c4_26] : memref<2x18x72xf32, #tpu.memory_space<vmem>>, vector<2x16x64xf32>
    %33 = vector.extract_strided_slice %8 {offsets = [4, 0], sizes = [1, 64], strides = [1, 1]} : vector<9x64xf32> to vector<1x64xf32>
    %34 = vector.shape_cast %33 : vector<1x64xf32> to vector<1x1x64xf32>
    %35 = vector.broadcast %34 : vector<1x1x64xf32> to vector<2x16x64xf32>
    %36 = arith.mulf %32, %35 : vector<2x16x64xf32>
    %37 = arith.addf %31, %36 : vector<2x16x64xf32>
    %c0_27 = arith.constant 0 : index
    %c1_28 = arith.constant 1 : index
    %c8_29 = arith.constant 8 : index
    %38 = vector.load %arg11[%c0_27, %c1_28, %c8_29] : memref<2x18x72xf32, #tpu.memory_space<vmem>>, vector<2x16x64xf32>
    %39 = vector.extract_strided_slice %8 {offsets = [5, 0], sizes = [1, 64], strides = [1, 1]} : vector<9x64xf32> to vector<1x64xf32>
    %40 = vector.shape_cast %39 : vector<1x64xf32> to vector<1x1x64xf32>
    %41 = vector.broadcast %40 : vector<1x1x64xf32> to vector<2x16x64xf32>
    %42 = arith.mulf %38, %41 : vector<2x16x64xf32>
    %43 = arith.addf %37, %42 : vector<2x16x64xf32>
    %c0_30 = arith.constant 0 : index
    %c2 = arith.constant 2 : index
    %c0_31 = arith.constant 0 : index
    %44 = vector.load %arg11[%c0_30, %c2, %c0_31] : memref<2x18x72xf32, #tpu.memory_space<vmem>>, vector<2x16x64xf32>
    %45 = vector.extract_strided_slice %8 {offsets = [6, 0], sizes = [1, 64], strides = [1, 1]} : vector<9x64xf32> to vector<1x64xf32>
    %46 = vector.shape_cast %45 : vector<1x64xf32> to vector<1x1x64xf32>
    %47 = vector.broadcast %46 : vector<1x1x64xf32> to vector<2x16x64xf32>
    %48 = arith.mulf %44, %47 : vector<2x16x64xf32>
    %49 = arith.addf %43, %48 : vector<2x16x64xf32>
    %c0_32 = arith.constant 0 : index
    %c2_33 = arith.constant 2 : index
    %c4_34 = arith.constant 4 : index
    %50 = vector.load %arg11[%c0_32, %c2_33, %c4_34] : memref<2x18x72xf32, #tpu.memory_space<vmem>>, vector<2x16x64xf32>
    %51 = vector.extract_strided_slice %8 {offsets = [7, 0], sizes = [1, 64], strides = [1, 1]} : vector<9x64xf32> to vector<1x64xf32>
    %52 = vector.shape_cast %51 : vector<1x64xf32> to vector<1x1x64xf32>
    %53 = vector.broadcast %52 : vector<1x1x64xf32> to vector<2x16x64xf32>
    %54 = arith.mulf %50, %53 : vector<2x16x64xf32>
    %55 = arith.addf %49, %54 : vector<2x16x64xf32>
    %c0_35 = arith.constant 0 : index
    %c2_36 = arith.constant 2 : index
    %c8_37 = arith.constant 8 : index
    %56 = vector.load %arg11[%c0_35, %c2_36, %c8_37] : memref<2x18x72xf32, #tpu.memory_space<vmem>>, vector<2x16x64xf32>
    %57 = vector.extract_strided_slice %8 {offsets = [8, 0], sizes = [1, 64], strides = [1, 1]} : vector<9x64xf32> to vector<1x64xf32>
    %58 = vector.shape_cast %57 : vector<1x64xf32> to vector<1x1x64xf32>
    %59 = vector.broadcast %58 : vector<1x1x64xf32> to vector<2x16x64xf32>
    %60 = arith.mulf %56, %59 : vector<2x16x64xf32>
    %61 = arith.addf %55, %60 : vector<2x16x64xf32>
    %62 = vector.shape_cast %61 : vector<2x16x64xf32> to vector<32x64xf32>
    %c0_38 = arith.constant 0 : index
    %c0_39 = arith.constant 0 : index
    %63 = vector.load %arg3[%c0_38, %c0_39] : memref<64x128xf32, #tpu.memory_space<vmem>>, vector<64x128xf32>
    %cst_40 = arith.constant dense<0.000000e+00> : vector<32x128xf32>
    %64 = tpu.matmul %62, %63, %cst_40 {dimension_numbers = #tpu.dot_dimension_numbers<[1], [0], [0], [1], [0, 0, 1, 1], [], []>, precision = #tpu.contract_precision<fp32>} : vector<32x64xf32>, vector<64x128xf32>, vector<32x128xf32> -> vector<32x128xf32>
    %cst_41 = arith.constant dense<0.000000e+00> : vector<128xf32>
    %65 = vector.multi_reduction <add>, %64, %cst_41 [0] : vector<32x128xf32> to vector<128xf32>
    %66 = vector.shape_cast %65 : vector<128xf32> to vector<1x128xf32>
    %c64_i32 = arith.constant 64 : i32
    %67 = tpu.dynamic_rotate %66 by %c64_i32 dim 1 : vector<1x128xf32>, i32 -> vector<1x128xf32>
    %68 = arith.addf %66, %67 : vector<1x128xf32>
    %c32_i32 = arith.constant 32 : i32
    %69 = tpu.dynamic_rotate %68 by %c32_i32 dim 1 : vector<1x128xf32>, i32 -> vector<1x128xf32>
    %70 = arith.addf %68, %69 : vector<1x128xf32>
    %c16_i32 = arith.constant 16 : i32
    %71 = tpu.dynamic_rotate %70 by %c16_i32 dim 1 : vector<1x128xf32>, i32 -> vector<1x128xf32>
    %72 = arith.addf %70, %71 : vector<1x128xf32>
    %c8_i32 = arith.constant 8 : i32
    %73 = tpu.dynamic_rotate %72 by %c8_i32 dim 1 : vector<1x128xf32>, i32 -> vector<1x128xf32>
    %74 = arith.addf %72, %73 : vector<1x128xf32>
    %75 = arith.mulf %64, %64 : vector<32x128xf32>
    %cst_42 = arith.constant dense<0.000000e+00> : vector<128xf32>
    %76 = vector.multi_reduction <add>, %75, %cst_42 [0] : vector<32x128xf32> to vector<128xf32>
    %77 = vector.shape_cast %76 : vector<128xf32> to vector<1x128xf32>
    %c64_i32_43 = arith.constant 64 : i32
    %78 = tpu.dynamic_rotate %77 by %c64_i32_43 dim 1 : vector<1x128xf32>, i32 -> vector<1x128xf32>
    %79 = arith.addf %77, %78 : vector<1x128xf32>
    %c32_i32_44 = arith.constant 32 : i32
    %80 = tpu.dynamic_rotate %79 by %c32_i32_44 dim 1 : vector<1x128xf32>, i32 -> vector<1x128xf32>
    %81 = arith.addf %79, %80 : vector<1x128xf32>
    %c16_i32_45 = arith.constant 16 : i32
    %82 = tpu.dynamic_rotate %81 by %c16_i32_45 dim 1 : vector<1x128xf32>, i32 -> vector<1x128xf32>
    %83 = arith.addf %81, %82 : vector<1x128xf32>
    %c8_i32_46 = arith.constant 8 : i32
    %84 = tpu.dynamic_rotate %83 by %c8_i32_46 dim 1 : vector<1x128xf32>, i32 -> vector<1x128xf32>
    %85 = arith.addf %83, %84 : vector<1x128xf32>
    %cst_47 = arith.constant 0.001953125 : f32
    %86 = vector.broadcast %cst_47 : f32 to vector<1x128xf32>
    %87 = arith.mulf %74, %86 : vector<1x128xf32>
    %cst_48 = arith.constant 0.001953125 : f32
    %88 = vector.broadcast %cst_48 : f32 to vector<1x128xf32>
    %89 = arith.mulf %85, %88 : vector<1x128xf32>
    %90 = arith.mulf %87, %87 : vector<1x128xf32>
    %91 = arith.subf %89, %90 : vector<1x128xf32>
    %c0_49 = arith.constant 0 : index
    %c0_50 = arith.constant 0 : index
    %92 = vector.load %arg4[%c0_49, %c0_50] : memref<1x128xf32, #tpu.memory_space<vmem>>, vector<1x128xf32>
    %cst_51 = arith.constant 9.99999974E-6 : f32
    %93 = vector.broadcast %cst_51 : f32 to vector<1x128xf32>
    %94 = arith.addf %91, %93 : vector<1x128xf32>
    %95 = math.rsqrt %94 : vector<1x128xf32>
    %96 = arith.mulf %92, %95 : vector<1x128xf32>
    %c0_52 = arith.constant 0 : index
    %c0_53 = arith.constant 0 : index
    %97 = vector.load %arg5[%c0_52, %c0_53] : memref<1x128xf32, #tpu.memory_space<vmem>>, vector<1x128xf32>
    %98 = arith.mulf %87, %96 : vector<1x128xf32>
    %99 = arith.subf %97, %98 : vector<1x128xf32>
    %100 = vector.broadcast %96 : vector<1x128xf32> to vector<32x128xf32>
    %101 = arith.mulf %64, %100 : vector<32x128xf32>
    %102 = vector.broadcast %99 : vector<1x128xf32> to vector<32x128xf32>
    %103 = arith.addf %101, %102 : vector<32x128xf32>
    %cst_54 = arith.constant 0.000000e+00 : f32
    %104 = vector.broadcast %cst_54 : f32 to vector<32x128xf32>
    %105 = arith.maximumf %103, %104 : vector<32x128xf32>
    %106 = vector.shape_cast %105 : vector<32x128xf32> to vector<2x16x128xf32>
    %c0_55 = arith.constant 0 : index
    %c1_56 = arith.constant 1 : index
    %c8_57 = arith.constant 8 : index
    %107 = vector.load %arg12[%c0_55, %c1_56, %c8_57] : memref<2x18x144xf32, #tpu.memory_space<vmem>>, vector<2x16x128xf32>
    tpu.vector_store %arg12[%c0_55, %c1_56, %c8_57], %106 {strides = array<i32>} : memref<2x18x144xf32, #tpu.memory_space<vmem>>, vector<2x16x128xf32>,
    %c0_58 = arith.constant 0 : index
    %c0_59 = arith.constant 0 : index
    %108 = vector.load %arg6[%c0_58, %c0_59] : memref<9x128xf32, #tpu.memory_space<vmem>>, vector<9x128xf32>
    %c0_60 = arith.constant 0 : index
    %c0_61 = arith.constant 0 : index
    %c0_62 = arith.constant 0 : index
    %109 = vector.load %arg12[%c0_60, %c0_61, %c0_62] : memref<2x18x144xf32, #tpu.memory_space<vmem>>, vector<2x16x128xf32>
    %110 = vector.extract_strided_slice %108 {offsets = [0, 0], sizes = [1, 128], strides = [1, 1]} : vector<9x128xf32> to vector<1x128xf32>
    %111 = vector.shape_cast %110 : vector<1x128xf32> to vector<1x1x128xf32>
    %112 = vector.broadcast %111 : vector<1x1x128xf32> to vector<2x16x128xf32>
    %113 = arith.mulf %109, %112 : vector<2x16x128xf32>
    %c0_63 = arith.constant 0 : index
    %c0_64 = arith.constant 0 : index
    %c8_65 = arith.constant 8 : index
    %114 = vector.load %arg12[%c0_63, %c0_64, %c8_65] : memref<2x18x144xf32, #tpu.memory_space<vmem>>, vector<2x16x128xf32>
    %115 = vector.extract_strided_slice %108 {offsets = [1, 0], sizes = [1, 128], strides = [1, 1]} : vector<9x128xf32> to vector<1x128xf32>
    %116 = vector.shape_cast %115 : vector<1x128xf32> to vector<1x1x128xf32>
    %117 = vector.broadcast %116 : vector<1x1x128xf32> to vector<2x16x128xf32>
    %118 = arith.mulf %114, %117 : vector<2x16x128xf32>
    %119 = arith.addf %113, %118 : vector<2x16x128xf32>
    %c0_66 = arith.constant 0 : index
    %c0_67 = arith.constant 0 : index
    %c16 = arith.constant 16 : index
    %120 = vector.load %arg12[%c0_66, %c0_67, %c16] : memref<2x18x144xf32, #tpu.memory_space<vmem>>, vector<2x16x128xf32>
    %121 = vector.extract_strided_slice %108 {offsets = [2, 0], sizes = [1, 128], strides = [1, 1]} : vector<9x128xf32> to vector<1x128xf32>
    %122 = vector.shape_cast %121 : vector<1x128xf32> to vector<1x1x128xf32>
    %123 = vector.broadcast %122 : vector<1x1x128xf32> to vector<2x16x128xf32>
    %124 = arith.mulf %120, %123 : vector<2x16x128xf32>
    %125 = arith.addf %119, %124 : vector<2x16x128xf32>
    %c0_68 = arith.constant 0 : index
    %c1_69 = arith.constant 1 : index
    %c0_70 = arith.constant 0 : index
    %126 = vector.load %arg12[%c0_68, %c1_69, %c0_70] : memref<2x18x144xf32, #tpu.memory_space<vmem>>, vector<2x16x128xf32>
    %127 = vector.extract_strided_slice %108 {offsets = [3, 0], sizes = [1, 128], strides = [1, 1]} : vector<9x128xf32> to vector<1x128xf32>
    %128 = vector.shape_cast %127 : vector<1x128xf32> to vector<1x1x128xf32>
    %129 = vector.broadcast %128 : vector<1x1x128xf32> to vector<2x16x128xf32>
    %130 = arith.mulf %126, %129 : vector<2x16x128xf32>
    %131 = arith.addf %125, %130 : vector<2x16x128xf32>
    %c0_71 = arith.constant 0 : index
    %c1_72 = arith.constant 1 : index
    %c8_73 = arith.constant 8 : index
    %132 = vector.load %arg12[%c0_71, %c1_72, %c8_73] : memref<2x18x144xf32, #tpu.memory_space<vmem>>, vector<2x16x128xf32>
    %133 = vector.extract_strided_slice %108 {offsets = [4, 0], sizes = [1, 128], strides = [1, 1]} : vector<9x128xf32> to vector<1x128xf32>
    %134 = vector.shape_cast %133 : vector<1x128xf32> to vector<1x1x128xf32>
    %135 = vector.broadcast %134 : vector<1x1x128xf32> to vector<2x16x128xf32>
    %136 = arith.mulf %132, %135 : vector<2x16x128xf32>
    %137 = arith.addf %131, %136 : vector<2x16x128xf32>
    %c0_74 = arith.constant 0 : index
    %c1_75 = arith.constant 1 : index
    %c16_76 = arith.constant 16 : index
    %138 = vector.load %arg12[%c0_74, %c1_75, %c16_76] : memref<2x18x144xf32, #tpu.memory_space<vmem>>, vector<2x16x128xf32>
    %139 = vector.extract_strided_slice %108 {offsets = [5, 0], sizes = [1, 128], strides = [1, 1]} : vector<9x128xf32> to vector<1x128xf32>
    %140 = vector.shape_cast %139 : vector<1x128xf32> to vector<1x1x128xf32>
    %141 = vector.broadcast %140 : vector<1x1x128xf32> to vector<2x16x128xf32>
    %142 = arith.mulf %138, %141 : vector<2x16x128xf32>
    %143 = arith.addf %137, %142 : vector<2x16x128xf32>
    %c0_77 = arith.constant 0 : index
    %c2_78 = arith.constant 2 : index
    %c0_79 = arith.constant 0 : index
    %144 = vector.load %arg12[%c0_77, %c2_78, %c0_79] : memref<2x18x144xf32, #tpu.memory_space<vmem>>, vector<2x16x128xf32>
    %145 = vector.extract_strided_slice %108 {offsets = [6, 0], sizes = [1, 128], strides = [1, 1]} : vector<9x128xf32> to vector<1x128xf32>
    %146 = vector.shape_cast %145 : vector<1x128xf32> to vector<1x1x128xf32>
    %147 = vector.broadcast %146 : vector<1x1x128xf32> to vector<2x16x128xf32>
    %148 = arith.mulf %144, %147 : vector<2x16x128xf32>
    %149 = arith.addf %143, %148 : vector<2x16x128xf32>
    %c0_80 = arith.constant 0 : index
    %c2_81 = arith.constant 2 : index
    %c8_82 = arith.constant 8 : index
    %150 = vector.load %arg12[%c0_80, %c2_81, %c8_82] : memref<2x18x144xf32, #tpu.memory_space<vmem>>, vector<2x16x128xf32>
    %151 = vector.extract_strided_slice %108 {offsets = [7, 0], sizes = [1, 128], strides = [1, 1]} : vector<9x128xf32> to vector<1x128xf32>
    %152 = vector.shape_cast %151 : vector<1x128xf32> to vector<1x1x128xf32>
    %153 = vector.broadcast %152 : vector<1x1x128xf32> to vector<2x16x128xf32>
    %154 = arith.mulf %150, %153 : vector<2x16x128xf32>
    %155 = arith.addf %149, %154 : vector<2x16x128xf32>
    %c0_83 = arith.constant 0 : index
    %c2_84 = arith.constant 2 : index
    %c16_85 = arith.constant 16 : index
    %156 = vector.load %arg12[%c0_83, %c2_84, %c16_85] : memref<2x18x144xf32, #tpu.memory_space<vmem>>, vector<2x16x128xf32>
    %157 = vector.extract_strided_slice %108 {offsets = [8, 0], sizes = [1, 128], strides = [1, 1]} : vector<9x128xf32> to vector<1x128xf32>
    %158 = vector.shape_cast %157 : vector<1x128xf32> to vector<1x1x128xf32>
    %159 = vector.broadcast %158 : vector<1x1x128xf32> to vector<2x16x128xf32>
    %160 = arith.mulf %156, %159 : vector<2x16x128xf32>
    %161 = arith.addf %155, %160 : vector<2x16x128xf32>
    %162 = vector.shape_cast %161 : vector<2x16x128xf32> to vector<32x128xf32>
    %c0_86 = arith.constant 0 : index
    %c0_87 = arith.constant 0 : index
    %163 = vector.load %arg7[%c0_86, %c0_87] : memref<128x128xf32, #tpu.memory_space<vmem>>, vector<128x128xf32>
    %cst_88 = arith.constant dense<0.000000e+00> : vector<32x128xf32>
    %164 = tpu.matmul %162, %163, %cst_88 {dimension_numbers = #tpu.dot_dimension_numbers<[1], [0], [0], [1], [0, 0, 1, 1], [], []>, precision = #tpu.contract_precision<fp32>} : vector<32x128xf32>, vector<128x128xf32>, vector<32x128xf32> -> vector<32x128xf32>
    %cst_89 = arith.constant dense<0.000000e+00> : vector<128xf32>
    %165 = vector.multi_reduction <add>, %164, %cst_89 [0] : vector<32x128xf32> to vector<128xf32>
    %166 = vector.shape_cast %165 : vector<128xf32> to vector<1x128xf32>
    %c64_i32_90 = arith.constant 64 : i32
    %167 = tpu.dynamic_rotate %166 by %c64_i32_90 dim 1 : vector<1x128xf32>, i32 -> vector<1x128xf32>
    %168 = arith.addf %166, %167 : vector<1x128xf32>
    %c32_i32_91 = arith.constant 32 : i32
    %169 = tpu.dynamic_rotate %168 by %c32_i32_91 dim 1 : vector<1x128xf32>, i32 -> vector<1x128xf32>
    %170 = arith.addf %168, %169 : vector<1x128xf32>
    %c16_i32_92 = arith.constant 16 : i32
    %171 = tpu.dynamic_rotate %170 by %c16_i32_92 dim 1 : vector<1x128xf32>, i32 -> vector<1x128xf32>
    %172 = arith.addf %170, %171 : vector<1x128xf32>
    %c8_i32_93 = arith.constant 8 : i32
    %173 = tpu.dynamic_rotate %172 by %c8_i32_93 dim 1 : vector<1x128xf32>, i32 -> vector<1x128xf32>
    %174 = arith.addf %172, %173 : vector<1x128xf32>
    %175 = arith.mulf %164, %164 : vector<32x128xf32>
    %cst_94 = arith.constant dense<0.000000e+00> : vector<128xf32>
    %176 = vector.multi_reduction <add>, %175, %cst_94 [0] : vector<32x128xf32> to vector<128xf32>
    %177 = vector.shape_cast %176 : vector<128xf32> to vector<1x128xf32>
    %c64_i32_95 = arith.constant 64 : i32
    %178 = tpu.dynamic_rotate %177 by %c64_i32_95 dim 1 : vector<1x128xf32>, i32 -> vector<1x128xf32>
    %179 = arith.addf %177, %178 : vector<1x128xf32>
    %c32_i32_96 = arith.constant 32 : i32
    %180 = tpu.dynamic_rotate %179 by %c32_i32_96 dim 1 : vector<1x128xf32>, i32 -> vector<1x128xf32>
    %181 = arith.addf %179, %180 : vector<1x128xf32>
    %c16_i32_97 = arith.constant 16 : i32
    %182 = tpu.dynamic_rotate %181 by %c16_i32_97 dim 1 : vector<1x128xf32>, i32 -> vector<1x128xf32>
    %183 = arith.addf %181, %182 : vector<1x128xf32>
    %c8_i32_98 = arith.constant 8 : i32
    %184 = tpu.dynamic_rotate %183 by %c8_i32_98 dim 1 : vector<1x128xf32>, i32 -> vector<1x128xf32>
    %185 = arith.addf %183, %184 : vector<1x128xf32>
    %cst_99 = arith.constant 0.001953125 : f32
    %186 = vector.broadcast %cst_99 : f32 to vector<1x128xf32>
    %187 = arith.mulf %174, %186 : vector<1x128xf32>
    %cst_100 = arith.constant 0.001953125 : f32
    %188 = vector.broadcast %cst_100 : f32 to vector<1x128xf32>
    %189 = arith.mulf %185, %188 : vector<1x128xf32>
    %190 = arith.mulf %187, %187 : vector<1x128xf32>
    %191 = arith.subf %189, %190 : vector<1x128xf32>
    %c0_101 = arith.constant 0 : index
    %c0_102 = arith.constant 0 : index
    %192 = vector.load %arg8[%c0_101, %c0_102] : memref<1x128xf32, #tpu.memory_space<vmem>>, vector<1x128xf32>
    %cst_103 = arith.constant 9.99999974E-6 : f32
    %193 = vector.broadcast %cst_103 : f32 to vector<1x128xf32>
    %194 = arith.addf %191, %193 : vector<1x128xf32>
    %195 = math.rsqrt %194 : vector<1x128xf32>
    %196 = arith.mulf %192, %195 : vector<1x128xf32>
    %c0_104 = arith.constant 0 : index
    %c0_105 = arith.constant 0 : index
    %197 = vector.load %arg9[%c0_104, %c0_105] : memref<1x128xf32, #tpu.memory_space<vmem>>, vector<1x128xf32>
    %198 = arith.mulf %187, %196 : vector<1x128xf32>
    %199 = arith.subf %197, %198 : vector<1x128xf32>
    %200 = vector.broadcast %196 : vector<1x128xf32> to vector<32x128xf32>
    %201 = arith.mulf %164, %200 : vector<32x128xf32>
    %202 = vector.broadcast %199 : vector<1x128xf32> to vector<32x128xf32>
    %203 = arith.addf %201, %202 : vector<32x128xf32>
    %cst_106 = arith.constant 0.000000e+00 : f32
    %204 = vector.broadcast %cst_106 : f32 to vector<32x128xf32>
    %205 = arith.maximumf %203, %204 : vector<32x128xf32>
    %206 = vector.shape_cast %205 : vector<32x128xf32> to vector<2x16x128xf32>
    %c0_107 = arith.constant 0 : index
    %c1_108 = arith.constant 1 : index
    %c8_109 = arith.constant 8 : index
    %207 = vector.load %arg12[%c0_107, %c1_108, %c8_109] : memref<2x18x144xf32, #tpu.memory_space<vmem>>, vector<2x16x128xf32>
    tpu.vector_store %arg12[%c0_107, %c1_108, %c8_109], %206 {strides = array<i32>} : memref<2x18x144xf32, #tpu.memory_space<vmem>>, vector<2x16x128xf32>,
    %c0_110 = arith.constant 0 : index
    %c0_111 = arith.constant 0 : index
    %c0_112 = arith.constant 0 : index
    %208 = vector.load %arg12[%c0_110, %c0_111, %c0_112] : memref<2x18x144xf32, #tpu.memory_space<vmem>>, vector<2x16x128xf32>
    %c0_113 = arith.constant 0 : index
    %c0_114 = arith.constant 0 : index
    %c8_115 = arith.constant 8 : index
    %209 = vector.load %arg12[%c0_113, %c0_114, %c8_115] : memref<2x18x144xf32, #tpu.memory_space<vmem>>, vector<2x16x128xf32>
    %210 = arith.maximumf %208, %209 : vector<2x16x128xf32>
    %c0_116 = arith.constant 0 : index
    %c0_117 = arith.constant 0 : index
    %c16_118 = arith.constant 16 : index
    %211 = vector.load %arg12[%c0_116, %c0_117, %c16_118] : memref<2x18x144xf32, #tpu.memory_space<vmem>>, vector<2x16x128xf32>
    %212 = arith.maximumf %210, %211 : vector<2x16x128xf32>
    %c0_119 = arith.constant 0 : index
    %c1_120 = arith.constant 1 : index
    %c0_121 = arith.constant 0 : index
    %213 = vector.load %arg12[%c0_119, %c1_120, %c0_121] : memref<2x18x144xf32, #tpu.memory_space<vmem>>, vector<2x16x128xf32>
    %214 = arith.maximumf %212, %213 : vector<2x16x128xf32>
    %c0_122 = arith.constant 0 : index
    %c1_123 = arith.constant 1 : index
    %c8_124 = arith.constant 8 : index
    %215 = vector.load %arg12[%c0_122, %c1_123, %c8_124] : memref<2x18x144xf32, #tpu.memory_space<vmem>>, vector<2x16x128xf32>
    %216 = arith.maximumf %214, %215 : vector<2x16x128xf32>
    %c0_125 = arith.constant 0 : index
    %c1_126 = arith.constant 1 : index
    %c16_127 = arith.constant 16 : index
    %217 = vector.load %arg12[%c0_125, %c1_126, %c16_127] : memref<2x18x144xf32, #tpu.memory_space<vmem>>, vector<2x16x128xf32>
    %218 = arith.maximumf %216, %217 : vector<2x16x128xf32>
    %c0_128 = arith.constant 0 : index
    %c2_129 = arith.constant 2 : index
    %c0_130 = arith.constant 0 : index
    %219 = vector.load %arg12[%c0_128, %c2_129, %c0_130] : memref<2x18x144xf32, #tpu.memory_space<vmem>>, vector<2x16x128xf32>
    %220 = arith.maximumf %218, %219 : vector<2x16x128xf32>
    %c0_131 = arith.constant 0 : index
    %c2_132 = arith.constant 2 : index
    %c8_133 = arith.constant 8 : index
    %221 = vector.load %arg12[%c0_131, %c2_132, %c8_133] : memref<2x18x144xf32, #tpu.memory_space<vmem>>, vector<2x16x128xf32>
    %222 = arith.maximumf %220, %221 : vector<2x16x128xf32>
    %c0_134 = arith.constant 0 : index
    %c2_135 = arith.constant 2 : index
    %c16_136 = arith.constant 16 : index
    %223 = vector.load %arg12[%c0_134, %c2_135, %c16_136] : memref<2x18x144xf32, #tpu.memory_space<vmem>>, vector<2x16x128xf32>
    %224 = arith.maximumf %222, %223 : vector<2x16x128xf32>
    %225 = vector.extract_strided_slice %224 {offsets = [0, 0, 0], sizes = [2, 1, 128], strides = [1, 1, 1]} : vector<2x16x128xf32> to vector<2x1x128xf32>
    %226 = vector.extract_strided_slice %224 {offsets = [0, 2, 0], sizes = [2, 1, 128], strides = [1, 1, 1]} : vector<2x16x128xf32> to vector<2x1x128xf32>
    %227 = vector.extract_strided_slice %224 {offsets = [0, 4, 0], sizes = [2, 1, 128], strides = [1, 1, 1]} : vector<2x16x128xf32> to vector<2x1x128xf32>
    %228 = vector.extract_strided_slice %224 {offsets = [0, 6, 0], sizes = [2, 1, 128], strides = [1, 1, 1]} : vector<2x16x128xf32> to vector<2x1x128xf32>
    %229 = vector.extract_strided_slice %224 {offsets = [0, 8, 0], sizes = [2, 1, 128], strides = [1, 1, 1]} : vector<2x16x128xf32> to vector<2x1x128xf32>
    %230 = vector.extract_strided_slice %224 {offsets = [0, 10, 0], sizes = [2, 1, 128], strides = [1, 1, 1]} : vector<2x16x128xf32> to vector<2x1x128xf32>
    %231 = vector.extract_strided_slice %224 {offsets = [0, 12, 0], sizes = [2, 1, 128], strides = [1, 1, 1]} : vector<2x16x128xf32> to vector<2x1x128xf32>
    %232 = vector.extract_strided_slice %224 {offsets = [0, 14, 0], sizes = [2, 1, 128], strides = [1, 1, 1]} : vector<2x16x128xf32> to vector<2x1x128xf32>
    %233 = tpu.concatenate %225, %226, %227, %228, %229, %230, %231, %232 in 1 : vector<2x1x128xf32>, vector<2x1x128xf32>, vector<2x1x128xf32>, vector<2x1x128xf32>, vector<2x1x128xf32>, vector<2x1x128xf32>, vector<2x1x128xf32>, vector<2x1x128xf32> -> vector<2x8x128xf32>
    %234 = vector.extract_strided_slice %233 {offsets = [0, 0, 0], sizes = [2, 8, 8], strides = [1, 1, 1]} : vector<2x8x128xf32> to vector<2x8x8xf32>
    %235 = vector.extract_strided_slice %233 {offsets = [0, 0, 16], sizes = [2, 8, 8], strides = [1, 1, 1]} : vector<2x8x128xf32> to vector<2x8x8xf32>
    %236 = vector.extract_strided_slice %233 {offsets = [0, 0, 32], sizes = [2, 8, 8], strides = [1, 1, 1]} : vector<2x8x128xf32> to vector<2x8x8xf32>
    %237 = vector.extract_strided_slice %233 {offsets = [0, 0, 48], sizes = [2, 8, 8], strides = [1, 1, 1]} : vector<2x8x128xf32> to vector<2x8x8xf32>
    %238 = vector.extract_strided_slice %233 {offsets = [0, 0, 64], sizes = [2, 8, 8], strides = [1, 1, 1]} : vector<2x8x128xf32> to vector<2x8x8xf32>
    %239 = vector.extract_strided_slice %233 {offsets = [0, 0, 80], sizes = [2, 8, 8], strides = [1, 1, 1]} : vector<2x8x128xf32> to vector<2x8x8xf32>
    %240 = vector.extract_strided_slice %233 {offsets = [0, 0, 96], sizes = [2, 8, 8], strides = [1, 1, 1]} : vector<2x8x128xf32> to vector<2x8x8xf32>
    %241 = vector.extract_strided_slice %233 {offsets = [0, 0, 112], sizes = [2, 8, 8], strides = [1, 1, 1]} : vector<2x8x128xf32> to vector<2x8x8xf32>
    %242 = tpu.concatenate %234, %235, %236, %237, %238, %239, %240, %241 in 2 : vector<2x8x8xf32>, vector<2x8x8xf32>, vector<2x8x8xf32>, vector<2x8x8xf32>, vector<2x8x8xf32>, vector<2x8x8xf32>, vector<2x8x8xf32>, vector<2x8x8xf32> -> vector<2x8x64xf32>
    %c0_137 = arith.constant 0 : index
    %c0_138 = arith.constant 0 : index
    %c0_139 = arith.constant 0 : index
    %243 = vector.load %arg10[%c0_137, %c0_138, %c0_139] : memref<2x8x64xf32, #tpu.memory_space<vmem>>, vector<2x8x64xf32>
    tpu.vector_store %arg10[%c0_137, %c0_138, %c0_139], %242 {strides = array<i32>} : memref<2x8x64xf32, #tpu.memory_space<vmem>>, vector<2x8x64xf32>,
    return
  }
  func.func @transform_0(%arg0: i32) -> (i32, i32, i32) {
    %c0_i32 = arith.constant 0 : i32
    %c0_i32_0 = arith.constant 0 : i32
    %c0_i32_1 = arith.constant 0 : i32
    %c0_i32_2 = arith.constant 0 : i32
    return %c0_i32, %c0_i32_0, %c0_i32_1 : i32, i32, i32
  }
  func.func @transform_1(%arg0: i32) -> (i32, i32) {
    %c0_i32 = arith.constant 0 : i32
    %c0_i32_0 = arith.constant 0 : i32
    %c0_i32_1 = arith.constant 0 : i32
    return %c0_i32, %c0_i32_0 : i32, i32
  }
  func.func @transform_2(%arg0: i32) -> (i32, i32) {
    %c0_i32 = arith.constant 0 : i32
    %c0_i32_0 = arith.constant 0 : i32
    %c0_i32_1 = arith.constant 0 : i32
    return %c0_i32, %c0_i32_0 : i32, i32
  }
  func.func @transform_3(%arg0: i32) -> (i32, i32) {
    %c0_i32 = arith.constant 0 : i32
    %c0_i32_0 = arith.constant 0 : i32
    %c0_i32_1 = arith.constant 0 : i32
    return %c0_i32, %c0_i32_0 : i32, i32
  }
  func.func @transform_4(%arg0: i32) -> (i32, i32) {
    %c0_i32 = arith.constant 0 : i32
    %c0_i32_0 = arith.constant 0 : i32
    %c0_i32_1 = arith.constant 0 : i32
    return %c0_i32, %c0_i32_0 : i32, i32
  }
  func.func @transform_5(%arg0: i32) -> (i32, i32) {
    %c0_i32 = arith.constant 0 : i32
    %c0_i32_0 = arith.constant 0 : i32
    %c0_i32_1 = arith.constant 0 : i32
    return %c0_i32, %c0_i32_0 : i32, i32
  }
  func.func @transform_6(%arg0: i32) -> (i32, i32) {
    %c0_i32 = arith.constant 0 : i32
    %c0_i32_0 = arith.constant 0 : i32
    %c0_i32_1 = arith.constant 0 : i32
    return %c0_i32, %c0_i32_0 : i32, i32
  }
  func.func @transform_7(%arg0: i32) -> (i32, i32) {
    %c0_i32 = arith.constant 0 : i32
    %c0_i32_0 = arith.constant 0 : i32
    %c0_i32_1 = arith.constant 0 : i32
    return %c0_i32, %c0_i32_0 : i32, i32
  }
  func.func @transform_8(%arg0: i32) -> (i32, i32) {
    %c0_i32 = arith.constant 0 : i32
    %c0_i32_0 = arith.constant 0 : i32
    %c0_i32_1 = arith.constant 0 : i32
    return %c0_i32, %c0_i32_0 : i32, i32
  }
  func.func @transform_9(%arg0: i32) -> (i32, i32, i32) {
    %c0_i32 = arith.constant 0 : i32
    %c0_i32_0 = arith.constant 0 : i32
    %c0_i32_1 = arith.constant 0 : i32
    %c0_i32_2 = arith.constant 0 : i32
    return %c0_i32, %c0_i32_0, %c0_i32_1 : i32, i32, i32
  }
}

</mosaic_0001>

<bundles_post_ra>
// kernel: tpu_custom_call.1
= control target key start
LH: loop header
LB: loop body
LE: loop exit
PB: predicated region body
PF: predicated region fallthrough
CT: control target
= control target key end

     0   :  { %14 = vsyncpa [#allocation5], 0  ;;  %s5339_s0 = inlined_call_operand.hbm [shape: f32[2,16,64], index: 0, kind: input, shape index: {}]   ;;  %s5340_s1 = inlined_call_operand.hbm [shape: f32[9,64], index: 1, kind: input, shape index: {}]   ;;  %s5341_s2 = inlined_call_operand.hbm [shape: f32[64,128], index: 2, kind: input, shape index: {}]   ;;  %s5342_s3 = inlined_call_operand.vmem [shape: f32[1,128], index: 3, kind: input, shape index: {}]   ;;  %s5343_s4 = inlined_call_operand.vmem [shape: f32[1,128], index: 4, kind: input, shape index: {}]   ;;  %s5344_s5 = inlined_call_operand.hbm [shape: f32[9,128], index: 5, kind: input, shape index: {}]   ;;  %s5345_s6 = inlined_call_operand.hbm [shape: f32[128,128], index: 6, kind: input, shape index: {}]   ;;  %s5346_s7 = inlined_call_operand.vmem [shape: f32[1,128], index: 7, kind: input, shape index: {}]   ;;  %s5347_s8 = inlined_call_operand.vmem [shape: f32[1,128], index: 8, kind: input, shape index: {}]   ;;  %s5348_s9 = inlined_call_operand.hbm [shape: f32[2,8,64], index: 9, kind: output, shape index: {}]  }
   0x1   :  { %15 = vsyncpa [#allocation8], 0 }
   0x2   :  { %16 = vsyncpa [#allocation11], 0 }
   0x3   :  { %17 = vsyncpa [#allocation6], 0  ;;  %s3756_s30 = smov [#allocation7]   ;;  %s3757_s11 = smov [#allocation10]  }
   0x4   :  { %s35_s10 = sshll.u32 %s3756_s30, 4  ;;  %s63_s12 = sshll.u32 %s3757_s11, 4  ;;  %s36_s10 = int_to_ptr.vmem [resolvable:$true] %s35_s10  ;;  %s64_s12 = int_to_ptr.vmem [resolvable:$true] %s63_s12 }
   0x5   :  { %s3636_s13 = scalar_lea.vmem %s36_s10, 256  ;;  %p3641_p1 = scmp.lt.s32.totalorder %s36_s10, %s36_s10 }
   0x6   :  { %p3637_p0 = scmp.ne.s32.totalorder %s36_s10, %s3636_s13  ;;  %p3642_p2 = scmp.lt.s32.totalorder %s3636_s13, %s3636_s13 }
   0x8   :  { %p3643_p3 = por %p3642_p2, %p3641_p1 }
   0xa   :  { %p3644_p4 = pnand %p3643_p3, %p3637_p0 }
   0xc   :  { %3647 = shalt.err (!%p3644_p4)
}
   0xd   :  { %s3758_s14 = smov 128   ;;  %s3759_s15 = smov 8  }
   0xe   :  { %41 = dma.hbm_to_vmem [thread:$0]  %s5340_s1, 256, %s36_s10, [#allocation8], %s3758_s14, %s3758_s14, %s3759_s15  }
   0xf   :  { %s3656_s18 = scalar_lea.vmem %s64_s12, 256  ;;  %p3661_p6 = scmp.lt.s32.totalorder %s64_s12, %s64_s12 }
  0x10   :  { %p3657_p5 = scmp.ne.s32.totalorder %s64_s12, %s3656_s18  ;;  %p3662_p7 = scmp.lt.s32.totalorder %s3656_s18, %s3656_s18 }
  0x12   :  { %p3663_p8 = por %p3662_p7, %p3661_p6 }
  0x14   :  { %p3664_p9 = pnand %p3663_p8, %p3657_p5 }
  0x16   :  { %3667 = shalt.err (!%p3664_p9)
}
  0x17   :  { %69 = dma.hbm_to_vmem [thread:$0]  %s5344_s5, 256, %s64_s12, [#allocation11], %s3758_s14, %s3758_s14, %s3759_s15  }
  0x18   :  { %s3760_s21 = smov [#allocation4]   ;;  %s3761_s23 = smov [#allocation9]  }
  0x19   :  { %s23_s22 = sshll.u32 %s3760_s21, 4  ;;  %s47_s24 = sshll.u32 %s3761_s23, 4  ;;  %s24_s22 = int_to_ptr.vmem [resolvable:$true] %s23_s22  ;;  %s48_s24 = int_to_ptr.vmem [resolvable:$true] %s47_s24 }
  0x1a   :  { %s3676_s1 = scalar_lea.vmem %s24_s22, 512  ;;  %p3681_p11 = scmp.lt.s32.totalorder %s24_s22, %s24_s22 }
  0x1b   :  { %p3677_p10 = scmp.ne.s32.totalorder %s24_s22, %s3676_s1  ;;  %p3682_p12 = scmp.lt.s32.totalorder %s3676_s1, %s3676_s1 }
  0x1d   :  { %p3683_p13 = por %p3682_p12, %p3681_p11 }
  0x1f   :  { %p3684_p0 = pnand %p3683_p13, %p3677_p10 }
  0x21   :  { %3687 = shalt.err (!%p3684_p0)
}
  0x22   :  { %29 = dma.hbm_to_vmem [thread:$0]  %s5339_s0, 512, %s24_s22, [#allocation5], %s3758_s14, %s3758_s14, %s3759_s15  }
  0x23   :  { %s3696_s5 = scalar_lea.vmem %s48_s24, 1024  ;;  %p3701_p2 = scmp.lt.s32.totalorder %s48_s24, %s48_s24 }
  0x24   :  { %p3697_p1 = scmp.ne.s32.totalorder %s48_s24, %s3696_s5  ;;  %p3702_p3 = scmp.lt.s32.totalorder %s3696_s5, %s3696_s5 }
  0x26   :  { %p3703_p4 = por %p3702_p3, %p3701_p2 }
  0x28   :  { %p3704_p5 = pnand %p3703_p4, %p3697_p1 }
  0x2a   :  { %3707 = shalt.err (!%p3704_p5)
}
  0x2b   :  { %53 = dma.hbm_to_vmem [thread:$0]  %s5341_s2, 1024, %s48_s24, [#allocation8], %s3758_s14, %s3758_s14, %s3759_s15  }
  0x2c   :  { %s3762_s29 = smov [#allocation12]  }
  0x2d   :  { %s75_s30 = sshll.u32 %s3762_s29, 4  ;;  %s76_s30 = int_to_ptr.vmem [resolvable:$true] %s75_s30 }
  0x2e   :  { %s3716_s10 = scalar_lea.vmem %s76_s30, 2048  ;;  %p3721_p7 = scmp.lt.s32.totalorder %s76_s30, %s76_s30 }
  0x2f   :  { %p3717_p6 = scmp.ne.s32.totalorder %s76_s30, %s3716_s10  ;;  %p3722_p8 = scmp.lt.s32.totalorder %s3716_s10, %s3716_s10 }
  0x31   :  { %p3723_p9 = por %p3722_p8, %p3721_p7 }
  0x33   :  { %p3724_p10 = pnand %p3723_p9, %p3717_p6 }
  0x35   :  { %3727 = shalt.err (!%p3724_p10)
}
  0x36   :  { %81 = dma.hbm_to_vmem [thread:$0]  %s5345_s6, 2048, %s76_s30, [#allocation11], %s3758_s14, %s3758_s14, %s3759_s15  }
  0x37   :  { %3748 = dma.done.wait [#allocation5], 512  }
  0x38   :  { %3749 = vsyncadd [#allocation5], 4294966784 }
  0x39   :  { %3750 = dma.done.wait [#allocation8], 1280  }
  0x3a   :  { %3751 = vsyncadd [#allocation8], 4294966016 }
  0x3b   :  { %3752 = dma.done.wait [#allocation11], 2304  }
  0x3c   :  { %3753 = vsyncadd [#allocation11], 4294964992  ;;  %v158_v0 = vlaneseq  ;;  %vm101_vm0 = vcmask 588800   ;;  %v3763_v1 = vmov 0.0   ;;  %vm104_vm1 = vcmask 582656   ;;  %v152_v5 = vld [vmem:[#allocation7] sm:$0xff] }
  0x3d   :  { %102 = vst.msk [vmem:[#allocation2] sm:$0xff] %vm101_vm0, %v3763_v1  ;;  %103 = vst.msk [vmem:[#allocation2 + $0x8] sm:$0xff] %vm101_vm0, %v3763_v1  ;;  %v123_v6 = vld [vmem:[#allocation4] sm:$0xff]  ;;  %v124_v7 = vld [vmem:[#allocation4 + $0x8] sm:$0xff]  ;;  %s3764_s2 = smov 4   ;;  %vm147_vm2 = vcmask 556064  }
  0x3e   :  { %106 = vst.msk [vmem:[#allocation2 + $0x18] sm:$0xff] %vm101_vm0, %v3763_v1  ;;  %107 = vst.msk [vmem:[#allocation2 + $0x20] sm:$0xff] %vm101_vm0, %v3763_v1  ;;  %v3867_v2 = vshrl.u32 %v158_v0, 7  ;;  %v127_v9 = vmax.f32 %v123_v6, 0.0  ;;  %v128_v11 = vmax.f32 %v124_v7, 0.0  ;;  %v126_v12 = vld [vmem:[#allocation4 + $0x18] sm:$0xff] }
  0x3f   :  { %109 = vst [vmem:[#allocation3] sm:$0xff] %v3763_v1  ;;  %112 = vst [vmem:[#allocation3 + $0x10] sm:$0xff] %v3763_v1  ;;  %v125_v13 = vld [vmem:[#allocation4 + $0x10] sm:$0xff]  ;;  %v130_v14 = vmax.f32 %v126_v12, 0.0  ;;  %v3048_v22 = vld [vmem:[#allocation7 + $0x8] ss:$0 sm:$0xff] }
  0x40   :  { %114 = vst [vmem:[#allocation3 + $0x20] sm:$0x3] %v3763_v1  ;;  %117 = vst [vmem:[#allocation3 + $0x30] sm:$0xff] %v3763_v1  ;;  %v168_v3 = vsub.s32 1, %v3867_v2  ;;  %v200_v4 = vsub.s32 2, %v3867_v2  ;;  %135 = vrot.lane.b32.xlu0 %v127_v9, %s3764_s2  ;;  %v129_v15 = vmax.f32 %v125_v13, 0.0 }
  0x41   :  { %119 = vst [vmem:[#allocation3 + $0x40] sm:$0xff] %v3763_v1  ;;  %121 = vst [vmem:[#allocation3 + $0x50] sm:$0x3] %v3763_v1  ;;  %v5352_v16 = vsub.s32 5, %v3867_v2  ;;  %v248_v17 = vsub.s32 4, %v3867_v2  ;;  %v5351_v20 = vsub.s32 7, %v3867_v2 }
  0x42   :  { %105 = vst.msk [vmem:[#allocation2 + $0x10] sm:$0x3] %vm104_vm1, %v3763_v1  ;;  %108 = vst.msk [vmem:[#allocation2 + $0x28] sm:$0x3] %vm104_vm1, %v3763_v1  ;;  %v169_v8 = vrot.slane %v152_v5, %v168_v3  ;;  %v201_v10 = vrot.slane %v152_v5, %v200_v4  ;;  %v3893_v25 = vsub.s32 0, %v3867_v2  ;;  %v5350_v26 = vsub.s32 3, %v3867_v2 }
  0x43   :  { %v281_v18 = vrot.slane %v152_v5, %v5352_v16  ;;  %v249_v19 = vrot.slane %v152_v5, %v248_v17  ;;  %v329_v21 = vrot.slane %v152_v5, %v5351_v20  ;;  %v5349_v31 = vsub.s32 6, %v3867_v2  ;;  %v397_v39 = vld [vmem:[#allocation9 + $0x38] sm:$0xff]  ;;  %s3765_s6 = smov 124   ;;  %v396_v48 = vld [vmem:[#allocation9 + $0x30] sm:$0xff]  ;;  %s3766_s12 = smov 120   ;;  %v395_v55 = vld [vmem:[#allocation9 + $0x28] sm:$0xff] }
  0x44   :  { %171 = vrot.lane.b32.xlu1 %v169_v8, %s3764_s2  ;;  %137 = vrot.lane.b32.xlu0 %v128_v11, %s3764_s2  ;;  %5422 = vst [vmem:[#allocation18_spill] sm:$0xff] %v3893_v25  ;;  %v161_v29 = vrot.slane %v152_v5, %v3893_v25  ;;  %v3902_v30 = vrot.slane %v152_v5, %v5350_v26  ;;  %v3918_v41 = vand.u32 4294901760, %v397_v39  ;;  %v3944_v54 = vand.u32 4294901760, %v396_v48  ;;  %v394_v63 = vld [vmem:[#allocation9 + $0x20] sm:$0xff]  ;;  %v393_v7 = vld [vmem:[#allocation9 + $0x18] sm:$0xff]  ;;  %v392_v12 = vld [vmem:[#allocation9 + $0x10] sm:$0xff] }
  0x45   :  { %v3916_v40 = vrot.slane %v152_v5, %v5349_v31  ;;  %v3955_v60 = vand.u32 4294901760, %v395_v55  ;;  %vm398_vm3 = vcmask 523264   ;;  %s3767_s13 = smov 64   ;;  %s3768_s16 = smov 32   ;;  %vm110_vm4 = vcmask 130048  }
  0x46   :  { %3242 = vmatprep.subr.mxu0 %v3918_v41  ;;  %v3942_v53 = vsub.f32 %v397_v39, %v3918_v41  ;;  %s3769_s17 = smov 16   ;;  %111 = vst.msk [vmem:[#allocation3 + $0x8] sm:$0xff] %vm110_vm4, %v3763_v1  ;;  %113 = vst.msk [vmem:[#allocation3 + $0x18] sm:$0xff] %vm110_vm4, %v3763_v1  ;;  %vm115_vm5 = vcmask 123904   ;;  %vm1162_vm6 = vcmask 1040384   ;;  %vm1187_vm7 = vcmask 1047617  }
  0x47   :  { %3243 = vmatpush3.msra.mxu0 %v3918_v41  ;;  %118 = vst.msk [vmem:[#allocation3 + $0x38] sm:$0xff] %vm110_vm4, %v3763_v1  ;;  %120 = vst.msk [vmem:[#allocation3 + $0x48] sm:$0xff] %vm110_vm4, %v3763_v1  ;;  %vm1189_vm8 = vcmask 64513   ;;  %vm1191_vm9 = vcmask 1047616   ;;  %vm1193_vm10 = vcmask 64512   ;;  %vm1195_vm11 = vcmask 1040448  }
  0x48   :  { %203 = vrot.lane.b32.xlu1 %v201_v10, %s3759_s15  ;;  %139 = vrot.lane.b32.xlu0 %v129_v15, %s3764_s2  ;;  %v3963_v62 = vand.u32 4294901760, %v3942_v53  ;;  %v3985_v15 = vsub.f32 %v396_v48, %v3944_v54  ;;  %116 = vst.msk [vmem:[#allocation3 + $0x28] sm:$0x3] %vm115_vm5, %v3763_v1  ;;  %122 = vst.msk [vmem:[#allocation3 + $0x58] sm:$0x3] %vm115_vm5, %v3763_v1  ;;  %vm1197_vm12 = vcmask 57344  }
  0x49   :  { %3244 = vmatprep.subr.mxu0 %v3944_v54  ;;  %vm1349_vm13 = vcmask 1046528   ;;  %vm1552_vm14 = vcmask 1045504   ;;  %vm1263_vm15 = vcmask 982016   ;;  %vm1316_vm0 = vcmask 916480   ;;  %s3773_s1 = smov 88   ;;  %s3774_s25 = smov 80  }
  0x4a   :  { %3245 = vmatpush3.msra.mxu0 %v3944_v54  ;;  %v544_v11 = vsub.f32 %v3942_v53, %v3963_v62  ;;  %vm2948_vm1 = vcmask 1041408   ;;  %vm2954_vm5 = vcmask 1043456   ;;  %s3775_s26 = smov 72   ;;  %s3776_s5 = smov [#allocation13]  }
  0x4b   :  { %3246 = vmatprep.subr.mxu0 %v3955_v60  ;;  %s3034_s27 = sshll.u32 %s3776_s5, 4  ;;  %s3035_s27 = int_to_ptr.vmem [resolvable:$true] %s3034_s27 }
  0x4c   :  { %141 = vrot.lane.b32.xlu1 %v130_v14, %s3764_s2  ;;  %251 = vrot.lane.b32.xlu0 %v249_v19, %s3764_s2  ;;  %v3990_v19 = vand.u32 4294901760, %v394_v63  ;;  %s3728_s28 = scalar_lea.vmem %s3035_s27, 256  ;;  %p3733_p12 = scmp.lt.s32.totalorder %s3035_s27, %s3035_s27 }
  0x4d   :  { %3247 = vmatpush3.msra.mxu0 %v3955_v60  ;;  %p3729_p11 = scmp.ne.s32.totalorder %s3035_s27, %s3728_s28  ;;  %p3734_p13 = scmp.lt.s32.totalorder %s3728_s28, %s3728_s28 }
  0x4e   :  { %3248 = vmatprep.subr.mxu0 %v3990_v19 }
  0x4f   :  { %3249 = vmatpush3.msra.mxu0 %v3990_v19  ;;  %p3735_p0 = por %p3734_p13, %p3733_p12 }
  0x50   :  { %283 = vrot.lane.b32.xlu1 %v281_v18, %s3759_s15  ;;  %331 = vrot.lane.b32.xlu0 %v329_v21, %s3764_s2  ;;  %v3988_v18 = vsub.f32 %v395_v55, %v3955_v60  ;;  %v545_v21 = vand.u32 4294901760, %v544_v11 }
  0x51   :  { %p3736_p1 = pnand %p3735_p0, %p3729_p11 }
  0x52   :  { %3264 = vmatprep.subr.mxu1 %v545_v21 }
  0x53   :  { %3265 = vmatpush3.msra.mxu1 %v545_v21 }
  0x54   :  { %363 = vrot.lane.b32.xlu1 %v3048_v22, %s3759_s15  ;;  %v3994_v22 = vand.u32 4294901760, %v393_v7 }
  0x56   :  { %3250 = vmatprep.subr.mxu0 %v3994_v22 }
  0x57   :  { %3251 = vmatpush3.msra.mxu0 %v3994_v22 }
  0xb2   :  { %v136_v24 = vpop.permute.xlu0 %135 }
  0xb3   :  { %148 = vst.msk [vmem:[#allocation2 + $0x1] sm:$0xff] %vm147_vm2, %v136_v24  ;;  %v3996_v24 = vand.u32 4294901760, %v392_v12 }
  0xb5   :  { %3252 = vmatprep.subr.mxu0 %v3996_v24 }
  0xb6   :  { %v3889_v23 = vpop.permute.xlu1 %171  ;;  %v138_v28 = vpop.permute.xlu0 %137  ;;  %3253 = vmatpush3.msra.mxu0 %v3996_v24 }
  0xb7   :  { %149 = vst.msk [vmem:[#allocation2 + $0x9] sm:$0xff] %vm147_vm2, %v138_v28 }
  0xba   :  { %v3896_v27 = vpop.permute.xlu1 %203  ;;  %v140_v33 = vpop.permute.xlu0 %139  ;;  %v154_v34 = vld [vmem:[#allocation2] sm:$0xff] }
  0xbb   :  { %v230_v35 = vld [vmem:[#allocation2 + $0x1] sm:$0xff]  ;;  %150 = vst.msk [vmem:[#allocation2 + $0x19] sm:$0xff] %vm147_vm2, %v140_v33  ;;  %v174_v36 = vmul.f32 %v3889_v23, %v154_v34  ;;  %v3908_v37 = vmul.f32 %v161_v29, %v154_v34  ;;  %v206_v46 = vmul.f32 %v3896_v27, %v154_v34  ;;  %v4007_v34 = vand.u32 4294901760, %v3985_v15 }
  0xbc   :  { %v3911_v38 = vmul.f32 %v3902_v30, %v230_v35 }
  0xbd   :  { %182 = vrot.lane.b32.xlu0 %v174_v36, %s3765_s6  ;;  %v4013_v36 = vsub.f32 %v394_v63, %v3990_v19 }
  0xbe   :  { %v142_v32 = vpop.permute.xlu1 %141  ;;  %v155_v42 = vld [vmem:[#allocation2 + $0x8] sm:$0xff]  ;;  %v3927_v49 = vpop.permute.xlu0 %251 }
  0xbf   :  { %151 = vst.msk [vmem:[#allocation2 + $0x21] sm:$0xff] %vm147_vm2, %v142_v32  ;;  %v231_v43 = vld [vmem:[#allocation2 + $0x9] sm:$0xff]  ;;  %v175_v45 = vmul.f32 %v3889_v23, %v155_v42  ;;  %v3929_v50 = vmul.f32 %v161_v29, %v155_v42  ;;  %v207_v58 = vmul.f32 %v3896_v27, %v155_v42  ;;  %v254_v59 = vmul.f32 %v3927_v49, %v230_v35 }
  0xc0   :  { %v3920_v44 = vld [vmem:[#allocation2 + $0x2] sm:$0xff]  ;;  %v3924_v47 = vld [vmem:[#allocation2 + $0xa] sm:$0xff]  ;;  %v3932_v51 = vmul.f32 %v3902_v30, %v231_v43  ;;  %v255_v0 = vmul.f32 %v3927_v49, %v231_v43  ;;  %v4038_v63 = vand.u32 4294901760, %v4013_v36  ;;  %vm2951_vm2 = vcmask 1042432  }
  0xc1   :  { %184 = vrot.lane.b32.xlu1 %v175_v45, %s3765_s6  ;;  %214 = vrot.lane.b32.xlu0 %v206_v46, %s3766_s12  ;;  %v3939_v52 = vmul.f32 %v3916_v40, %v3920_v44  ;;  %v3948_v56 = vmul.f32 %v3916_v40, %v3924_v47  ;;  %v4024_v45 = vsub.f32 %v392_v12, %v3996_v24  ;;  %v390_v46 = vld [vmem:[#allocation9] sm:$0xff] }
  0xc2   :  { %v3950_v57 = vpop.permute.xlu1 %283  ;;  %v3960_v61 = vld [vmem:[#allocation2 + $0x18] sm:$0xff]  ;;  %v4018_v42 = vpop.permute.xlu0 %331  ;;  %v565_v12 = vsub.f32 %v4013_v36, %v4038_v63 }
  0xc3   :  { %v286_v5 = vmul.f32 %v3950_v57, %v230_v35  ;;  %v287_v8 = vmul.f32 %v3950_v57, %v231_v43  ;;  %v3972_v9 = vmul.f32 %v161_v29, %v3960_v61  ;;  %v176_v13 = vmul.f32 %v3889_v23, %v3960_v61  ;;  %v3982_v14 = vld [vmem:[#allocation2 + $0x19] sm:$0xff] }
  0xc4   :  { %v4000_v28 = vmul.f32 %v3902_v30, %v3982_v14  ;;  %v4010_v35 = vand.u32 4294901760, %v3988_v18  ;;  %v4021_v43 = vsub.f32 %v393_v7, %v3994_v22  ;;  %v334_v7 = vmul.f32 %v4018_v42, %v3920_v44 }
  0xc5   :  { %216 = vrot.lane.b32.xlu1 %v207_v58, %s3766_s12  ;;  %262 = vrot.lane.b32.xlu0 %v254_v59, %s3765_s6  ;;  %v551_v58 = vsub.f32 %v3985_v15, %v4007_v34  ;;  %v4063_v31 = vand.u32 4294901760, %v4024_v45 }
  0xc6   :  { %v3967_v6 = vld [vmem:[#allocation2 + $0x20] sm:$0xff]  ;;  %v558_v59 = vsub.f32 %v3988_v18, %v4010_v35 }
  0xc7   :  { %v3975_v10 = vmul.f32 %v161_v29, %v3967_v6  ;;  %v391_v29 = vld [vmem:[#allocation9 + $0x8] sm:$0xff]  ;;  %v4004_v33 = vld [vmem:[#allocation2 + $0x1a] sm:$0xff]  ;;  %v552_v11 = vand.u32 4294901760, %v551_v58  ;;  %v579_v20 = vsub.f32 %v4024_v45, %v4063_v31 }
  0xc8   :  { %v4002_v32 = vld [vmem:[#allocation2 + $0x21] sm:$0xff]  ;;  %v4015_v39 = vand.u32 4294901760, %v391_v29  ;;  %v559_v21 = vand.u32 4294901760, %v558_v59 }
  0xc9   :  { %264 = vrot.lane.b32.xlu1 %v255_v0, %s3765_s6  ;;  %294 = vrot.lane.b32.xlu0 %v286_v5, %s3766_s12  ;;  %v4028_v48 = vmul.f32 %v3902_v30, %v4002_v32  ;;  %v4031_v55 = vld [vmem:[#allocation2 + $0x22] sm:$0xff]  ;;  %v4044_v30 = vand.u32 4294901760, %v4021_v43  ;;  %v4046_v0 = vand.u32 4294901760, %v390_v46  ;;  %v4050_v5 = vmul.f32 %v3916_v40, %v4004_v33 }
  0xca   :  { %v4068_v58 = vmul.f32 %v3916_v40, %v4031_v55  ;;  %3266 = vmatprep.subr.mxu1 %v552_v11  ;;  %3254 = vmatprep.subr.mxu0 %v4015_v39  ;;  %v335_v40 = vmul.f32 %v4018_v42, %v3924_v47 }
  0xcb   :  { %v4073_v26 = vsub.f32 %v390_v46, %v4046_v0  ;;  %3267 = vmatpush3.msra.mxu1 %v552_v11  ;;  %v208_v46 = vmul.f32 %v3896_v27, %v3960_v61  ;;  %3255 = vmatpush3.msra.mxu0 %v4015_v39 }
  0xcc   :  { %3268 = vmatprep.subr.mxu1 %v559_v21  ;;  %3256 = vmatprep.subr.mxu0 %v4046_v0 }
  0xcd   :  { %296 = vrot.lane.b32.xlu1 %v287_v8, %s3766_s12  ;;  %186 = vrot.lane.b32.xlu0 %v176_v13, %s3765_s6  ;;  %v4057_v8 = vsub.f32 %v391_v29, %v4015_v39  ;;  %v177_v13 = vmul.f32 %v3889_v23, %v3967_v6  ;;  %v572_v29 = vsub.f32 %v4021_v43, %v4044_v30  ;;  %v566_v23 = vand.u32 4294901760, %v565_v12 }
  0xce   :  { %3269 = vmatpush3.msra.mxu1 %v559_v21  ;;  %v4090_v12 = vand.u32 4294901760, %v4073_v26  ;;  %3257 = vmatpush3.msra.mxu0 %v4046_v0  ;;  %v209_v21 = vmul.f32 %v3896_v27, %v3967_v6  ;;  %v257_v27 = vmul.f32 %v3927_v49, %v4002_v32  ;;  %v288_v6 = vmul.f32 %v3950_v57, %v3982_v14 }
  0xcf   :  { %v4079_v59 = vand.u32 4294901760, %v4057_v8  ;;  %v573_v11 = vand.u32 4294901760, %v572_v29  ;;  %3270 = vmatprep.subr.mxu1 %v566_v23  ;;  %v580_v29 = vand.u32 4294901760, %v579_v20  ;;  %3286 = vmatprep.subr.mxu0 %v3942_v53 }
  0xd0   :  { %3271 = vmatpush3.msra.mxu1 %v566_v23 }
  0xd1   :  { %342 = vrot.lane.b32.xlu1 %v334_v7, %s3765_s6  ;;  %188 = vrot.lane.b32.xlu0 %v177_v13, %s3765_s6  ;;  %v364_v7 = vpop.permute.xlu1 %363  ;;  %v586_v61 = vsub.f32 %v4057_v8, %v4079_v59 }
  0xd2   :  { %v366_v13 = vmul.f32 %v364_v7, %v3920_v44  ;;  %3272 = vmatprep.subr.mxu1 %v573_v11  ;;  %v367_v16 = vmul.f32 %v364_v7, %v3924_v47  ;;  %v256_v44 = vmul.f32 %v3927_v49, %v3982_v14  ;;  %v289_v47 = vmul.f32 %v3950_v57, %v4002_v32 }
  0xd3   :  { %3273 = vmatpush3.msra.mxu1 %v573_v11  ;;  %v337_v49 = vmul.f32 %v4018_v42, %v4031_v55  ;;  %v368_v14 = vmul.f32 %v364_v7, %v4004_v33  ;;  %v369_v57 = vmul.f32 %v364_v7, %v4031_v55 }
  0xd4   :  { %3274 = vmatprep.subr.mxu1 %v580_v29 }
  0xd5   :  { %344 = vrot.lane.b32.xlu1 %v335_v40, %s3765_s6  ;;  %218 = vrot.lane.b32.xlu0 %v208_v46, %s3766_s12  ;;  %v593_v40 = vsub.f32 %v4073_v26, %v4090_v12  ;;  %v587_v46 = vand.u32 4294901760, %v586_v61 }
  0xd6   :  { %3275 = vmatpush3.msra.mxu1 %v580_v29 }
  0xd7   :  { %v594_v20 = vand.u32 4294901760, %v593_v40  ;;  %3276 = vmatprep.subr.mxu1 %v587_v46 }
  0xd8   :  { %3277 = vmatpush3.msra.mxu1 %v587_v46 }
  0xd9   :  { %374 = vrot.lane.b32.xlu1 %v366_v13, %s3766_s12  ;;  %220 = vrot.lane.b32.xlu0 %v209_v21, %s3766_s12 }
  0xda   :  { %3278 = vmatprep.subr.mxu1 %v594_v20 }
  0xdb   :  { %3279 = vmatpush3.msra.mxu1 %v594_v20 }
  0xdc   :  { %3308 = vmatprep.subr.mxu1 %v3918_v41 }
  0xdd   :  { %376 = vrot.lane.b32.xlu1 %v367_v16, %s3766_s12  ;;  %266 = vrot.lane.b32.xlu0 %v256_v44, %s3765_s6  ;;  %v336_v16 = vmul.f32 %v4018_v42, %v4004_v33 }
  0xe1   :  { %268 = vrot.lane.b32.xlu1 %v257_v27, %s3765_s6  ;;  %298 = vrot.lane.b32.xlu0 %v288_v6, %s3766_s12 }
  0xe5   :  { %300 = vrot.lane.b32.xlu1 %v289_v47, %s3766_s12  ;;  %346 = vrot.lane.b32.xlu0 %v336_v16, %s3765_s6 }
  0xe9   :  { %348 = vrot.lane.b32.xlu1 %v337_v49, %s3765_s6  ;;  %378 = vrot.lane.b32.xlu0 %v368_v14, %s3766_s12 }
  0xed   :  { %380 = vrot.lane.b32.xlu1 %v369_v57, %s3766_s12 }
 0x12f   :  { %v183_v32 = vpop.permute.xlu0 %182 }
 0x130   :  { %v194_v23 = vadd.f32 %v183_v32, %v3908_v37 }
 0x133   :  { %v185_v11 = vpop.permute.xlu1 %184  ;;  %v215_v61 = vpop.permute.xlu0 %214 }
 0x134   :  { %v226_v13 = vadd.f32 %v215_v61, %v194_v23  ;;  %v195_v21 = vadd.f32 %v185_v11, %v3929_v50 }
 0x136   :  { %v242_v42 = vadd.f32 %v3911_v38, %v226_v13 }
 0x137   :  { %v217_v29 = vpop.permute.xlu1 %216  ;;  %v263_v33 = vpop.permute.xlu0 %262 }
 0x138   :  { %v227_v40 = vadd.f32 %v217_v29, %v195_v21  ;;  %v274_v46 = vadd.f32 %v263_v33, %v242_v42 }
 0x13a   :  { %v243_v44 = vadd.f32 %v3932_v51, %v227_v40 }
 0x13b   :  { %v265_v20 = vpop.permute.xlu1 %264  ;;  %v295_v55 = vpop.permute.xlu0 %294 }
 0x13c   :  { %v306_v7 = vadd.f32 %v295_v55, %v274_v46  ;;  %v275_v27 = vadd.f32 %v265_v20, %v243_v44 }
 0x13e   :  { %v322_v6 = vadd.f32 %v3939_v52, %v306_v7 }
 0x13f   :  { %v297_v37 = vpop.permute.xlu1 %296  ;;  %v187_v47 = vpop.permute.xlu0 %186 }
 0x140   :  { %v307_v16 = vadd.f32 %v297_v37, %v275_v27  ;;  %v196_v38 = vadd.f32 %v187_v47, %v3972_v9 }
 0x142   :  { %v323_v49 = vadd.f32 %v3948_v56, %v307_v16 }
 0x143   :  { %v343_v50 = vpop.permute.xlu1 %342  ;;  %v189_v14 = vpop.permute.xlu0 %188 }
 0x144   :  { %v354_v11 = vadd.f32 %v343_v50, %v322_v6  ;;  %v197_v51 = vadd.f32 %v189_v14, %v3975_v10 }
 0x147   :  { %v345_v57 = vpop.permute.xlu1 %344  ;;  %v219_v32 = vpop.permute.xlu0 %218 }
 0x148   :  { %v228_v23 = vadd.f32 %v219_v32, %v196_v38  ;;  %v355_v29 = vadd.f32 %v345_v57, %v323_v49 }
 0x14a   :  { %v244_v61 = vadd.f32 %v4000_v28, %v228_v23 }
 0x14b   :  { %v375_v13 = vpop.permute.xlu1 %374  ;;  %v221_v52 = vpop.permute.xlu0 %220 }
 0x14c   :  { %v386_v21 = vadd.f32 %v375_v13, %v354_v11  ;;  %v229_v42 = vadd.f32 %v221_v52, %v197_v51 }
 0x14e   :  { %v400_v56 = vsel %vm398_vm3, %v386_v21, 0  ;;  %v245_v33 = vadd.f32 %v4028_v48, %v229_v42 }
 0x14f   :  { %v4142_v40 = vand.u32 4294901760, %v400_v56  ;;  %v377_v9 = vpop.permute.xlu1 %376  ;;  %v267_v46 = vpop.permute.xlu0 %266 }
 0x150   :  { %v387_v44 = vadd.f32 %v377_v9, %v355_v29  ;;  %v276_v28 = vadd.f32 %v267_v46, %v244_v61 }
 0x151   :  { %v4145_v20 = vsub.f32 %v400_v56, %v4142_v40  ;;  %3280 = vmatprep.mubr.f32.mxu1 %v4142_v40 }
 0x152   :  { %v403_v10 = vsel %vm398_vm3, %v387_v44, 0 }
 0x153   :  { %v4149_v55 = vand.u32 4294901760, %v403_v10  ;;  %v269_v7 = vpop.permute.xlu1 %268  ;;  %v299_v27 = vpop.permute.xlu0 %298  ;;  %v486_v6 = vand.u32 4294901760, %v4145_v20 }
 0x154   :  { %v308_v48 = vadd.f32 %v299_v27, %v276_v28  ;;  %v277_v16 = vadd.f32 %v269_v7, %v245_v33 }
 0x155   :  { %v4153_v37 = vsub.f32 %v403_v10, %v4149_v55  ;;  %3281 = vmatmul.mubr.f32.vlgmr.msra.gmra.mxu1 %v4149_v55  ;;  %v487_v47 = vsub.f32 %v4145_v20, %v486_v6 }
 0x156   :  { %v324_v49 = vadd.f32 %v4050_v5, %v308_v48  ;;  %3309 = vmatpush3.msra.mxu1 %v3918_v41 }
 0x157   :  { %v301_v50 = vpop.permute.xlu1 %300  ;;  %v347_v14 = vpop.permute.xlu0 %346  ;;  %v488_v38 = vand.u32 4294901760, %v487_v47  ;;  %3310 = vmatprep.subr.mxu1 %v3944_v54  ;;  %v496_v57 = vand.u32 4294901760, %v4153_v37 }
 0x158   :  { %v309_v32 = vadd.f32 %v301_v50, %v277_v16  ;;  %3311 = vmatpush3.msra.mxu1 %v3944_v54  ;;  %v356_v11 = vadd.f32 %v347_v14, %v324_v49 }
 0x159   :  { %3258 = vmatprep.mubr.f32.mxu0 %v488_v38  ;;  %3312 = vmatprep.subr.mxu1 %v3955_v60  ;;  %v497_v23 = vsub.f32 %v4153_v37, %v496_v57 }
 0x15a   :  { %v325_v5 = vadd.f32 %v4068_v58, %v309_v32  ;;  %3313 = vmatpush3.msra.mxu1 %v3955_v60 }
 0x15b   :  { %v349_v51 = vpop.permute.xlu1 %348  ;;  %v379_v61 = vpop.permute.xlu0 %378  ;;  %v498_v13 = vand.u32 4294901760, %v497_v23  ;;  %3314 = vmatprep.subr.mxu1 %v3990_v19 }
 0x15c   :  { %v388_v52 = vadd.f32 %v379_v61, %v356_v11  ;;  %3315 = vmatpush3.msra.mxu1 %v3990_v19  ;;  %v357_v21 = vadd.f32 %v349_v51, %v325_v5 }
 0x15d   :  { %3259 = vmatmul.mubr.f32.vlgmr.msra.gmra.mxu0 %v498_v13  ;;  %3316 = vmatprep.subr.mxu1 %v3994_v22 }
 0x15e   :  { %v406_v42 = vsel %vm398_vm3, %v388_v52, 0  ;;  %3287 = vmatpush3.msra.mxu0 %v3942_v53  ;;  %3317 = vmatpush3.msra.mxu1 %v3994_v22 }
 0x15f   :  { %v4172_v58 = vand.u32 4294901760, %v406_v42  ;;  %v381_v29 = vpop.permute.xlu1 %380  ;;  %3288 = vmatprep.subr.mxu0 %v3985_v15  ;;  %3318 = vmatprep.subr.mxu1 %v3996_v24 }
 0x160   :  { %v389_v56 = vadd.f32 %v381_v29, %v357_v21  ;;  %3289 = vmatpush3.msra.mxu0 %v3985_v15  ;;  %3319 = vmatpush3.msra.mxu1 %v3996_v24 }
 0x161   :  { %v505_v33 = vsub.f32 %v406_v42, %v4172_v58  ;;  %3283 = vmatprep.mubr.f32.mxu1 %v4172_v58  ;;  %3290 = vmatprep.subr.mxu0 %v3988_v18 }
 0x162   :  { %v409_v53 = vsel %vm398_vm3, %v389_v56, 0  ;;  %3320 = vmatprep.subr.mxu1 %v4015_v39  ;;  %3291 = vmatpush3.msra.mxu0 %v3988_v18 }
 0x163   :  { %v4184_v9 = vand.u32 4294901760, %v409_v53  ;;  %3321 = vmatpush3.msra.mxu1 %v4015_v39  ;;  %3292 = vmatprep.subr.mxu0 %v4013_v36  ;;  %v506_v15 = vand.u32 4294901760, %v505_v33 }
 0x164   :  { %3322 = vmatprep.subr.mxu1 %v4046_v0  ;;  %3293 = vmatpush3.msra.mxu0 %v4013_v36 }
 0x165   :  { %v515_v46 = vsub.f32 %v409_v53, %v4184_v9  ;;  %3284 = vmatmul.mubr.f32.gmra.mxu1 %v4184_v9  ;;  %3294 = vmatprep.subr.mxu0 %v4021_v43  ;;  %v507_v44 = vsub.f32 %v505_v33, %v506_v15 }
 0x166   :  { %3324 = vmatprep.mubr.f32.mxu1 %v486_v6  ;;  %3323 = vmatpush3.msra.mxu1 %v4046_v0 }
 0x167   :  { %3352 = vmatprep.subr.mxu1 %v3918_v41  ;;  %v508_v18 = vand.u32 4294901760, %v507_v44  ;;  %3295 = vmatpush3.msra.mxu0 %v4021_v43  ;;  %v516_v10 = vand.u32 4294901760, %v515_v46 }
 0x168   :  { %3296 = vmatprep.subr.mxu0 %v4024_v45 }
 0x169   :  { %3261 = vmatprep.mubr.f32.mxu0 %v508_v18  ;;  %3325 = vmatmul.mubr.f32.vlgmr.msra.gmra.mxu1 %v496_v57  ;;  %v517_v36 = vsub.f32 %v515_v46, %v516_v10 }
 0x16a   :  { %3353 = vmatpush3.msra.mxu1 %v3918_v41  ;;  %3327 = vmatprep.mubr.f32.mxu1 %v506_v15 }
 0x16b   :  { %3354 = vmatprep.subr.mxu1 %v3944_v54  ;;  %3297 = vmatpush3.msra.mxu0 %v4024_v45  ;;  %v518_v28 = vand.u32 4294901760, %v517_v36 }
 0x16c   :  { %3355 = vmatpush3.msra.mxu1 %v3944_v54  ;;  %3298 = vmatprep.subr.mxu0 %v4057_v8 }
 0x16d   :  { %3356 = vmatprep.subr.mxu1 %v3955_v60  ;;  %3262 = vmatmul.mubr.f32.gmra.mxu0 %v518_v28 }
 0x16e   :  { %3299 = vmatpush3.msra.mxu0 %v4057_v8  ;;  %3328 = vmatmul.mubr.f32.gmra.mxu1 %v516_v10 }
 0x16f   :  { %3357 = vmatpush3.msra.mxu1 %v3955_v60  ;;  %3300 = vmatprep.subr.mxu0 %v4073_v26 }
 0x170   :  { %3302 = vmatprep.mubr.f32.mxu0 %v4145_v20  ;;  %3358 = vmatprep.subr.mxu1 %v3990_v19 }
 0x171   :  { %3368 = vmatprep.mubr.f32.mxu1 %v4142_v40  ;;  %3301 = vmatpush3.msra.mxu0 %v4073_v26 }
 0x172   :  { %3359 = vmatpush3.msra.mxu1 %v3990_v19  ;;  %3330 = vmatprep.subr.mxu0 %v3963_v62 }
 0x173   :  { %3360 = vmatprep.subr.mxu1 %v3994_v22  ;;  %3303 = vmatmul.mubr.f32.vlgmr.msra.gmra.mxu0 %v4153_v37 }
 0x174   :  { %3331 = vmatpush3.msra.mxu0 %v3963_v62  ;;  %3361 = vmatpush3.msra.mxu1 %v3994_v22 }
 0x175   :  { %3305 = vmatprep.mubr.f32.mxu0 %v505_v33  ;;  %3332 = vmatprep.subr.mxu0 %v4007_v34 }
 0x176   :  { %3362 = vmatprep.subr.mxu1 %v3996_v24  ;;  %3333 = vmatpush3.msra.mxu0 %v4007_v34 }
 0x177   :  { %3363 = vmatpush3.msra.mxu1 %v3996_v24  ;;  %3334 = vmatprep.subr.mxu0 %v4010_v35 }
 0x178   :  { %3364 = vmatprep.subr.mxu1 %v4015_v39  ;;  %3306 = vmatmul.mubr.f32.gmra.mxu0 %v515_v46 }
 0x179   :  { %3335 = vmatpush3.msra.mxu0 %v4010_v35  ;;  %3365 = vmatpush3.msra.mxu1 %v4015_v39 }
 0x17a   :  { %3336 = vmatprep.subr.mxu0 %v4038_v63  ;;  %3346 = vmatprep.mubr.f32.mxu0 %v4142_v40 }
 0x17b   :  { %3366 = vmatprep.subr.mxu1 %v4046_v0  ;;  %3337 = vmatpush3.msra.mxu0 %v4038_v63 }
 0x17c   :  { %3367 = vmatpush3.msra.mxu1 %v4046_v0  ;;  %3338 = vmatprep.subr.mxu0 %v4044_v30 }
 0x17d   :  { %3369 = vmatmul.mubr.f32.vlgmr.msra.gmra.mxu1 %v4149_v55  ;;  %3339 = vmatpush3.msra.mxu0 %v4044_v30 }
 0x17e   :  { %3371 = vmatprep.mubr.f32.mxu1 %v4172_v58  ;;  %3340 = vmatprep.subr.mxu0 %v4063_v31 }
 0x17f   :  { %3341 = vmatpush3.msra.mxu0 %v4063_v31 }
 0x180   :  { %3342 = vmatprep.subr.mxu0 %v4079_v59 }
 0x181   :  { %3372 = vmatmul.mubr.f32.gmra.mxu1 %v4184_v9  ;;  %3343 = vmatpush3.msra.mxu0 %v4079_v59 }
 0x182   :  { %3344 = vmatprep.subr.mxu0 %v4090_v12 }
 0x183   :  { %3345 = vmatpush3.msra.mxu0 %v4090_v12 }
 0x184   :  { %3347 = vmatmul.mubr.f32.vlgmr.msra.gmra.mxu0 %v4149_v55 }
 0x185   :  { %3349 = vmatprep.mubr.f32.mxu0 %v4172_v58 }
 0x188   :  { %3350 = vmatmul.mubr.f32.gmra.mxu0 %v4184_v9 }
 0x215   :  { %v3282_v26 = vpop.f32.mrf.mxu1 }
 0x217   :  { %v631_v41 = vpop.f32.mrf.mxu1 }
 0x21d   :  { %v3260_v54 = vpop.f32.mrf.mxu0 }
 0x21e   :  { %v638_v45 = vadd.f32 %v3282_v26, %v3260_v54 }
 0x21f   :  { %v490_v60 = vpop.f32.mrf.mxu0 }
 0x220   :  { %v632_v0 = vadd.f32 %v631_v41, %v490_v60 }
 0x225   :  { %v3285_v31 = vpop.f32.mrf.mxu1 }
 0x227   :  { %v643_v62 = vpop.f32.mrf.mxu1 }
 0x229   :  { %v3326_v22 = vpop.f32.mrf.mxu1 }
 0x22b   :  { %v839_v34 = vpop.f32.mrf.mxu1 }
 0x22d   :  { %v3263_v19 = vpop.f32.mrf.mxu0 }
 0x22e   :  { %v3329_v39 = vpop.f32.mrf.mxu1  ;;  %v650_v12 = vadd.f32 %v3285_v31, %v3263_v19 }
 0x22f   :  { %v510_v24 = vpop.f32.mrf.mxu0 }
 0x230   :  { %v855_v63 = vpop.f32.mrf.mxu1  ;;  %v644_v55 = vadd.f32 %v643_v62, %v510_v24 }
 0x233   :  { %v3304_v35 = vpop.f32.mrf.mxu0 }
 0x234   :  { %v745_v8 = vadd.f32 %v3304_v35, %v638_v45 }
 0x235   :  { %v737_v43 = vpop.f32.mrf.mxu0 }
 0x236   :  { %v738_v40 = vadd.f32 %v737_v43, %v632_v0  ;;  %v848_v27 = vadd.f32 %v3326_v22, %v745_v8  ;;  %v4269_v0 = vld [vmem:[#allocation10] sm:$0xff] }
 0x237   :  { %v1375_v1 = vrot.slane %v4269_v0, %v248_v17 }
 0x238   :  { %v3307_v30 = vpop.f32.mrf.mxu0  ;;  %v840_v16 = vadd.f32 %v839_v34, %v738_v40 }
 0x239   :  { %v759_v7 = vadd.f32 %v3307_v30, %v650_v12 }
 0x23a   :  { %v751_v20 = vpop.f32.mrf.mxu0 }
 0x23b   :  { %v752_v37 = vadd.f32 %v751_v20, %v644_v55  ;;  %v864_v14 = vadd.f32 %v3329_v39, %v759_v7  ;;  %v1279_v20 = vrot.slane %v4269_v0, %v200_v4  ;;  %v1226_v55 = vrot.slane %v4269_v0, %v168_v3 }
 0x23d   :  { %v3370_v59 = vpop.f32.mrf.mxu1  ;;  %v856_v5 = vadd.f32 %v855_v63, %v752_v37 }
 0x23f   :  { %v1055_v6 = vpop.f32.mrf.mxu1 }
 0x241   :  { %v3373_v38 = vpop.f32.mrf.mxu1 }
 0x243   :  { %v1067_v52 = vpop.f32.mrf.mxu1 }
 0x244   :  { %v3348_v48 = vpop.f32.mrf.mxu0 }
 0x245   :  { %v965_v47 = vadd.f32 %v3348_v48, %v848_v27 }
 0x246   :  { %v958_v49 = vpop.f32.mrf.mxu0 }
 0x247   :  { %v959_v50 = vadd.f32 %v958_v49, %v840_v16  ;;  %v4243_v32 = vadd.f32 %v3370_v59, %v965_v47  ;;  %v1127_v49 = vld [vmem:[%s5342_s3] sm:$0x1]  ;;  %s3770_s3 = smov 112  }
 0x248   :  { %v3351_v57 = vpop.f32.mrf.mxu0 }
 0x249   :  { %v4245_v23 = vadd.f32 %v1055_v6, %v959_v50  ;;  %v977_v11 = vadd.f32 %v3351_v57, %v864_v14  ;;  %v1099_v21 = vmul.f32 %v4243_v32, %v4243_v32 }
 0x24a   :  { %v970_v51 = vpop.f32.mrf.mxu0 }
 0x24b   :  { %v1098_v61 = vmul.f32 %v4245_v23, %v4245_v23  ;;  %v971_v13 = vadd.f32 %v970_v51, %v856_v5  ;;  %v1077_v42 = vadd.f32 %v4243_v32, %v4245_v23  ;;  %v4253_v58 = vadd.f32 %v3373_v38, %v977_v11  ;;  %v1131_v38 = vld [vmem:[%s5343_s4] sm:$0x1] }
 0x24d   :  { %v4255_v29 = vadd.f32 %v1067_v52, %v971_v13  ;;  %v1102_v56 = vadd.f32 %v1099_v21, %v1098_v61  ;;  %v1101_v9 = vmul.f32 %v4253_v58, %v4253_v58 }
 0x24f   :  { %v1078_v33 = vadd.f32 %v1077_v42, %v4255_v29  ;;  %v1100_v53 = vmul.f32 %v4255_v29, %v4255_v29 }
 0x251   :  { %v1079_v15 = vadd.f32 %v1078_v33, %v4253_v58  ;;  %v1103_v46 = vadd.f32 %v1102_v56, %v1100_v53 }
 0x253   :  { %v1080_v44 = vrot.slane %v1079_v15, 4  ;;  %v1104_v18 = vadd.f32 %v1103_v46, %v1101_v9 }
 0x255   :  { %v1081_v10 = vadd.f32 %v1080_v44, %v1079_v15  ;;  %v1105_v36 = vrot.slane %v1104_v18, 4  ;;  %v5423_v44 = vsub.s32 5, %v3867_v2 }
 0x257   :  { %v1082_v28 = vrot.slane %v1081_v10, 2  ;;  %v1106_v26 = vadd.f32 %v1105_v36, %v1104_v18  ;;  %v1455_v18 = vrot.slane %v4269_v0, %v5423_v44 }
 0x259   :  { %v1083_v41 = vadd.f32 %v1082_v28, %v1081_v10  ;;  %v1107_v54 = vrot.slane %v1106_v26, 2  ;;  %v5424_v10 = vsub.s32 7, %v3867_v2 }
 0x25b   :  { %v1084_v31 = vrot.slane %v1083_v41, 1  ;;  %v1108_v60 = vadd.f32 %v1107_v54, %v1106_v26  ;;  %v1578_v36 = vrot.slane %v4269_v0, %v5424_v10 }
 0x25d   :  { %v1085_v62 = vadd.f32 %v1084_v31, %v1083_v41  ;;  %v1109_v19 = vrot.slane %v1108_v60, 1 }
 0x25f   :  { %1086 = vrot.lane.b32.xlu0 %v1085_v62, %s3767_s13  ;;  %v1110_v22 = vadd.f32 %v1109_v19, %v1108_v60 }
 0x261   :  { %1111 = vrot.lane.b32.xlu1 %v1110_v22, %s3767_s13 }
 0x2d1   :  { %v1087_v24 = vpop.permute.xlu0 %1086 }
 0x2d2   :  { %v1088_v34 = vadd.f32 %v1087_v24, %v1085_v62 }
 0x2d3   :  { %v1112_v35 = vpop.permute.xlu1 %1111 }
 0x2d4   :  { %v1113_v39 = vadd.f32 %v1112_v35, %v1110_v22  ;;  %1089 = vrot.lane.b32.xlu0 %v1088_v34, %s3768_s16 }
 0x2d6   :  { %1114 = vrot.lane.b32.xlu1 %v1113_v39, %s3768_s16 }
 0x346   :  { %v1090_v43 = vpop.permute.xlu0 %1089 }
 0x347   :  { %v1091_v45 = vadd.f32 %v1090_v43, %v1088_v34 }
 0x348   :  { %v1115_v63 = vpop.permute.xlu1 %1114 }
 0x349   :  { %v1116_v30 = vadd.f32 %v1115_v63, %v1113_v39  ;;  %1092 = vrot.lane.b32.xlu0 %v1091_v45, %s3769_s17 }
 0x34b   :  { %1117 = vrot.lane.b32.xlu1 %v1116_v30, %s3769_s17 }
 0x3bb   :  { %v1093_v8 = vpop.permute.xlu0 %1092 }
 0x3bc   :  { %v1094_v59 = vadd.f32 %v1093_v8, %v1091_v45 }
 0x3bd   :  { %v1118_v12 = vpop.permute.xlu1 %1117 }
 0x3be   :  { %1095 = vrot.lane.b32.xlu0 %v1094_v59, %s3759_s15  ;;  %v1119_v40 = vadd.f32 %v1118_v12, %v1116_v30 }
 0x3c0   :  { %1120 = vrot.lane.b32.xlu1 %v1119_v40, %s3759_s15 }
 0x3c2   :  { %1281 = vrot.lane.b32.xlu0 %v1279_v20, %s3769_s17 }
 0x3c4   :  { %1228 = vrot.lane.b32.xlu1 %v1226_v55, %s3759_s15 }
 0x430   :  { %v1096_v4 = vpop.permute.xlu0 %1095 }
 0x431   :  { %v1097_v7 = vadd.f32 %v1096_v4, %v1094_v59 }
 0x432   :  { %v1121_v3 = vpop.permute.xlu1 %1120 }
 0x433   :  { %v1123_v27 = vmul.f32 0.001953125, %v1097_v7  ;;  %v1122_v6 = vadd.f32 %v1121_v3, %v1119_v40 }
 0x434   :  { %v4324_v54 = vpop.permute.xlu0 %1281 }
 0x435   :  { %v1125_v48 = vmul.f32 %v1123_v27, %v1123_v27  ;;  %v1124_v37 = vmul.f32 0.001953125, %v1122_v6 }
 0x436   :  { %v4326_v31 = vpop.permute.xlu1 %1228 }
 0x437   :  { %v1126_v47 = vsub.f32 %v1124_v37, %v1125_v48 }
 0x439   :  { %v1128_v16 = vadd.f32 1e-05, %v1126_v47 }
 0x43b   :  { %3623 = vrsqrt.f32 %v1128_v16 }
 0x448   :  { %v3624_v50 = vpop.eup %3623 }
 0x449   :  { %v1130_v14 = vmul.f32 %v3624_v50, %v1127_v49 }
 0x44b   :  { %v1132_v57 = vmul.f32 %v1130_v14, %v1123_v27  ;;  %v1138_v11 = vrot.slane %v1130_v14, %v3893_v25 }
 0x44d   :  { %v1133_v5 = vsub.f32 %v1131_v38, %v1132_v57  ;;  %v1140_v51 = vmul.f32 %v1138_v11, %v4245_v23  ;;  %v1141_v13 = vmul.f32 %v1138_v11, %v4243_v32  ;;  %v1142_v23 = vmul.f32 %v1138_v11, %v4255_v29 }
 0x44e   :  { %v1143_v32 = vmul.f32 %v1138_v11, %v4253_v58  ;;  %v3049_v58 = vld [vmem:[#allocation10 + $0x8] ss:$0 sm:$0xff] }
 0x44f   :  { %v1148_v61 = vrot.slane %v1133_v5, %v3893_v25 }
 0x451   :  { %v1150_v52 = vadd.f32 %v1148_v61, %v1140_v51  ;;  %v1151_v21 = vadd.f32 %v1148_v61, %v1141_v13  ;;  %v1152_v15 = vadd.f32 %v1148_v61, %v1142_v23  ;;  %v1153_v46 = vadd.f32 %v1148_v61, %v1143_v32 }
 0x453   :  { %v1154_v42 = vmax.f32 %v1150_v52, 0.0  ;;  %v1155_v56 = vmax.f32 %v1151_v21, 0.0  ;;  %v1156_v28 = vmax.f32 %v1152_v15, 0.0  ;;  %v1157_v17 = vmax.f32 %v1153_v46, 0.0 }
 0x455   :  { %v1163_v33 = vrot.slane %v1154_v42, 7  ;;  %v1164_v53 = vrot.slane %v1155_v56, 7  ;;  %v1166_v29 = vrot.slane %v1156_v28, 7  ;;  %v1167_v26 = vrot.slane %v1157_v17, 7  ;;  %v1750_v17 = vld [vmem:[#allocation12 + $0x78] sm:$0xff] }
 0x457   :  { %1169 = vrot.lane.b32.xlu0 %v1163_v33, %s3759_s15  ;;  %v1165_v9 = vsel %vm1162_vm6, %v1163_v33, %v1164_v53  ;;  %v1168_v41 = vsel %vm1162_vm6, %v1166_v29, %v1167_v26 }
 0x458   :  { %1171 = vrot.lane.b32.xlu1 %v1165_v9, %s3759_s15 }
 0x45b   :  { %1173 = vrot.lane.b32.xlu0 %v1164_v53, %s3759_s15 }
 0x45c   :  { %1377 = vrot.lane.b32.xlu1 %v1375_v1, %s3759_s15 }
 0x45f   :  { %1457 = vrot.lane.b32.xlu0 %v1455_v18, %s3769_s17 }
 0x460   :  { %1580 = vrot.lane.b32.xlu1 %v1578_v36, %s3759_s15 }
 0x463   :  { %1660 = vrot.lane.b32.xlu0 %v3049_v58, %s3769_s17 }
 0x464   :  { %1175 = vrot.lane.b32.xlu1 %v1166_v29, %s3759_s15  ;;  %v1749_v29 = vld [vmem:[#allocation12 + $0x70] sm:$0xff] }
 0x467   :  { %1177 = vrot.lane.b32.xlu0 %v1168_v41, %s3759_s15 }
 0x468   :  { %1179 = vrot.lane.b32.xlu1 %v1167_v26, %s3759_s15  ;;  %v1748_v26 = vld [vmem:[#allocation12 + $0x68] sm:$0xff] }
 0x4c9   :  { %v1170_v60 = vpop.permute.xlu0 %1169 }
 0x4ca   :  { %1188 = vst.msk [vmem:[#allocation3] sm:$0xfe] %vm1187_vm7, %v1170_v60  ;;  %v1172_v62 = vpop.permute.xlu1 %1171 }
 0x4cb   :  { %1190 = vst.msk [vmem:[#allocation3 + $0x8] sm:$0xfe] %vm1189_vm8, %v1170_v60 }
 0x4cc   :  { %1192 = vst.msk [vmem:[#allocation3 + $0x10] sm:$0xff] %vm1191_vm9, %v1172_v62 }
 0x4cd   :  { %1194 = vst.msk [vmem:[#allocation3 + $0x18] sm:$0xff] %vm1193_vm10, %v1172_v62  ;;  %v1174_v19 = vpop.permute.xlu0 %1173 }
 0x4ce   :  { %1196 = vst.msk [vmem:[#allocation3 + $0x20] sm:$0x1] %vm1195_vm11, %v1174_v19  ;;  %v4334_v22 = vpop.permute.xlu1 %1377 }
 0x4cf   :  { %1198 = vst.msk [vmem:[#allocation3 + $0x28] sm:$0x1] %vm1197_vm12, %v1174_v19 }
 0x4d1   :  { %v4336_v24 = vpop.permute.xlu0 %1457  ;;  %v4338_v35 = vld [vmem:[#allocation3] sm:$0xff] }
 0x4d2   :  { %v1219_v34 = vld [vmem:[#allocation3 + $0x8] sm:$0xff]  ;;  %v4340_v39 = vpop.permute.xlu1 %1580  ;;  %v1231_v45 = vmul.f32 %v4326_v31, %v4338_v35  ;;  %v1284_v59 = vmul.f32 %v4324_v54, %v4338_v35  ;;  %v4386_v14 = vld [vmem:[#allocation3] sm:$0xfe] }
 0x4d3   :  { %v1232_v43 = vmul.f32 %v4326_v31, %v1219_v34  ;;  %v1285_v8 = vmul.f32 %v4324_v54, %v1219_v34  ;;  %v4372_v48 = vld [vmem:[#allocation3 + $0x10] sm:$0xff]  ;;  %v1368_v16 = vld [vmem:[#allocation3 + $0x8] sm:$0xfe]  ;;  %v1380_v61 = vmul.f32 %v4334_v22, %v4386_v14  ;;  %v4417_v1 = vmul.f32 %v4336_v24, %v4386_v14 }
 0x4d4   :  { %1247 = vrot.lane.b32.xlu0 %v1231_v45, %s3766_s12  ;;  %v4370_v6 = vld [vmem:[#allocation3 + $0x18] sm:$0xff]  ;;  %v1233_v47 = vmul.f32 %v4326_v31, %v4372_v48  ;;  %v1286_v50 = vmul.f32 %v4324_v54, %v4372_v48  ;;  %v1381_v11 = vmul.f32 %v4334_v22, %v1368_v16  ;;  %v1382_v13 = vmul.f32 %v4334_v22, %v4372_v48  ;;  %v4438_v34 = vld [vmem:[#allocation3 + $0x8] sm:$0xfc] }
 0x4d5   :  { %1249 = vrot.lane.b32.xlu1 %v1232_v43, %s3766_s12  ;;  %v4347_v63 = vpop.permute.xlu0 %1660  ;;  %v1234_v37 = vmul.f32 %v4326_v31, %v4370_v6  ;;  %v1287_v49 = vmul.f32 %v4324_v54, %v4370_v6  ;;  %v1383_v51 = vmul.f32 %v4334_v22, %v4370_v6  ;;  %v4405_v42 = vld [vmem:[#allocation3 + $0x20] sm:$0x1]  ;;  %v1461_v56 = vmul.f32 %v4336_v24, %v1368_v16  ;;  %v1746_v45 = vld [vmem:[#allocation12 + $0x58] sm:$0xff] }
 0x4d6   :  { %v1176_v30 = vpop.permute.xlu1 %1175  ;;  %v1369_v5 = vld [vmem:[#allocation3 + $0x28] sm:$0x1]  ;;  %v4410_v33 = vmul.f32 %v4336_v24, %v4370_v6  ;;  %v1407_v9 = vrot.slane %v1381_v11, 1  ;;  %v1404_v32 = vrot.slane %v1380_v61, 1  ;;  %v1405_v15 = vrot.slane %v1382_v13, 1 }
 0x4d7   :  { %1199 = vst.msk [vmem:[#allocation3 + $0x30] sm:$0xfe] %vm1187_vm7, %v1176_v30  ;;  %v1385_v53 = vmul.f32 %v4334_v22, %v1369_v5  ;;  %v1408_v23 = vrot.slane %v1383_v51, 1  ;;  %v1384_v46 = vmul.f32 %v4334_v22, %v4405_v42  ;;  %v1487_v10 = vrot.slane %v1461_v56, 1  ;;  %v1744_v61 = vld [vmem:[#allocation12 + $0x48] sm:$0xff] }
 0x4d8   :  { %1200 = vst.msk [vmem:[#allocation3 + $0x38] sm:$0xfe] %vm1189_vm8, %v1176_v30  ;;  %1300 = vrot.lane.b32.xlu0 %v1284_v59, %s3770_s3  ;;  %v1488_v36 = vrot.slane %v4410_v33, 1  ;;  %v4430_v58 = vmul.f32 %v4336_v24, %v4372_v48  ;;  %v1406_v60 = vsel %vm1349_vm13, %v1404_v32, %v1405_v15  ;;  %v4440_v43 = vand.u32 4294901760, %v1750_v17  ;;  %v1743_v32 = vld [vmem:[#allocation12 + $0x40] sm:$0xff] }
 0x4d9   :  { %1302 = vrot.lane.b32.xlu1 %v1285_v8, %s3770_s3  ;;  %v1178_v12 = vpop.permute.xlu0 %1177  ;;  %v1412_v28 = vrot.slane %v1385_v53, 1  ;;  %v1409_v41 = vsel %vm1349_vm13, %v1407_v9, %v1408_v23  ;;  %v1410_v62 = vrot.slane %v1384_v46, 1  ;;  %v1465_v8 = vmul.f32 %v4336_v24, %v1369_v5  ;;  %v4507_v46 = vld [vmem:[#allocation3 + $0x28] sm:$0x3] }
 0x4da   :  { %1201 = vst.msk [vmem:[#allocation3 + $0x40] sm:$0xff] %vm1191_vm9, %v1178_v12  ;;  %v1180_v40 = vpop.permute.xlu1 %1179  ;;  %v1489_v19 = vsel %vm1349_vm13, %v1487_v10, %v1488_v36  ;;  %v4444_v59 = vand.u32 4294901760, %v1749_v29  ;;  %3374 = vmatprep.subr.mxu0 %v4440_v43  ;;  %v4497_v9 = vmul.f32 %v4340_v39, %v4370_v6  ;;  %v4515_v10 = vand.u32 4294901760, %v1744_v61 }
 0x4db   :  { %1202 = vst.msk [vmem:[#allocation3 + $0x48] sm:$0xff] %vm1193_vm10, %v1178_v12  ;;  %v1413_v30 = vsel %vm1349_vm13, %v1408_v23, %v1412_v28  ;;  %v4446_v12 = vand.u32 4294901760, %v1748_v26  ;;  %3375 = vmatpush3.msra.mxu0 %v4440_v43  ;;  %v1492_v13 = vrot.slane %v1465_v8, 1 }
 0x4dc   :  { %1203 = vst.msk [vmem:[#allocation3 + $0x50] sm:$0x1] %vm1195_vm11, %v1180_v40  ;;  %3376 = vmatprep.subr.mxu0 %v4444_v59 }
 0x4dd   :  { %1204 = vst.msk [vmem:[#allocation3 + $0x58] sm:$0x1] %vm1197_vm12, %v1180_v40  ;;  %v1745_v40 = vld [vmem:[#allocation12 + $0x50] sm:$0xff]  ;;  %v4468_v16 = vsub.f32 %v1748_v26, %v4446_v12  ;;  %3377 = vmatpush3.msra.mxu0 %v4444_v59 }
 0x4de   :  { %v4360_v55 = vld [vmem:[#allocation3 + $0x30] sm:$0xff]  ;;  %v4481_v51 = vand.u32 4294901760, %v1745_v40  ;;  %3378 = vmatprep.subr.mxu0 %v4446_v12 }
 0x4df   :  { %v1221_v20 = vld [vmem:[#allocation3 + $0x38] sm:$0xff]  ;;  %v1235_v7 = vmul.f32 %v4326_v31, %v4360_v55  ;;  %v1288_v27 = vmul.f32 %v4324_v54, %v4360_v55  ;;  %3379 = vmatpush3.msra.mxu0 %v4446_v12 }
 0x4e0   :  { %v1236_v4 = vmul.f32 %v4326_v31, %v1221_v20  ;;  %v1289_v3 = vmul.f32 %v4324_v54, %v1221_v20  ;;  %v1485_v20 = vrot.slane %v4430_v58, 1  ;;  %v4523_v26 = vsub.f32 %v1745_v40, %v4481_v51 }
 0x4e1   :  { %1255 = vrot.lane.b32.xlu0 %v1235_v7, %s3766_s12  ;;  %v4390_v57 = vld [vmem:[#allocation3 + $0x40] sm:$0xff]  ;;  %v4454_v7 = vsub.f32 %v1750_v17, %v4440_v43  ;;  %v1588_v40 = vmul.f32 %v4340_v39, %v4507_v46 }
 0x4e2   :  { %1257 = vrot.lane.b32.xlu1 %v1236_v4, %s3766_s12  ;;  %v4388_v38 = vld [vmem:[#allocation3 + $0x48] sm:$0xff]  ;;  %v1237_v21 = vmul.f32 %v4326_v31, %v4390_v57  ;;  %v1290_v18 = vmul.f32 %v4324_v54, %v4390_v57  ;;  %v1464_v4 = vmul.f32 %v4336_v24, %v4405_v42  ;;  %v4518_v17 = vld [vmem:[#allocation3 + $0x20] sm:$0x3]  ;;  %5430 = vst [vmem:[#allocation24_spill] sm:$0xff] %v4523_v26 }
 0x4e3   :  { %v1238_v52 = vmul.f32 %v4326_v31, %v4388_v38  ;;  %v1291_v44 = vmul.f32 %v4324_v54, %v4388_v38  ;;  %v1484_v31 = vrot.slane %v4417_v1, 1  ;;  %v1747_v54 = vld [vmem:[#allocation12 + $0x60] sm:$0xff]  ;;  %v4475_v11 = vand.u32 4294901760, %v4454_v7 }
 0x4e4   :  { %v1490_v53 = vrot.slane %v1464_v4, 1  ;;  %v1587_v33 = vmul.f32 %v4340_v39, %v4518_v17 }
 0x4e5   :  { %1308 = vrot.lane.b32.xlu0 %v1288_v27, %s3770_s3  ;;  %v4460_v27 = vmul.f32 %v4340_v39, %v4438_v34  ;;  %5425 = vst [vmem:[#allocation19_spill] sm:$0xff] %v4475_v11  ;;  %v1876_v23 = vsub.f32 %v4454_v7, %v4475_v11  ;;  %v1486_v28 = vsel %vm1349_vm13, %v1484_v31, %v1485_v20  ;;  %v4531_v31 = vand.u32 4294901760, %v1743_v32 }
 0x4e6   :  { %1310 = vrot.lane.b32.xlu1 %v1289_v3, %s3770_s3  ;;  %v4456_v3 = vand.u32 4294901760, %v1747_v54  ;;  %v1491_v4 = vsel %vm1349_vm13, %v1485_v20, %v1490_v53  ;;  %v1741_v53 = vld [vmem:[#allocation12 + $0x30] sm:$0xff] }
 0x4e7   :  { %v1877_v58 = vand.u32 4294901760, %v1876_v23 }
 0x4e8   :  { %v4478_v5 = vsub.f32 %v1747_v54, %v4456_v3  ;;  %3380 = vmatprep.subr.mxu0 %v4456_v3 }
 0x4e9   :  { %1251 = vrot.lane.b32.xlu0 %v1233_v47, %s3766_s12  ;;  %v4465_v47 = vsub.f32 %v1749_v29, %v4444_v59  ;;  %3412 = vmatprep.subr.mxu1 %v1877_v58 }
 0x4ea   :  { %1253 = vrot.lane.b32.xlu1 %v1234_v37, %s3766_s12  ;;  %v4462_v37 = vld [vmem:[#allocation3] sm:$0xfc]  ;;  %3413 = vmatpush3.msra.mxu1 %v1877_v58  ;;  %v1740_v58 = vld [vmem:[#allocation12 + $0x28] sm:$0xff] }
 0x4eb   :  { %v1583_v1 = vmul.f32 %v4340_v39, %v4462_v37  ;;  %3381 = vmatpush3.msra.mxu0 %v4456_v3 }
 0x4ed   :  { %1304 = vrot.lane.b32.xlu0 %v1286_v50, %s3770_s3  ;;  %v1411_v50 = vsel %vm1349_vm13, %v1405_v15, %v1410_v62  ;;  %v4505_v15 = vmul.f32 %v4340_v39, %v4372_v48  ;;  %v1742_v62 = vld [vmem:[#allocation12 + $0x38] sm:$0xff]  ;;  %v1607_v8 = vrot.slane %v1583_v1, 2  ;;  %v4562_v1 = vsub.f32 %v1743_v32, %v4531_v31 }
 0x4ee   :  { %1306 = vrot.lane.b32.xlu1 %v1287_v49, %s3770_s3  ;;  %v4471_v49 = vand.u32 4294901760, %v1746_v45  ;;  %v4555_v20 = vand.u32 4294901760, %v1742_v62  ;;  %v4576_v32 = vmul.f32 %v4347_v63, %v4372_v48 }
 0x4ef   :  { %5435 = vst [vmem:[#allocation29_spill] sm:$0xff] %v4562_v1 }
 0x4f0   :  { %v4490_v56 = vsub.f32 %v1746_v45, %v4471_v49  ;;  %v1493_v45 = vsel %vm1349_vm13, %v1488_v36, %v1492_v13  ;;  %v4552_v13 = vand.u32 4294901760, %v4523_v26  ;;  %5434 = vst [vmem:[#allocation28_spill] sm:$0xff] %v4555_v20  ;;  %3382 = vmatprep.subr.mxu0 %v4471_v49 }
 0x4f1   :  { %1259 = vrot.lane.b32.xlu0 %v1237_v21, %s3766_s12  ;;  %v4487_v21 = vand.u32 4294901760, %v4468_v16  ;;  %3383 = vmatpush3.msra.mxu0 %v4471_v49 }
 0x4f2   :  { %1261 = vrot.lane.b32.xlu1 %v1238_v52, %s3766_s12  ;;  %v4484_v52 = vand.u32 4294901760, %v4465_v47  ;;  %5428 = vst [vmem:[#allocation22_spill] sm:$0xff] %v4490_v56  ;;  %5433 = vst [vmem:[#allocation27_spill] sm:$0xff] %v4552_v13  ;;  %3384 = vmatprep.subr.mxu0 %v4481_v51 }
 0x4f3   :  { %5427 = vst [vmem:[#allocation21_spill] sm:$0xff] %v4487_v21  ;;  %v1890_v29 = vsub.f32 %v4468_v16, %v4487_v21  ;;  %3385 = vmatpush3.msra.mxu0 %v4481_v51  ;;  %v4606_v21 = vld [vmem:[#allocation3 + $0x38] sm:$0xfe] }
 0x4f4   :  { %5426 = vst [vmem:[#allocation20_spill] sm:$0xff] %v4484_v52  ;;  %3386 = vmatprep.subr.mxu0 %v4515_v10 }
 0x4f5   :  { %1312 = vrot.lane.b32.xlu0 %v1290_v18, %s3770_s3  ;;  %v4512_v18 = vand.u32 4294901760, %v4478_v5  ;;  %v1891_v36 = vand.u32 4294901760, %v1890_v29  ;;  %3387 = vmatpush3.msra.mxu0 %v4515_v10 }
 0x4f6   :  { %1314 = vrot.lane.b32.xlu1 %v1291_v44, %s3770_s3  ;;  %v1883_v44 = vsub.f32 %v4465_v47, %v4484_v52  ;;  %3388 = vmatprep.subr.mxu0 %v4531_v31 }
 0x4f7   :  { %5429 = vst [vmem:[#allocation23_spill] sm:$0xff] %v4512_v18  ;;  %3389 = vmatpush3.msra.mxu0 %v4531_v31 }
 0x4f8   :  { %v1884_v54 = vand.u32 4294901760, %v1883_v44  ;;  %v1615_v44 = vrot.slane %v1588_v40, 2  ;;  %v1911_v40 = vsub.f32 %v4523_v26, %v4552_v13  ;;  %3390 = vmatprep.subr.mxu0 %v4555_v20 }
 0x4f9   :  { %1424 = vrot.lane.b32.xlu0 %v1406_v60, %s3766_s12  ;;  %v4528_v60 = vand.u32 4294901760, %v4490_v56  ;;  %3391 = vmatpush3.msra.mxu0 %v4555_v20 }
 0x4fa   :  { %1426 = vrot.lane.b32.xlu1 %v1409_v41, %s3766_s12  ;;  %v1610_v41 = vrot.slane %v4460_v27, 2  ;;  %v5357_v27 = vrot.slane %v4505_v15, 2  ;;  %3414 = vmatprep.subr.mxu1 %v1884_v54 }
 0x4fb   :  { %5431 = vst [vmem:[#allocation25_spill] sm:$0xff] %v4528_v60  ;;  %3415 = vmatpush3.msra.mxu1 %v1884_v54  ;;  %v1613_v54 = vrot.slane %v1587_v33, 2 }
 0x4fc   :  { %3416 = vmatprep.subr.mxu1 %v1891_v36 }
 0x4fd   :  { %1428 = vrot.lane.b32.xlu0 %v1411_v50, %s3766_s12  ;;  %v4546_v50 = vsub.f32 %v1744_v61, %v4515_v10  ;;  %v1904_v61 = vsub.f32 %v4490_v56, %v4528_v60  ;;  %3417 = vmatpush3.msra.mxu1 %v1891_v36  ;;  %v4594_v60 = vand.u32 4294901760, %v4562_v1  ;;  %v1688_v36 = vrot.slane %v4576_v32, 2 }
 0x4fe   :  { %1430 = vrot.lane.b32.xlu1 %v1413_v30, %s3766_s12  ;;  %v1611_v30 = vrot.slane %v4497_v9, 2  ;;  %v1664_v9 = vmul.f32 %v4347_v63, %v4438_v34  ;;  %v1663_v34 = vmul.f32 %v4347_v63, %v4462_v37 }
 0x4ff   :  { %5432 = vst [vmem:[#allocation26_spill] sm:$0xff] %v4546_v50  ;;  %5438 = vst [vmem:[#allocation32_spill] sm:$0xff] %v4594_v60  ;;  %v1925_v32 = vsub.f32 %v4562_v1, %v4594_v60  ;;  %v4642_v60 = vld [vmem:[#allocation3 + $0x58] sm:$0x1] }
 0x500   :  { %v1612_v23 = vsel %vm1552_vm14, %v1610_v41, %v1611_v30  ;;  %v4582_v41 = vand.u32 4294901760, %v1741_v53  ;;  %v1687_v33 = vrot.slane %v1663_v34, 2  ;;  %v5441_v34 = vrot.slane %v4505_v15, 2 }
 0x501   :  { %1504 = vrot.lane.b32.xlu0 %v1486_v28, %s3770_s3  ;;  %v4570_v28 = vmul.f32 %v4347_v63, %v4370_v6  ;;  %v1609_v6 = vsel %vm1552_vm14, %v1607_v8, %v5357_v27  ;;  %v1739_v8 = vld [vmem:[#allocation12 + $0x20] sm:$0xff]  ;;  %v1690_v27 = vrot.slane %v1664_v9, 2  ;;  %v1912_v9 = vand.u32 4294901760, %v1911_v40 }
 0x502   :  { %1506 = vrot.lane.b32.xlu1 %v1489_v19, %s3770_s3  ;;  %v1897_v19 = vsub.f32 %v4478_v5, %v4512_v18  ;;  %v4597_v18 = vand.u32 4294901760, %v1740_v58  ;;  %v1387_v15 = vmul.f32 %v4334_v22, %v4606_v21  ;;  %v4638_v40 = vmul.f32 %v4334_v22, %v4388_v38  ;;  %3392 = vmatprep.subr.mxu0 %v4582_v41 }
 0x503   :  { %v1691_v13 = vrot.slane %v4570_v28, 2  ;;  %v1738_v28 = vld [vmem:[#allocation12 + $0x18] sm:$0xff]  ;;  %3393 = vmatpush3.msra.mxu0 %v4582_v41 }
 0x504   :  { %v1898_v29 = vand.u32 4294901760, %v1897_v19  ;;  %v1905_v19 = vand.u32 4294901760, %v1904_v61  ;;  %v1668_v61 = vmul.f32 %v4347_v63, %v4507_v46  ;;  %v4620_v46 = vand.u32 4294901760, %v1739_v8  ;;  %3394 = vmatprep.subr.mxu0 %v4597_v18 }
 0x505   :  { %1508 = vrot.lane.b32.xlu0 %v1491_v4, %s3770_s3  ;;  %v4590_v4 = vsub.f32 %v1742_v62, %v4555_v20  ;;  %v1616_v62 = vsel %vm1552_vm14, %v1611_v30, %v1615_v44  ;;  %v1667_v30 = vmul.f32 %v4347_v63, %v4518_v17  ;;  %3395 = vmatpush3.msra.mxu0 %v4597_v18 }
 0x506   :  { %1510 = vrot.lane.b32.xlu1 %v1493_v45, %s3770_s3  ;;  %v4579_v45 = vand.u32 4294901760, %v4546_v50  ;;  %3418 = vmatprep.subr.mxu1 %v1898_v29 }
 0x507   :  { %5437 = vst [vmem:[#allocation31_spill] sm:$0xff] %v4590_v4  ;;  %3419 = vmatpush3.msra.mxu1 %v1898_v29  ;;  %v4617_v44 = vand.u32 4294901760, %v4590_v4  ;;  %v1692_v29 = vsel %vm1552_vm14, %v1690_v27, %v1691_v13  ;;  %v4648_v27 = vand.u32 4294901760, %v1738_v28  ;;  %v1693_v11 = vrot.slane %v1667_v30, 2  ;;  %3396 = vmatprep.subr.mxu0 %v4620_v46 }
 0x508   :  { %5436 = vst [vmem:[#allocation30_spill] sm:$0xff] %v4579_v45  ;;  %v1918_v52 = vsub.f32 %v4546_v50, %v4579_v45  ;;  %3420 = vmatprep.subr.mxu1 %v1905_v19  ;;  %v1926_v50 = vand.u32 4294901760, %v1925_v32  ;;  %3397 = vmatpush3.msra.mxu0 %v4620_v46 }
 0x509   :  { %1627 = vrot.lane.b32.xlu0 %v1609_v6, %s3766_s12  ;;  %5440 = vst [vmem:[#allocation34_spill] sm:$0xff] %v4617_v44  ;;  %v4628_v6 = vsub.f32 %v1740_v58, %v4597_v18  ;;  %v1695_v58 = vrot.slane %v1668_v61, 2  ;;  %3421 = vmatpush3.msra.mxu1 %v1905_v19  ;;  %5444 = vst [vmem:[#allocation37_spill] sm:$0xff] %v4648_v27  ;;  %v1932_v1 = vsub.f32 %v4590_v4, %v4617_v44  ;;  %v4661_v19 = vld [vmem:[#allocation3 + $0x50] sm:$0x1] }
 0x50a   :  { %1629 = vrot.lane.b32.xlu1 %v1612_v23, %s3766_s12  ;;  %v4611_v23 = vsub.f32 %v1741_v53, %v4582_v41  ;;  %v1614_v53 = vsel %vm1552_vm14, %v5441_v34, %v1613_v54  ;;  %v4640_v54 = vld [vmem:[#allocation3 + $0x30] sm:$0xfe]  ;;  %v1919_v45 = vand.u32 4294901760, %v1918_v52  ;;  %3422 = vmatprep.subr.mxu1 %v1912_v9  ;;  %v4654_v61 = vsub.f32 %v1739_v8, %v4620_v46 }
 0x50b   :  { %5442 = vst [vmem:[#allocation35_spill] sm:$0xff] %v4628_v6  ;;  %v1737_v34 = vld [vmem:[#allocation12 + $0x10] sm:$0xff]  ;;  %v4659_v52 = vmul.f32 %v4334_v22, %v4390_v57  ;;  %3423 = vmatpush3.msra.mxu1 %v1912_v9  ;;  %v1418_v8 = vrot.slane %v4638_v40, 1  ;;  %v1386_v44 = vmul.f32 %v4334_v22, %v4640_v54  ;;  %v1391_v9 = vmul.f32 %v4334_v22, %v4642_v60 }
 0x50c   :  { %5439 = vst [vmem:[#allocation33_spill] sm:$0xff] %v4611_v23  ;;  %5445 = vst [vmem:[#allocation38_spill] sm:$0xff] %v4654_v61  ;;  %v4667_v30 = vand.u32 4294901760, %v1737_v34  ;;  %v1696_v32 = vsel %vm1552_vm14, %v1691_v13, %v1695_v58  ;;  %v1417_v4 = vrot.slane %v1387_v15, 1  ;;  %3424 = vmatprep.subr.mxu1 %v1919_v45  ;;  %v4680_v20 = vsub.f32 %v1738_v28, %v4648_v27  ;;  %v1736_v13 = vld [vmem:[#allocation12 + $0x8] sm:$0xff]  ;;  %v1735_v15 = vld [vmem:[#allocation12] sm:$0xff] }
 0x50d   :  { %1631 = vrot.lane.b32.xlu0 %v1614_v53, %s3766_s12  ;;  %v1689_v53 = vsel %vm1552_vm14, %v1687_v33, %v1688_v36  ;;  %v4664_v33 = vand.u32 4294901760, %v4628_v6  ;;  %v1390_v40 = vmul.f32 %v4334_v22, %v4661_v19  ;;  %3425 = vmatpush3.msra.mxu1 %v1919_v45  ;;  %v4687_v56 = vand.u32 4294901760, %v4654_v61 }
 0x50e   :  { %1633 = vrot.lane.b32.xlu1 %v1616_v62, %s3766_s12  ;;  %v4645_v62 = vand.u32 4294901760, %v4611_v23  ;;  %5447 = vst [vmem:[#allocation40_spill] sm:$0xff] %v4667_v30  ;;  %5448 = vst [vmem:[#allocation41_spill] sm:$0xff] %v4680_v20  ;;  %v1415_v58 = vrot.slane %v4659_v52, 1  ;;  %3426 = vmatprep.subr.mxu1 %v1926_v50  ;;  %v4697_v22 = vand.u32 4294901760, %v1736_v13  ;;  %v1414_v45 = vrot.slane %v1386_v44, 1 }
 0x50f   :  { %5446 = vst [vmem:[#allocation39_spill] sm:$0xff] %v4664_v33  ;;  %5449 = vst [vmem:[#allocation42_spill] sm:$0xff] %v4687_v56  ;;  %v1946_v28 = vsub.f32 %v4628_v6, %v4664_v33  ;;  %3427 = vmatpush3.msra.mxu1 %v1926_v50  ;;  %v1420_v33 = vrot.slane %v1390_v40, 1  ;;  %v4710_v6 = vmul.f32 %v4336_v24, %v4388_v38  ;;  %3398 = vmatprep.subr.mxu0 %v4648_v27 }
 0x510   :  { %5443 = vst [vmem:[#allocation36_spill] sm:$0xff] %v4645_v62  ;;  %v1939_v26 = vsub.f32 %v4611_v23, %v4645_v62  ;;  %5451 = vst [vmem:[#allocation44_spill] sm:$0xff] %v4697_v22  ;;  %v4703_v62 = vand.u32 4294901760, %v4680_v20  ;;  %v4715_v44 = vsub.f32 %v1736_v13, %v4697_v22  ;;  %v4721_v50 = vmul.f32 %v4336_v24, %v4390_v57 }
 0x511   :  { %1707 = vrot.lane.b32.xlu0 %v1689_v53, %s3770_s3  ;;  %v1933_v53 = vand.u32 4294901760, %v1932_v1  ;;  %v1419_v1 = vsel %vm1349_vm13, %v1417_v4, %v1418_v8  ;;  %v1953_v4 = vsub.f32 %v4654_v61, %v4687_v56  ;;  %v1466_v40 = vmul.f32 %v4336_v24, %v4640_v54  ;;  %3399 = vmatpush3.msra.mxu0 %v4648_v27  ;;  %v3627_v61 = vld [vmem:[#allocation10] sm:$0xff] }
 0x512   :  { %1709 = vrot.lane.b32.xlu1 %v1692_v29, %s3770_s3  ;;  %v1694_v29 = vsel %vm1552_vm14, %v1688_v36, %v1693_v11  ;;  %v4694_v11 = vsub.f32 %v1737_v34, %v4667_v30  ;;  %v1422_v36 = vrot.slane %v1391_v9, 1  ;;  %v1940_v52 = vand.u32 4294901760, %v1939_v26  ;;  %5452 = vst [vmem:[#allocation45_spill] sm:$0xff] %v4703_v62  ;;  %5454 = vst [vmem:[#allocation47_spill] sm:$0xff] %v4715_v44 }
 0x513   :  { %v4706_v34 = vand.u32 4294901760, %v1735_v15  ;;  %3428 = vmatprep.subr.mxu1 %v1933_v53  ;;  %v1416_v26 = vsel %vm1349_vm13, %v1414_v45, %v1415_v58  ;;  %v1947_v9 = vand.u32 4294901760, %v1946_v28  ;;  %v1471_v45 = vmul.f32 %v4336_v24, %v4642_v60  ;;  %3400 = vmatprep.subr.mxu0 %v4667_v30 }
 0x514   :  { %5450 = vst [vmem:[#allocation43_spill] sm:$0xff] %v4694_v11  ;;  %3429 = vmatpush3.msra.mxu1 %v1933_v53  ;;  %v1423_v13 = vsel %vm1349_vm13, %v1418_v8, %v1422_v36  ;;  %v1960_v53 = vsub.f32 %v4680_v20, %v4703_v62  ;;  %v1421_v8 = vsel %vm1349_vm13, %v1415_v58, %v1420_v33  ;;  %v1495_v36 = vrot.slane %v4721_v50, 1  ;;  %v1573_v50 = vld [vmem:[#allocation3 + $0x38] sm:$0xfc]  ;;  %v4763_v62 = vld [vmem:[#allocation3 + $0x30] sm:$0xfc] }
 0x515   :  { %1711 = vrot.lane.b32.xlu0 %v1694_v29, %s3770_s3  ;;  %5453 = vst [vmem:[#allocation46_spill] sm:$0xff] %v4706_v34  ;;  %v1467_v29 = vmul.f32 %v4336_v24, %v4606_v21  ;;  %3430 = vmatprep.subr.mxu1 %v1940_v52  ;;  %v4737_v28 = vsub.f32 %v1735_v15, %v4706_v34  ;;  %v1954_v21 = vand.u32 4294901760, %v1953_v4  ;;  %v1502_v58 = vrot.slane %v1471_v45, 1 }
 0x516   :  { %1713 = vrot.lane.b32.xlu1 %v1696_v32, %s3770_s3  ;;  %v4724_v32 = vand.u32 4294901760, %v4694_v11  ;;  %3431 = vmatpush3.msra.mxu1 %v1940_v52  ;;  %v1470_v15 = vmul.f32 %v4336_v24, %v4661_v19  ;;  %v1494_v52 = vrot.slane %v1466_v40, 1  ;;  %v1961_v4 = vand.u32 4294901760, %v1960_v53  ;;  %v1574_v53 = vld [vmem:[#allocation3 + $0x58] sm:$0x3] }
 0x517   :  { %5456 = vst [vmem:[#allocation49_spill] sm:$0xff] %v4737_v28  ;;  %3432 = vmatprep.subr.mxu1 %v1947_v9  ;;  %v1497_v60 = vrot.slane %v1467_v29, 1  ;;  %v4757_v33 = vand.u32 4294901760, %v4737_v28  ;;  %3401 = vmatpush3.msra.mxu0 %v4667_v30 }
 0x518   :  { %5455 = vst [vmem:[#allocation48_spill] sm:$0xff] %v4724_v32  ;;  %3433 = vmatpush3.msra.mxu1 %v1947_v9  ;;  %3402 = vmatprep.subr.mxu0 %v4697_v22  ;;  %v1496_v9 = vsel %vm1349_vm13, %v1494_v52, %v1495_v36  ;;  %v1500_v40 = vrot.slane %v1470_v15, 1  ;;  %v1589_v52 = vmul.f32 %v4340_v39, %v4763_v62 }
 0x519   :  { %1432 = vrot.lane.b32.xlu0 %v1416_v26, %s3766_s12  ;;  %v4744_v26 = vand.u32 4294901760, %v4715_v44  ;;  %5458 = vst [vmem:[#allocation51_spill] sm:$0xff] %v4757_v33  ;;  %3434 = vmatprep.subr.mxu1 %v1954_v21  ;;  %v1981_v15 = vsub.f32 %v4737_v28, %v4757_v33 }
 0x51a   :  { %1434 = vrot.lane.b32.xlu1 %v1419_v1, %s3766_s12  ;;  %v1498_v1 = vrot.slane %v4710_v6, 1  ;;  %v1967_v6 = vsub.f32 %v4694_v11, %v4724_v32  ;;  %v1592_v32 = vmul.f32 %v4340_v39, %v4388_v38  ;;  %3435 = vmatpush3.msra.mxu1 %v1954_v21 }
 0x51b   :  { %5457 = vst [vmem:[#allocation50_spill] sm:$0xff] %v4744_v26  ;;  %v1974_v29 = vsub.f32 %v4715_v44, %v4744_v26  ;;  %3403 = vmatpush3.msra.mxu0 %v4697_v22  ;;  %3436 = vmatprep.subr.mxu1 %v1961_v4 }
 0x51c   :  { %v1499_v24 = vsel %vm1349_vm13, %v1497_v60, %v1498_v1  ;;  %v1968_v45 = vand.u32 4294901760, %v1967_v6  ;;  %v1590_v60 = vmul.f32 %v4340_v39, %v1573_v50  ;;  %3404 = vmatprep.subr.mxu0 %v4706_v34  ;;  %v1503_v21 = vsel %vm1349_vm13, %v1498_v1, %v1502_v58  ;;  %3437 = vmatpush3.msra.mxu1 %v1961_v4 }
 0x51d   :  { %1436 = vrot.lane.b32.xlu0 %v1421_v8, %s3766_s12  ;;  %v4774_v8 = vld [vmem:[#allocation3 + $0x50] sm:$0x3]  ;;  %v1594_v6 = vmul.f32 %v4340_v39, %v1574_v53  ;;  %3405 = vmatpush3.msra.mxu0 %v4706_v34  ;;  %v1621_v26 = vrot.slane %v1592_v32, 2  ;;  %v1617_v58 = vrot.slane %v1589_v52, 2  ;;  %v1982_v4 = vand.u32 4294901760, %v1981_v15 }
 0x51e   :  { %1438 = vrot.lane.b32.xlu1 %v1423_v13, %s3766_s12  ;;  %v1591_v13 = vmul.f32 %v4340_v39, %v4390_v57  ;;  %v1593_v44 = vmul.f32 %v4340_v39, %v4774_v8  ;;  %3438 = vmatprep.subr.mxu1 %v1968_v45  ;;  %v1620_v1 = vrot.slane %v1590_v60, 2  ;;  %v1669_v60 = vmul.f32 %v4347_v63, %v4763_v62 }
 0x51f   :  { %3450 = vmatprep.subr.mxu0 %v4454_v7  ;;  %3439 = vmatpush3.msra.mxu1 %v1968_v45  ;;  %v1670_v45 = vmul.f32 %v4347_v63, %v1573_v50 }
 0x520   :  { %v1618_v56 = vrot.slane %v1591_v13, 2  ;;  %v1622_v32 = vsel %vm1552_vm14, %v1620_v1, %v1621_v26  ;;  %v1671_v13 = vmul.f32 %v4347_v63, %v4390_v57 }
 0x521   :  { %1512 = vrot.lane.b32.xlu0 %v1496_v9, %s3770_s3  ;;  %v1501_v9 = vsel %vm1349_vm13, %v1495_v36, %v1500_v40  ;;  %v1672_v36 = vmul.f32 %v4347_v63, %v4388_v38  ;;  %v1623_v40 = vrot.slane %v1593_v44, 2  ;;  %v1700_v50 = vrot.slane %v1670_v45, 2 }
 0x522   :  { %1514 = vrot.lane.b32.xlu1 %v1499_v24, %s3770_s3  ;;  %v1975_v24 = vand.u32 4294901760, %v1974_v29  ;;  %v1625_v29 = vrot.slane %v1594_v6, 2  ;;  %v1619_v39 = vsel %vm1552_vm14, %v1617_v58, %v1618_v56  ;;  %v1698_v15 = vrot.slane %v1671_v13, 2 }
 0x523   :  { %v1701_v52 = vrot.slane %v1672_v36, 2  ;;  %v1624_v44 = vsel %vm1552_vm14, %v1618_v56, %v1623_v40  ;;  %v1673_v6 = vmul.f32 %v4347_v63, %v4774_v8 }
 0x524   :  { %3440 = vmatprep.subr.mxu1 %v1975_v24  ;;  %v1626_v38 = vsel %vm1552_vm14, %v1621_v26, %v1625_v29 }
 0x525   :  { %1516 = vrot.lane.b32.xlu0 %v1501_v9, %s3770_s3  ;;  %3441 = vmatpush3.msra.mxu1 %v1975_v24  ;;  %v1697_v24 = vrot.slane %v1669_v60, 2  ;;  %v1702_v26 = vsel %vm1552_vm14, %v1700_v50, %v1701_v52  ;;  %v1703_v56 = vrot.slane %v1673_v6, 2 }
 0x526   :  { %1518 = vrot.lane.b32.xlu1 %v1503_v21, %s3770_s3  ;;  %3442 = vmatprep.subr.mxu1 %v1982_v4  ;;  %v1674_v21 = vmul.f32 %v4347_v63, %v1574_v53 }
 0x527   :  { %3443 = vmatpush3.msra.mxu1 %v1982_v4  ;;  %v1699_v9 = vsel %vm1552_vm14, %v1697_v24, %v1698_v15  ;;  %v1704_v53 = vsel %vm1552_vm14, %v1698_v15, %v1703_v56 }
 0x528   :  { %3488 = vmatprep.subr.mxu1 %v4440_v43  ;;  %v1705_v1 = vrot.slane %v1674_v21, 2 }
 0x529   :  { %1635 = vrot.lane.b32.xlu0 %v1619_v39, %s3766_s12 }
 0x52a   :  { %1637 = vrot.lane.b32.xlu1 %v1622_v32, %s3766_s12  ;;  %v1706_v63 = vsel %vm1552_vm14, %v1701_v52, %v1705_v1  ;;  %v4841_v1 = vrot.slane %v4269_v0, %v3893_v25 }
 0x52d   :  { %1639 = vrot.lane.b32.xlu0 %v1624_v44, %s3766_s12 }
 0x52e   :  { %1641 = vrot.lane.b32.xlu1 %v1626_v38, %s3766_s12 }
 0x531   :  { %1715 = vrot.lane.b32.xlu0 %v1699_v9, %s3770_s3 }
 0x532   :  { %1717 = vrot.lane.b32.xlu1 %v1702_v26, %s3770_s3  ;;  %v5459_v26 = vsub.s32 3, %v3867_v2 }
 0x534   :  { %v4837_v9 = vrot.slane %v4269_v0, %v5459_v26  ;;  %v1215_v26 = vmul.f32 %v4841_v1, %v4338_v35  ;;  %v1216_v35 = vmul.f32 %v4841_v1, %v4372_v48 }
 0x535   :  { %1719 = vrot.lane.b32.xlu0 %v1704_v53, %s3770_s3 }
 0x536   :  { %1721 = vrot.lane.b32.xlu1 %v1706_v63, %s3770_s3  ;;  %v1337_v33 = vmul.f32 %v4837_v9, %v4386_v14  ;;  %v1338_v28 = vmul.f32 %v4837_v9, %v4372_v48  ;;  %v1339_v0 = vmul.f32 %v4837_v9, %v4405_v42 }
 0x538   :  { %v1350_v22 = vrot.slane %v1337_v33, 1  ;;  %v1351_v30 = vrot.slane %v1338_v28, 1 }
 0x53a   :  { %v1352_v27 = vsel %vm1349_vm13, %v1350_v22, %v1351_v30 }
 0x546   :  { %v1248_v4 = vpop.permute.xlu0 %1247 }
 0x547   :  { %v1250_v58 = vpop.permute.xlu1 %1249 }
 0x548   :  { %v1264_v53 = vsel %vm1263_vm15, %v1248_v4, %v1250_v58  ;;  %v5460_v58 = vsub.s32 6, %v3867_v2 }
 0x549   :  { %v1272_v20 = vadd.f32 %v1264_v53, %v1215_v26  ;;  %v1353_v53 = vrot.slane %v1339_v0, 1 }
 0x54a   :  { %v1301_v36 = vpop.permute.xlu0 %1300  ;;  %v4855_v4 = vrot.slane %v3627_v61, %v5460_v58 }
 0x54b   :  { %v1303_v29 = vpop.permute.xlu1 %1302 }
 0x54c   :  { %v1317_v11 = vsel %vm1316_vm0, %v1301_v36, %v1303_v29  ;;  %v1540_v61 = vmul.f32 %v4855_v4, %v4462_v37  ;;  %v1541_v28 = vmul.f32 %v4855_v4, %v4372_v48 }
 0x54d   :  { %v1325_v23 = vadd.f32 %v1317_v11, %v1272_v20 }
 0x54e   :  { %v1553_v22 = vrot.slane %v1540_v61, 2  ;;  %v1554_v58 = vrot.slane %v1541_v28, 2 }
 0x54f   :  { %v1364_v11 = vadd.f32 %v1352_v27, %v1325_v23 }
 0x553   :  { %v4820_v39 = vpop.permute.xlu0 %1255 }
 0x554   :  { %v4818_v32 = vpop.permute.xlu1 %1257 }
 0x557   :  { %v4824_v13 = vpop.permute.xlu0 %1308 }
 0x558   :  { %v4822_v40 = vpop.permute.xlu1 %1310 }
 0x55b   :  { %v1252_v60 = vpop.permute.xlu0 %1251 }
 0x55c   :  { %v1254_v45 = vpop.permute.xlu1 %1253 }
 0x55d   :  { %v1265_v14 = vsel %vm1263_vm15, %v1252_v60, %v1254_v45  ;;  %v1354_v60 = vsel %vm1349_vm13, %v1351_v30, %v1353_v53 }
 0x55e   :  { %v1273_v36 = vadd.f32 %v1265_v14, %v1216_v35 }
 0x55f   :  { %v1305_v52 = vpop.permute.xlu0 %1304 }
 0x560   :  { %v1307_v38 = vpop.permute.xlu1 %1306 }
 0x561   :  { %v1318_v29 = vsel %vm1316_vm0, %v1305_v52, %v1307_v38 }
 0x562   :  { %v1326_v20 = vadd.f32 %v1318_v29, %v1273_v36 }
 0x563   :  { %v4828_v15 = vpop.permute.xlu0 %1259 }
 0x564   :  { %v4826_v44 = vpop.permute.xlu1 %1261  ;;  %v1365_v37 = vadd.f32 %v1354_v60, %v1326_v20 }
 0x567   :  { %v4832_v6 = vpop.permute.xlu0 %1312 }
 0x568   :  { %v4830_v21 = vpop.permute.xlu1 %1314 }
 0x56b   :  { %v1425_v24 = vpop.permute.xlu0 %1424 }
 0x56c   :  { %v1427_v50 = vpop.permute.xlu1 %1426 }
 0x56d   :  { %v1440_v2 = vsel %vm1263_vm15, %v1425_v24, %v1427_v50  ;;  %v1542_v50 = vmul.f32 %v4855_v4, %v4518_v17 }
 0x56e   :  { %v1448_v45 = vadd.f32 %v1440_v2, %v1364_v11 }
 0x56f   :  { %v1429_v63 = vpop.permute.xlu0 %1428 }
 0x570   :  { %v1431_v56 = vpop.permute.xlu1 %1430 }
 0x571   :  { %v1441_v0 = vsel %vm1263_vm15, %v1429_v63, %v1431_v56 }
 0x572   :  { %v1449_v14 = vadd.f32 %v1441_v0, %v1365_v37 }
 0x573   :  { %v1505_v34 = vpop.permute.xlu0 %1504 }
 0x574   :  { %v1507_v25 = vpop.permute.xlu1 %1506 }
 0x575   :  { %v1520_v33 = vsel %vm1316_vm0, %v1505_v34, %v1507_v25  ;;  %v1555_v25 = vsel %vm1552_vm14, %v1553_v22, %v1554_v58  ;;  %v1556_v34 = vrot.slane %v1542_v50, 2 }
 0x576   :  { %v1528_v24 = vadd.f32 %v1520_v33, %v1448_v45 }
 0x577   :  { %v1509_v26 = vpop.permute.xlu0 %1508  ;;  %v1557_v53 = vsel %vm1552_vm14, %v1554_v58, %v1556_v34  ;;  %v1319_v34 = vsel %vm1316_vm0, %v4824_v13, %v4822_v40  ;;  %v1320_v13 = vsel %vm1316_vm0, %v4832_v6, %v4830_v21 }
 0x578   :  { %v1511_v42 = vpop.permute.xlu1 %1510  ;;  %v1567_v29 = vadd.f32 %v1555_v25, %v1528_v24  ;;  %v1217_v25 = vmul.f32 %v4841_v1, %v4360_v55 }
 0x579   :  { %v1521_v48 = vsel %vm1316_vm0, %v1509_v26, %v1511_v42 }
 0x57a   :  { %v1529_v35 = vadd.f32 %v1521_v48, %v1449_v14 }
 0x57b   :  { %v1628_v52 = vpop.permute.xlu0 %1627 }
 0x57c   :  { %v1630_v38 = vpop.permute.xlu1 %1629  ;;  %v1568_v42 = vadd.f32 %v1557_v53, %v1529_v35 }
 0x57d   :  { %v1643_v30 = vsel %vm1263_vm15, %v1628_v52, %v1630_v38 }
 0x57e   :  { %v1651_v56 = vadd.f32 %v1643_v30, %v1567_v29 }
 0x57f   :  { %v1632_v27 = vpop.permute.xlu0 %1631 }
 0x580   :  { %v1634_v23 = vpop.permute.xlu1 %1633 }
 0x581   :  { %v1644_v17 = vsel %vm1263_vm15, %v1632_v27, %v1634_v23  ;;  %v1266_v23 = vsel %vm1263_vm15, %v4820_v39, %v4818_v32  ;;  %v1341_v27 = vmul.f32 %v4837_v9, %v4390_v57  ;;  %v1340_v32 = vmul.f32 %v4837_v9, %v4640_v54 }
 0x582   :  { %v1652_v61 = vadd.f32 %v1644_v17, %v1568_v42  ;;  %v1274_v39 = vadd.f32 %v1266_v23, %v1217_v25  ;;  %v1218_v54 = vmul.f32 %v4841_v1, %v4390_v57  ;;  %v1543_v42 = vmul.f32 %v4855_v4, %v4763_v62 }
 0x583   :  { %v1708_v36 = vpop.permute.xlu0 %1707  ;;  %v1355_v53 = vrot.slane %v1340_v32, 1 }
 0x584   :  { %v1710_v63 = vpop.permute.xlu1 %1709  ;;  %v1327_v40 = vadd.f32 %v1319_v34, %v1274_v39 }
 0x585   :  { %v1723_v2 = vsel %vm1316_vm0, %v1708_v36, %v1710_v63  ;;  %v1356_v63 = vrot.slane %v1341_v27, 1  ;;  %v1342_v36 = vmul.f32 %v4837_v9, %v4661_v19 }
 0x586   :  { %v1731_v26 = vadd.f32 %v1723_v2, %v1651_v56  ;;  %v1267_v56 = vsel %vm1263_vm15, %v4828_v15, %v4826_v44 }
 0x587   :  { %v1712_v11 = vpop.permute.xlu0 %1711  ;;  %v1275_v44 = vadd.f32 %v1267_v56, %v1218_v54  ;;  %v1357_v9 = vsel %vm1349_vm13, %v1355_v53, %v1356_v63  ;;  %v1358_v17 = vrot.slane %v1342_v36, 1  ;;  %v5467_v54 = vld [vmem:[#allocation37_spill] sm:$0xff] }
 0x588   :  { %v4878_v28 = vand.u32 4294901760, %v1731_v26  ;;  %v1714_v20 = vpop.permute.xlu1 %1713  ;;  %v1366_v6 = vadd.f32 %v1357_v9, %v1327_v40  ;;  %v5466_v40 = vld [vmem:[#allocation31_spill] sm:$0xff]  ;;  %v5469_v9 = vld [vmem:[#allocation40_spill] sm:$0xff] }
 0x589   :  { %v1724_v33 = vsel %vm1316_vm0, %v1712_v11, %v1714_v20  ;;  %v1328_v21 = vadd.f32 %v1320_v13, %v1275_v44 }
 0x58a   :  { %v4882_v45 = vsub.f32 %v1731_v26, %v4878_v28  ;;  %v1732_v60 = vadd.f32 %v1724_v33, %v1652_v61  ;;  %3444 = vmatprep.mubr.f32.mxu1 %v4878_v28 }
 0x58b   :  { %v1433_v0 = vpop.permute.xlu0 %1432 }
 0x58c   :  { %v4885_v38 = vand.u32 4294901760, %v1732_v60  ;;  %v1435_v52 = vpop.permute.xlu1 %1434  ;;  %v1834_v22 = vand.u32 4294901760, %v4882_v45 }
 0x58d   :  { %v1442_v1 = vsel %vm1263_vm15, %v1433_v0, %v1435_v52  ;;  %v5462_v52 = vld [vmem:[#allocation28_spill] sm:$0xff] }
 0x58e   :  { %v4889_v58 = vsub.f32 %v1732_v60, %v4885_v38  ;;  %3445 = vmatmul.mubr.f32.vlgmr.msra.gmra.mxu1 %v4885_v38  ;;  %v1835_v50 = vsub.f32 %v4882_v45, %v1834_v22  ;;  %v5461_v60 = vld [vmem:[#allocation22_spill] sm:$0xff] }
 0x58f   :  { %3489 = vmatpush3.msra.mxu1 %v4440_v43  ;;  %v1437_v48 = vpop.permute.xlu0 %1436 }
 0x590   :  { %v1844_v37 = vand.u32 4294901760, %v4889_v58  ;;  %v1439_v24 = vpop.permute.xlu1 %1438  ;;  %v1836_v14 = vand.u32 4294901760, %v1835_v50  ;;  %3490 = vmatprep.subr.mxu1 %v4444_v59  ;;  %v1558_v50 = vrot.slane %v1543_v42, 2  ;;  %v5472_v42 = vld [vmem:[#allocation38_spill] sm:$0xff] }
 0x591   :  { %3491 = vmatpush3.msra.mxu1 %v4444_v59  ;;  %v1443_v20 = vsel %vm1263_vm15, %v1437_v48, %v1439_v24 }
 0x592   :  { %v1845_v30 = vsub.f32 %v4889_v58, %v1844_v37  ;;  %3406 = vmatprep.mubr.f32.mxu0 %v1836_v14  ;;  %3492 = vmatprep.subr.mxu1 %v4446_v12  ;;  %v5463_v14 = vld [vmem:[#allocation24_spill] sm:$0xff] }
 0x593   :  { %3493 = vmatpush3.msra.mxu1 %v4446_v12  ;;  %v1513_v55 = vpop.permute.xlu0 %1512 }
 0x594   :  { %v1846_v35 = vand.u32 4294901760, %v1845_v30  ;;  %v1515_v29 = vpop.permute.xlu1 %1514  ;;  %3494 = vmatprep.subr.mxu1 %v4456_v3  ;;  %v5464_v30 = vld [vmem:[#allocation26_spill] sm:$0xff] }
 0x595   :  { %3495 = vmatpush3.msra.mxu1 %v4456_v3  ;;  %v1522_v2 = vsel %vm1316_vm0, %v1513_v55, %v1515_v29 }
 0x596   :  { %3407 = vmatmul.mubr.f32.vlgmr.msra.gmra.mxu0 %v1846_v35  ;;  %3496 = vmatprep.subr.mxu1 %v4471_v49  ;;  %v5465_v35 = vld [vmem:[#allocation29_spill] sm:$0xff] }
 0x597   :  { %3451 = vmatpush3.msra.mxu0 %v4454_v7  ;;  %3497 = vmatpush3.msra.mxu1 %v4471_v49  ;;  %v1517_v15 = vpop.permute.xlu0 %1516  ;;  %v1544_v7 = vmul.f32 %v4855_v4, %v4390_v57  ;;  %v1359_v57 = vsel %vm1349_vm13, %v1356_v63, %v1358_v17 }
 0x598   :  { %v1519_v19 = vpop.permute.xlu1 %1518  ;;  %3452 = vmatprep.subr.mxu0 %v4465_v47  ;;  %3498 = vmatprep.subr.mxu1 %v4481_v51  ;;  %v1367_v62 = vadd.f32 %v1359_v57, %v1328_v21  ;;  %v5470_v21 = vld [vmem:[#allocation35_spill] sm:$0xff]  ;;  %v5474_v57 = vld [vmem:[#allocation41_spill] sm:$0xff] }
 0x599   :  { %3453 = vmatpush3.msra.mxu0 %v4465_v47  ;;  %3499 = vmatpush3.msra.mxu1 %v4481_v51  ;;  %v1450_v47 = vadd.f32 %v1442_v1, %v1366_v6  ;;  %v1559_v11 = vrot.slane %v1544_v7, 2  ;;  %v1523_v0 = vsel %vm1316_vm0, %v1517_v15, %v1519_v19  ;;  %v5468_v15 = vld [vmem:[#allocation33_spill] sm:$0xff]  ;;  %v5471_v6 = vld [vmem:[#allocation44_spill] sm:$0xff] }
 0x59a   :  { %3454 = vmatprep.subr.mxu0 %v4468_v16  ;;  %3500 = vmatprep.subr.mxu1 %v4515_v10  ;;  %v1451_v24 = vadd.f32 %v1443_v20, %v1367_v62  ;;  %v5475_v62 = vld [vmem:[#allocation43_spill] sm:$0xff] }
 0x59b   :  { %3455 = vmatpush3.msra.mxu0 %v4468_v16  ;;  %3501 = vmatpush3.msra.mxu1 %v4515_v10  ;;  %v1636_v61 = vpop.permute.xlu0 %1635  ;;  %v1545_v16 = vmul.f32 %v4855_v4, %v4774_v8  ;;  %v1530_v33 = vadd.f32 %v1522_v2, %v1450_v47  ;;  %v1560_v8 = vsel %vm1552_vm14, %v1558_v50, %v1559_v11 }
 0x59c   :  { %v1638_v26 = vpop.permute.xlu1 %1637  ;;  %3456 = vmatprep.subr.mxu0 %v4478_v5  ;;  %3502 = vmatprep.subr.mxu1 %v4531_v31  ;;  %v1531_v27 = vadd.f32 %v1523_v0, %v1451_v24  ;;  %v5493_v0 = vld [vmem:[#allocation51_spill] sm:$0xff] }
 0x59d   :  { %3457 = vmatpush3.msra.mxu0 %v4478_v5  ;;  %3503 = vmatpush3.msra.mxu1 %v4531_v31  ;;  %v1645_v4 = vsel %vm1263_vm15, %v1636_v61, %v1638_v26  ;;  %v1561_v23 = vrot.slane %v1545_v16, 2  ;;  %v1569_v25 = vadd.f32 %v1560_v8, %v1530_v33  ;;  %v5473_v26 = vld [vmem:[#allocation46_spill] sm:$0xff] }
 0x59e   :  { %3458 = vmatprep.subr.mxu0 %v5461_v60  ;;  %3504 = vmatprep.subr.mxu1 %v5462_v52 }
 0x59f   :  { %3459 = vmatpush3.msra.mxu0 %v5461_v60  ;;  %3505 = vmatpush3.msra.mxu1 %v5462_v52  ;;  %v1640_v48 = vpop.permute.xlu0 %1639  ;;  %v1653_v34 = vadd.f32 %v1645_v4, %v1569_v25  ;;  %v1562_v29 = vsel %vm1552_vm14, %v1559_v11, %v1561_v23  ;;  %v5476_v60 = vld [vmem:[#allocation47_spill] sm:$0xff] }
 0x5a0   :  { %v1642_v5 = vpop.permute.xlu1 %1641  ;;  %3460 = vmatprep.subr.mxu0 %v5463_v14  ;;  %3506 = vmatprep.subr.mxu1 %v4582_v41  ;;  %v1570_v63 = vadd.f32 %v1562_v29, %v1531_v27 }
 0x5a1   :  { %3461 = vmatpush3.msra.mxu0 %v5463_v14  ;;  %3507 = vmatpush3.msra.mxu1 %v4582_v41  ;;  %v1646_v55 = vsel %vm1263_vm15, %v1640_v48, %v1642_v5 }
 0x5a2   :  { %3462 = vmatprep.subr.mxu0 %v5464_v30  ;;  %3508 = vmatprep.subr.mxu1 %v4597_v18  ;;  %v1654_v13 = vadd.f32 %v1646_v55, %v1570_v63 }
 0x5a3   :  { %3463 = vmatpush3.msra.mxu0 %v5464_v30  ;;  %3509 = vmatpush3.msra.mxu1 %v4597_v18  ;;  %v1716_v39 = vpop.permute.xlu0 %1715 }
 0x5a4   :  { %v1718_v32 = vpop.permute.xlu1 %1717  ;;  %3464 = vmatprep.subr.mxu0 %v5465_v35  ;;  %3510 = vmatprep.subr.mxu1 %v4620_v46 }
 0x5a5   :  { %v1725_v56 = vsel %vm1316_vm0, %v1716_v39, %v1718_v32  ;;  %3465 = vmatpush3.msra.mxu0 %v5465_v35  ;;  %3511 = vmatpush3.msra.mxu1 %v4620_v46 }
 0x5a6   :  { %v1733_v36 = vadd.f32 %v1725_v56, %v1653_v34  ;;  %3466 = vmatprep.subr.mxu0 %v5466_v40  ;;  %3512 = vmatprep.subr.mxu1 %v5467_v54 }
 0x5a7   :  { %3467 = vmatpush3.msra.mxu0 %v5466_v40  ;;  %3513 = vmatpush3.msra.mxu1 %v5467_v54  ;;  %v1720_v19 = vpop.permute.xlu0 %1719 }
 0x5a8   :  { %v4980_v53 = vand.u32 4294901760, %v1733_v36  ;;  %v1722_v44 = vpop.permute.xlu1 %1721  ;;  %3468 = vmatprep.subr.mxu0 %v5468_v15  ;;  %3514 = vmatprep.subr.mxu1 %v5469_v9 }
 0x5a9   :  { %v1726_v1 = vsel %vm1316_vm0, %v1720_v19, %v1722_v44  ;;  %3469 = vmatpush3.msra.mxu0 %v5468_v15  ;;  %3515 = vmatpush3.msra.mxu1 %v5469_v9 }
 0x5aa   :  { %v1853_v17 = vsub.f32 %v1733_v36, %v4980_v53  ;;  %v1734_v7 = vadd.f32 %v1726_v1, %v1654_v13  ;;  %3447 = vmatprep.mubr.f32.mxu1 %v4980_v53  ;;  %3470 = vmatprep.subr.mxu0 %v5470_v21 }
 0x5ab   :  { %3516 = vmatprep.subr.mxu1 %v5471_v6  ;;  %3471 = vmatpush3.msra.mxu0 %v5470_v21 }
 0x5ac   :  { %v4992_v2 = vand.u32 4294901760, %v1734_v7  ;;  %3517 = vmatpush3.msra.mxu1 %v5471_v6  ;;  %3472 = vmatprep.subr.mxu0 %v5472_v42  ;;  %v1854_v47 = vand.u32 4294901760, %v1853_v17 }
 0x5ad   :  { %3518 = vmatprep.subr.mxu1 %v5473_v26  ;;  %3473 = vmatpush3.msra.mxu0 %v5472_v42 }
 0x5ae   :  { %v1863_v61 = vsub.f32 %v1734_v7, %v4992_v2  ;;  %3448 = vmatmul.mubr.f32.gmra.mxu1 %v4992_v2  ;;  %3474 = vmatprep.subr.mxu0 %v5474_v57  ;;  %v1855_v20 = vsub.f32 %v1853_v17, %v1854_v47 }
 0x5af   :  { %3520 = vmatprep.mubr.f32.mxu1 %v1834_v22  ;;  %3519 = vmatpush3.msra.mxu1 %v5473_v26 }
 0x5b0   :  { %3564 = vmatprep.subr.mxu1 %v4440_v43  ;;  %v1856_v11 = vand.u32 4294901760, %v1855_v20  ;;  %3475 = vmatpush3.msra.mxu0 %v5474_v57  ;;  %v1864_v16 = vand.u32 4294901760, %v1863_v61 }
 0x5b1   :  { %3476 = vmatprep.subr.mxu0 %v5475_v62 }
 0x5b2   :  { %3409 = vmatprep.mubr.f32.mxu0 %v1856_v11  ;;  %3521 = vmatmul.mubr.f32.vlgmr.msra.gmra.mxu1 %v1844_v37  ;;  %v1865_v33 = vsub.f32 %v1863_v61, %v1864_v16  ;;  %v5477_v37 = vld [vmem:[#allocation49_spill] sm:$0xff] }
 0x5b3   :  { %3565 = vmatpush3.msra.mxu1 %v4440_v43  ;;  %3523 = vmatprep.mubr.f32.mxu1 %v1854_v47  ;;  %v5478_v43 = vld [vmem:[#allocation19_spill] sm:$0xff] }
 0x5b4   :  { %3566 = vmatprep.subr.mxu1 %v4444_v59  ;;  %3477 = vmatpush3.msra.mxu0 %v5475_v62  ;;  %v1866_v22 = vand.u32 4294901760, %v1865_v33 }
 0x5b5   :  { %3567 = vmatpush3.msra.mxu1 %v4444_v59  ;;  %3478 = vmatprep.subr.mxu0 %v5476_v60  ;;  %v5479_v59 = vld [vmem:[#allocation20_spill] sm:$0xff] }
 0x5b6   :  { %3568 = vmatprep.subr.mxu1 %v4446_v12  ;;  %3410 = vmatmul.mubr.f32.gmra.mxu0 %v1866_v22 }
 0x5b7   :  { %3479 = vmatpush3.msra.mxu0 %v5476_v60  ;;  %3524 = vmatmul.mubr.f32.gmra.mxu1 %v1864_v16 }
 0x5b8   :  { %3569 = vmatpush3.msra.mxu1 %v4446_v12  ;;  %3480 = vmatprep.subr.mxu0 %v5477_v37  ;;  %v5480_v12 = vld [vmem:[#allocation21_spill] sm:$0xff] }
 0x5b9   :  { %3482 = vmatprep.mubr.f32.mxu0 %v4882_v45  ;;  %3570 = vmatprep.subr.mxu1 %v4456_v3  ;;  %v5490_v45 = vld [vmem:[#allocation45_spill] sm:$0xff] }
 0x5ba   :  { %3596 = vmatprep.mubr.f32.mxu1 %v4878_v28  ;;  %3481 = vmatpush3.msra.mxu0 %v5477_v37 }
 0x5bb   :  { %3571 = vmatpush3.msra.mxu1 %v4456_v3  ;;  %3526 = vmatprep.subr.mxu0 %v5478_v43  ;;  %v5481_v3 = vld [vmem:[#allocation23_spill] sm:$0xff] }
 0x5bc   :  { %3572 = vmatprep.subr.mxu1 %v4471_v49  ;;  %3483 = vmatmul.mubr.f32.vlgmr.msra.gmra.mxu0 %v4889_v58  ;;  %v5491_v58 = vld [vmem:[#allocation48_spill] sm:$0xff] }
 0x5bd   :  { %3527 = vmatpush3.msra.mxu0 %v5478_v43  ;;  %3573 = vmatpush3.msra.mxu1 %v4471_v49  ;;  %v5482_v49 = vld [vmem:[#allocation25_spill] sm:$0xff] }
 0x5be   :  { %3485 = vmatprep.mubr.f32.mxu0 %v1853_v17  ;;  %3528 = vmatprep.subr.mxu0 %v5479_v59 }
 0x5bf   :  { %3574 = vmatprep.subr.mxu1 %v4481_v51  ;;  %3529 = vmatpush3.msra.mxu0 %v5479_v59 }
 0x5c0   :  { %3575 = vmatpush3.msra.mxu1 %v4481_v51  ;;  %3530 = vmatprep.subr.mxu0 %v5480_v12  ;;  %v5483_v51 = vld [vmem:[#allocation27_spill] sm:$0xff] }
 0x5c1   :  { %3576 = vmatprep.subr.mxu1 %v4515_v10  ;;  %3486 = vmatmul.mubr.f32.gmra.mxu0 %v1863_v61 }
 0x5c2   :  { %3531 = vmatpush3.msra.mxu0 %v5480_v12  ;;  %3577 = vmatpush3.msra.mxu1 %v4515_v10  ;;  %v5484_v10 = vld [vmem:[#allocation30_spill] sm:$0xff] }
 0x5c3   :  { %3532 = vmatprep.subr.mxu0 %v5481_v3  ;;  %3558 = vmatprep.mubr.f32.mxu0 %v4878_v28  ;;  %v5486_v28 = vld [vmem:[#allocation34_spill] sm:$0xff] }
 0x5c4   :  { %3578 = vmatprep.subr.mxu1 %v4531_v31  ;;  %3533 = vmatpush3.msra.mxu0 %v5481_v3 }
 0x5c5   :  { %3579 = vmatpush3.msra.mxu1 %v4531_v31  ;;  %3534 = vmatprep.subr.mxu0 %v5482_v49  ;;  %v5485_v31 = vld [vmem:[#allocation32_spill] sm:$0xff] }
 0x5c6   :  { %3580 = vmatprep.subr.mxu1 %v5462_v52  ;;  %3535 = vmatpush3.msra.mxu0 %v5482_v49 }
 0x5c7   :  { %3581 = vmatpush3.msra.mxu1 %v5462_v52  ;;  %3536 = vmatprep.subr.mxu0 %v5483_v51  ;;  %v5492_v52 = vld [vmem:[#allocation50_spill] sm:$0xff] }
 0x5c8   :  { %3582 = vmatprep.subr.mxu1 %v4582_v41  ;;  %3537 = vmatpush3.msra.mxu0 %v5483_v51 }
 0x5c9   :  { %3583 = vmatpush3.msra.mxu1 %v4582_v41  ;;  %3538 = vmatprep.subr.mxu0 %v5484_v10  ;;  %v5487_v41 = vld [vmem:[#allocation36_spill] sm:$0xff] }
 0x5ca   :  { %3584 = vmatprep.subr.mxu1 %v4597_v18  ;;  %3539 = vmatpush3.msra.mxu0 %v5484_v10 }
 0x5cb   :  { %3585 = vmatpush3.msra.mxu1 %v4597_v18  ;;  %3540 = vmatprep.subr.mxu0 %v5485_v31  ;;  %v5488_v18 = vld [vmem:[#allocation39_spill] sm:$0xff] }
 0x5cc   :  { %3586 = vmatprep.subr.mxu1 %v4620_v46  ;;  %3541 = vmatpush3.msra.mxu0 %v5485_v31 }
 0x5cd   :  { %3587 = vmatpush3.msra.mxu1 %v4620_v46  ;;  %3542 = vmatprep.subr.mxu0 %v5486_v28  ;;  %v5489_v46 = vld [vmem:[#allocation42_spill] sm:$0xff] }
 0x5ce   :  { %3588 = vmatprep.subr.mxu1 %v5467_v54  ;;  %3543 = vmatpush3.msra.mxu0 %v5486_v28 }
 0x5cf   :  { %3589 = vmatpush3.msra.mxu1 %v5467_v54  ;;  %3544 = vmatprep.subr.mxu0 %v5487_v41 }
 0x5d0   :  { %3590 = vmatprep.subr.mxu1 %v5469_v9  ;;  %3545 = vmatpush3.msra.mxu0 %v5487_v41 }
 0x5d1   :  { %3591 = vmatpush3.msra.mxu1 %v5469_v9  ;;  %3546 = vmatprep.subr.mxu0 %v5488_v18 }
 0x5d2   :  { %3592 = vmatprep.subr.mxu1 %v5471_v6  ;;  %3547 = vmatpush3.msra.mxu0 %v5488_v18 }
 0x5d3   :  { %3593 = vmatpush3.msra.mxu1 %v5471_v6  ;;  %3548 = vmatprep.subr.mxu0 %v5489_v46 }
 0x5d4   :  { %3594 = vmatprep.subr.mxu1 %v5473_v26  ;;  %3549 = vmatpush3.msra.mxu0 %v5489_v46 }
 0x5d5   :  { %3595 = vmatpush3.msra.mxu1 %v5473_v26  ;;  %3550 = vmatprep.subr.mxu0 %v5490_v45 }
 0x5d6   :  { %3597 = vmatmul.mubr.f32.vlgmr.msra.gmra.mxu1 %v4885_v38  ;;  %3551 = vmatpush3.msra.mxu0 %v5490_v45 }
 0x5d7   :  { %3599 = vmatprep.mubr.f32.mxu1 %v4980_v53  ;;  %3552 = vmatprep.subr.mxu0 %v5491_v58 }
 0x5d8   :  { %3553 = vmatpush3.msra.mxu0 %v5491_v58 }
 0x5d9   :  { %3554 = vmatprep.subr.mxu0 %v5492_v52 }
 0x5da   :  { %3600 = vmatmul.mubr.f32.gmra.mxu1 %v4992_v2  ;;  %3555 = vmatpush3.msra.mxu0 %v5492_v52 }
 0x5db   :  { %3556 = vmatprep.subr.mxu0 %v5493_v0 }
 0x5dc   :  { %3557 = vmatpush3.msra.mxu0 %v5493_v0 }
 0x5dd   :  { %3559 = vmatmul.mubr.f32.vlgmr.msra.gmra.mxu0 %v4885_v38 }
 0x5de   :  { %3561 = vmatprep.mubr.f32.mxu0 %v4980_v53 }
 0x5e1   :  { %3562 = vmatmul.mubr.f32.gmra.mxu0 %v4992_v2 }
 0x64e   :  { %v3446_v50 = vpop.f32.mrf.mxu1 }
 0x650   :  { %v2019_v24 = vpop.f32.mrf.mxu1 }
 0x656   :  { %v3408_v5 = vpop.f32.mrf.mxu0 }
 0x657   :  { %v2026_v39 = vadd.f32 %v3446_v50, %v3408_v5 }
 0x658   :  { %v1838_v14 = vpop.f32.mrf.mxu0 }
 0x659   :  { %v2020_v29 = vadd.f32 %v2019_v24, %v1838_v14 }
 0x66e   :  { %v3449_v48 = vpop.f32.mrf.mxu1 }
 0x670   :  { %v2031_v8 = vpop.f32.mrf.mxu1 }
 0x672   :  { %v3522_v23 = vpop.f32.mrf.mxu1 }
 0x674   :  { %v2251_v25 = vpop.f32.mrf.mxu1 }
 0x676   :  { %v3411_v4 = vpop.f32.mrf.mxu0 }
 0x677   :  { %v3525_v34 = vpop.f32.mrf.mxu1  ;;  %v2038_v63 = vadd.f32 %v3449_v48, %v3411_v4 }
 0x678   :  { %v1858_v27 = vpop.f32.mrf.mxu0 }
 0x679   :  { %v2267_v35 = vpop.f32.mrf.mxu1  ;;  %v2032_v54 = vadd.f32 %v2031_v8, %v1858_v27 }
 0x67c   :  { %v3484_v30 = vpop.f32.mrf.mxu0 }
 0x67d   :  { %v2149_v55 = vadd.f32 %v3484_v30, %v2026_v39 }
 0x67e   :  { %v2141_v32 = vpop.f32.mrf.mxu0 }
 0x67f   :  { %v2142_v36 = vadd.f32 %v2141_v32, %v2020_v29  ;;  %v2260_v53 = vadd.f32 %v3522_v23, %v2149_v55 }
 0x681   :  { %v3487_v38 = vpop.f32.mrf.mxu0  ;;  %v2252_v1 = vadd.f32 %v2251_v25, %v2142_v36 }
 0x682   :  { %v2163_v13 = vadd.f32 %v3487_v38, %v2038_v63 }
 0x683   :  { %v2155_v40 = vpop.f32.mrf.mxu0 }
 0x684   :  { %v2156_v15 = vadd.f32 %v2155_v40, %v2032_v54  ;;  %v2276_v21 = vadd.f32 %v3525_v34, %v2163_v13  ;;  %v2571_v13 = vld [vmem:[%s5346_s7] sm:$0x1]  ;;  %s3771_s7 = smov 104  }
 0x686   :  { %v2268_v61 = vadd.f32 %v2267_v35, %v2156_v15 }
 0x696   :  { %v3598_v56 = vpop.f32.mrf.mxu1 }
 0x698   :  { %v2499_v44 = vpop.f32.mrf.mxu1 }
 0x69a   :  { %v3601_v6 = vpop.f32.mrf.mxu1 }
 0x69c   :  { %v2511_v16 = vpop.f32.mrf.mxu1 }
 0x69d   :  { %v3560_v19 = vpop.f32.mrf.mxu0 }
 0x69e   :  { %v2401_v9 = vadd.f32 %v3560_v19, %v2260_v53  ;;  %v2575_v19 = vld [vmem:[%s5347_s8] sm:$0x1]  ;;  %s3772_s8 = smov 96  }
 0x69f   :  { %v2394_v17 = vpop.f32.mrf.mxu0 }
 0x6a0   :  { %v2395_v7 = vadd.f32 %v2394_v17, %v2252_v1  ;;  %v5087_v42 = vadd.f32 %v3598_v56, %v2401_v9  ;;  %v5494_v9 = vld [vmem:[#allocation18_spill] sm:$0xff] }
 0x6a1   :  { %v3563_v2 = vpop.f32.mrf.mxu0 }
 0x6a2   :  { %v5089_v47 = vadd.f32 %v2499_v44, %v2395_v7  ;;  %v2413_v26 = vadd.f32 %v3563_v2, %v2276_v21  ;;  %v2543_v62 = vmul.f32 %v5087_v42, %v5087_v42 }
 0x6a3   :  { %v2406_v57 = vpop.f32.mrf.mxu0 }
 0x6a4   :  { %v2542_v20 = vmul.f32 %v5089_v47, %v5089_v47  ;;  %v2407_v11 = vadd.f32 %v2406_v57, %v2268_v61  ;;  %v2521_v33 = vadd.f32 %v5087_v42, %v5089_v47  ;;  %v2518_v22 = vadd.f32 %v3601_v6, %v2413_v26 }
 0x6a6   :  { %v2512_v60 = vadd.f32 %v2511_v16, %v2407_v11  ;;  %v2546_v37 = vadd.f32 %v2543_v62, %v2542_v20  ;;  %v2545_v12 = vmul.f32 %v2518_v22, %v2518_v22 }
 0x6a8   :  { %v2522_v43 = vadd.f32 %v2521_v33, %v2512_v60  ;;  %v2544_v59 = vmul.f32 %v2512_v60, %v2512_v60 }
 0x6aa   :  { %v2523_v3 = vadd.f32 %v2522_v43, %v2518_v22  ;;  %v2547_v49 = vadd.f32 %v2546_v37, %v2544_v59 }
 0x6ac   :  { %v2524_v51 = vrot.slane %v2523_v3, 4  ;;  %v2548_v10 = vadd.f32 %v2547_v49, %v2545_v12 }
 0x6ae   :  { %v2525_v31 = vadd.f32 %v2524_v51, %v2523_v3  ;;  %v2549_v28 = vrot.slane %v2548_v10, 4 }
 0x6b0   :  { %v2526_v41 = vrot.slane %v2525_v31, 2  ;;  %v2550_v18 = vadd.f32 %v2549_v28, %v2548_v10 }
 0x6b2   :  { %v2527_v46 = vadd.f32 %v2526_v41, %v2525_v31  ;;  %v2551_v45 = vrot.slane %v2550_v18, 2 }
 0x6b4   :  { %v2528_v58 = vrot.slane %v2527_v46, 1  ;;  %v2552_v52 = vadd.f32 %v2551_v45, %v2550_v18 }
 0x6b6   :  { %v2529_v0 = vadd.f32 %v2528_v58, %v2527_v46  ;;  %v2553_v50 = vrot.slane %v2552_v52, 1 }
 0x6b8   :  { %2530 = vrot.lane.b32.xlu0 %v2529_v0, %s3767_s13  ;;  %v2554_v24 = vadd.f32 %v2553_v50, %v2552_v52 }
 0x6ba   :  { %2555 = vrot.lane.b32.xlu1 %v2554_v24, %s3767_s13 }
 0x72a   :  { %v2531_v5 = vpop.permute.xlu0 %2530 }
 0x72b   :  { %v2532_v48 = vadd.f32 %v2531_v5, %v2529_v0 }
 0x72c   :  { %v2556_v14 = vpop.permute.xlu1 %2555 }
 0x72d   :  { %v2557_v8 = vadd.f32 %v2556_v14, %v2554_v24  ;;  %2533 = vrot.lane.b32.xlu0 %v2532_v48, %s3768_s16 }
 0x72f   :  { %2558 = vrot.lane.b32.xlu1 %v2557_v8, %s3768_s16 }
 0x79f   :  { %v2534_v4 = vpop.permute.xlu0 %2533 }
 0x7a0   :  { %v2535_v23 = vadd.f32 %v2534_v4, %v2532_v48 }
 0x7a1   :  { %v2559_v27 = vpop.permute.xlu1 %2558 }
 0x7a2   :  { %v2560_v25 = vadd.f32 %v2559_v27, %v2557_v8  ;;  %2536 = vrot.lane.b32.xlu0 %v2535_v23, %s3769_s17 }
 0x7a4   :  { %2561 = vrot.lane.b32.xlu1 %v2560_v25, %s3769_s17 }
 0x814   :  { %v2537_v30 = vpop.permute.xlu0 %2536 }
 0x815   :  { %v2538_v34 = vadd.f32 %v2537_v30, %v2535_v23 }
 0x816   :  { %v2562_v32 = vpop.permute.xlu1 %2561 }
 0x817   :  { %v2563_v39 = vadd.f32 %v2562_v32, %v2560_v25  ;;  %2539 = vrot.lane.b32.xlu0 %v2538_v34, %s3759_s15 }
 0x819   :  { %2564 = vrot.lane.b32.xlu1 %v2563_v39, %s3759_s15 }
 0x889   :  { %v2540_v35 = vpop.permute.xlu0 %2539 }
 0x88a   :  { %v2541_v38 = vadd.f32 %v2540_v35, %v2538_v34 }
 0x88b   :  { %v2565_v29 = vpop.permute.xlu1 %2564 }
 0x88c   :  { %v2567_v55 = vmul.f32 0.001953125, %v2541_v38  ;;  %v2566_v56 = vadd.f32 %v2565_v29, %v2563_v39 }
 0x88e   :  { %v2569_v63 = vmul.f32 %v2567_v55, %v2567_v55  ;;  %v2568_v36 = vmul.f32 0.001953125, %v2566_v56 }
 0x890   :  { %v2570_v40 = vsub.f32 %v2568_v36, %v2569_v63 }
 0x892   :  { %v2572_v54 = vadd.f32 1e-05, %v2570_v40 }
 0x894   :  { %3625 = vrsqrt.f32 %v2572_v54 }
 0x8a1   :  { %v3626_v53 = vpop.eup %3625 }
 0x8a2   :  { %v2574_v44 = vmul.f32 %v3626_v53, %v2571_v13 }
 0x8a4   :  { %v2576_v15 = vmul.f32 %v2574_v44, %v2567_v55  ;;  %v2582_v1 = vrot.slane %v2574_v44, %v5494_v9 }
 0x8a6   :  { %v2577_v17 = vsub.f32 %v2575_v19, %v2576_v15  ;;  %v2586_v7 = vmul.f32 %v2582_v1, %v2512_v60  ;;  %v2584_v6 = vmul.f32 %v2582_v1, %v5089_v47  ;;  %v2587_v2 = vmul.f32 %v2582_v1, %v2518_v22 }
 0x8a7   :  { %v2585_v26 = vmul.f32 %v2582_v1, %v5087_v42 }
 0x8a8   :  { %v2592_v21 = vrot.slane %v2577_v17, %v5494_v9 }
 0x8aa   :  { %v2596_v61 = vadd.f32 %v2592_v21, %v2586_v7  ;;  %v2594_v57 = vadd.f32 %v2592_v21, %v2584_v6  ;;  %v2597_v20 = vadd.f32 %v2592_v21, %v2587_v2  ;;  %v2595_v11 = vadd.f32 %v2592_v21, %v2585_v26 }
 0x8ac   :  { %v2600_v16 = vmax.f32 %v2596_v61, 0.0  ;;  %v2598_v62 = vmax.f32 %v2594_v57, 0.0  ;;  %v2601_v43 = vmax.f32 %v2597_v20, 0.0  ;;  %v2599_v59 = vmax.f32 %v2595_v11, 0.0 }
 0x8ae   :  { %v2609_v33 = vrot.slane %v2600_v16, 7  ;;  %v2606_v37 = vrot.slane %v2598_v62, 7  ;;  %v2610_v60 = vrot.slane %v2601_v43, 7  ;;  %v2607_v12 = vrot.slane %v2599_v59, 7 }
 0x8b0   :  { %2618 = vrot.lane.b32.xlu1 %v2609_v33, %s3759_s15  ;;  %2612 = vrot.lane.b32.xlu0 %v2606_v37, %s3759_s15  ;;  %v2611_v42 = vsel %vm1162_vm6, %v2609_v33, %v2610_v60  ;;  %v2608_v47 = vsel %vm1162_vm6, %v2606_v37, %v2607_v12 }
 0x8b4   :  { %2622 = vrot.lane.b32.xlu1 %v2610_v60, %s3759_s15  ;;  %2616 = vrot.lane.b32.xlu0 %v2607_v12, %s3759_s15 }
 0x8b8   :  { %2620 = vrot.lane.b32.xlu1 %v2611_v42, %s3759_s15  ;;  %2614 = vrot.lane.b32.xlu0 %v2608_v47, %s3759_s15 }
 0x922   :  { %v2619_v22 = vpop.permute.xlu1 %2618  ;;  %v2613_v3 = vpop.permute.xlu0 %2612 }
 0x923   :  { %2636 = vst.msk [vmem:[#allocation3 + $0x30] sm:$0xfe] %vm1187_vm7, %v2619_v22  ;;  %2630 = vst.msk [vmem:[#allocation3] sm:$0xfe] %vm1187_vm7, %v2613_v3  ;;  %vm2957_vm7 = vcmask 1044480  }
 0x924   :  { %2637 = vst.msk [vmem:[#allocation3 + $0x38] sm:$0xfe] %vm1189_vm8, %v2619_v22  ;;  %2631 = vst.msk [vmem:[#allocation3 + $0x8] sm:$0xfe] %vm1189_vm8, %v2613_v3  ;;  %vm3015_vm8 = vcmask 261120  }
 0x926   :  { %v2623_v49 = vpop.permute.xlu1 %2622  ;;  %v2617_v51 = vpop.permute.xlu0 %2616 }
 0x927   :  { %2640 = vst.msk [vmem:[#allocation3 + $0x50] sm:$0x1] %vm1195_vm11, %v2623_v49  ;;  %2634 = vst.msk [vmem:[#allocation3 + $0x20] sm:$0x1] %vm1195_vm11, %v2617_v51  ;;  %vm3021_vm11 = vcmask 392192  }
 0x928   :  { %2641 = vst.msk [vmem:[#allocation3 + $0x58] sm:$0x1] %vm1197_vm12, %v2623_v49  ;;  %2635 = vst.msk [vmem:[#allocation3 + $0x28] sm:$0x1] %vm1197_vm12, %v2617_v51  ;;  %vm3024_vm12 = vcmask 457728  }
 0x92a   :  { %v2621_v10 = vpop.permute.xlu1 %2620  ;;  %v2615_v31 = vpop.permute.xlu0 %2614  ;;  %v5131_v41 = vld [vmem:[#allocation3] sm:$0xff]  ;;  %v5140_v46 = vld [vmem:[#allocation3 + $0x30] sm:$0xff] }
 0x92b   :  { %v2646_v28 = vld [vmem:[#allocation3 + $0x8] sm:$0xff]  ;;  %2638 = vst.msk [vmem:[#allocation3 + $0x40] sm:$0xff] %vm1191_vm9, %v2621_v10  ;;  %2632 = vst.msk [vmem:[#allocation3 + $0x10] sm:$0xff] %vm1191_vm9, %v2615_v31  ;;  %2658 = vrot.lane.b32.xlu0 %v5131_v41, %s3766_s12  ;;  %v2648_v18 = vld [vmem:[#allocation3 + $0x38] sm:$0xff]  ;;  %vm3018_vm9 = vcmask 326656  }
 0x92c   :  { %2639 = vst.msk [vmem:[#allocation3 + $0x48] sm:$0xff] %vm1193_vm10, %v2621_v10  ;;  %2633 = vst.msk [vmem:[#allocation3 + $0x18] sm:$0xff] %vm1193_vm10, %v2615_v31  ;;  %2660 = vrot.lane.b32.xlu1 %v2646_v28, %s3766_s12  ;;  %v2740_v50 = vld [vmem:[#allocation3 + $0x8] sm:$0xfe]  ;;  %v2714_v24 = vld [vmem:[#allocation3] sm:$0xfe] }
 0x92d   :  { %v2748_v14 = vrot.slane %v2740_v50, 1  ;;  %v2722_v8 = vrot.slane %v2714_v24, 1  ;;  %v2742_v4 = vld [vmem:[#allocation3 + $0x38] sm:$0xfe]  ;;  %v2716_v23 = vld [vmem:[#allocation3 + $0x30] sm:$0xfe] }
 0x92e   :  { %v2753_v32 = vrot.slane %v2742_v4, 1  ;;  %v2727_v39 = vrot.slane %v2716_v23, 1  ;;  %v2715_v55 = vld [vmem:[#allocation3 + $0x20] sm:$0x1]  ;;  %v2717_v40 = vld [vmem:[#allocation3 + $0x50] sm:$0x1] }
 0x92f   :  { %2666 = vrot.lane.b32.xlu0 %v5140_v46, %s3766_s12  ;;  %v2741_v29 = vld [vmem:[#allocation3 + $0x28] sm:$0x1]  ;;  %v2725_v63 = vrot.slane %v2715_v55, 1  ;;  %v2743_v36 = vld [vmem:[#allocation3 + $0x58] sm:$0x1]  ;;  %v2730_v44 = vrot.slane %v2717_v40, 1 }
 0x930   :  { %2668 = vrot.lane.b32.xlu1 %v2648_v18, %s3766_s12  ;;  %v2751_v56 = vrot.slane %v2741_v29, 1  ;;  %v2756_v53 = vrot.slane %v2743_v36, 1  ;;  %v2840_v9 = vld [vmem:[#allocation3 + $0x8] sm:$0xfc]  ;;  %v2814_v1 = vld [vmem:[#allocation3] sm:$0xfc] }
 0x931   :  { %v2848_v21 = vrot.slane %v2840_v9, 2  ;;  %v2822_v6 = vrot.slane %v2814_v1, 2  ;;  %v2842_v2 = vld [vmem:[#allocation3 + $0x38] sm:$0xfc]  ;;  %v2816_v26 = vld [vmem:[#allocation3 + $0x30] sm:$0xfc] }
 0x932   :  { %v5153_v58 = vld [vmem:[#allocation3 + $0x10] sm:$0xff]  ;;  %v5161_v0 = vld [vmem:[#allocation3 + $0x40] sm:$0xff]  ;;  %v2853_v16 = vrot.slane %v2842_v2, 2  ;;  %v2827_v62 = vrot.slane %v2816_v26, 2  ;;  %v2841_v43 = vld [vmem:[#allocation3 + $0x28] sm:$0x3] }
 0x933   :  { %2686 = vrot.lane.b32.xlu0 %v5131_v41, %s3770_s3  ;;  %v5151_v45 = vld [vmem:[#allocation3 + $0x18] sm:$0xff]  ;;  %v5159_v52 = vld [vmem:[#allocation3 + $0x48] sm:$0xff]  ;;  %v2723_v48 = vrot.slane %v5153_v58, 1  ;;  %v2728_v34 = vrot.slane %v5161_v0, 1  ;;  %v2823_v7 = vrot.slane %v5153_v58, 2  ;;  %v2828_v11 = vrot.slane %v5161_v0, 2 }
 0x934   :  { %2688 = vrot.lane.b32.xlu1 %v2646_v28, %s3770_s3  ;;  %v2749_v5 = vrot.slane %v5151_v45, 1  ;;  %v2754_v27 = vrot.slane %v5159_v52, 1  ;;  %v2849_v17 = vrot.slane %v5151_v45, 2  ;;  %v2854_v61 = vrot.slane %v5159_v52, 2  ;;  %v2815_v59 = vld [vmem:[#allocation3 + $0x20] sm:$0x3] }
 0x935   :  { %v5180_v30 = vsel %vm1349_vm13, %v2722_v8, %v2723_v48  ;;  %v5188_v38 = vsel %vm1349_vm13, %v2727_v39, %v2728_v34  ;;  %v5201_v13 = vsel %vm1349_vm13, %v2723_v48, %v2725_v63  ;;  %v5208_v15 = vsel %vm1349_vm13, %v2728_v34, %v2730_v44  ;;  %v2843_v42 = vld [vmem:[#allocation3 + $0x58] sm:$0x3]  ;;  %v2817_v47 = vld [vmem:[#allocation3 + $0x50] sm:$0x3] }
 0x936   :  { %v2750_v25 = vsel %vm1349_vm13, %v2748_v14, %v2749_v5  ;;  %v2755_v35 = vsel %vm1349_vm13, %v2753_v32, %v2754_v27  ;;  %v2752_v54 = vsel %vm1349_vm13, %v2749_v5, %v2751_v56  ;;  %v2757_v19 = vsel %vm1349_vm13, %v2754_v27, %v2756_v53 }
 0x937   :  { %2694 = vrot.lane.b32.xlu0 %v5140_v46, %s3770_s3  ;;  %v2850_v57 = vsel %vm1552_vm14, %v2848_v21, %v2849_v17  ;;  %v5224_v20 = vsel %vm1552_vm14, %v2822_v6, %v2823_v7  ;;  %v2855_v33 = vsel %vm1552_vm14, %v2853_v16, %v2854_v61  ;;  %v5232_v37 = vsel %vm1552_vm14, %v2827_v62, %v2828_v11 }
 0x938   :  { %2696 = vrot.lane.b32.xlu1 %v2648_v18, %s3770_s3  ;;  %v2851_v60 = vrot.slane %v2841_v43, 2  ;;  %v2825_v12 = vrot.slane %v2815_v59, 2  ;;  %v2856_v49 = vrot.slane %v2843_v42, 2  ;;  %v2830_v51 = vrot.slane %v2817_v47, 2 }
 0x93a   :  { %v2852_v22 = vsel %vm1552_vm14, %v2849_v17, %v2851_v60  ;;  %v5245_v3 = vsel %vm1552_vm14, %v2823_v7, %v2825_v12  ;;  %v2857_v10 = vsel %vm1552_vm14, %v2854_v61, %v2856_v49  ;;  %v5252_v31 = vsel %vm1552_vm14, %v2828_v11, %v2830_v51 }
 0x93b   :  { %2662 = vrot.lane.b32.xlu0 %v5153_v58, %s3766_s12 }
 0x93c   :  { %2664 = vrot.lane.b32.xlu1 %v5151_v45, %s3766_s12 }
 0x93f   :  { %2670 = vrot.lane.b32.xlu0 %v5161_v0, %s3766_s12 }
 0x940   :  { %2672 = vrot.lane.b32.xlu1 %v5159_v52, %s3766_s12 }
 0x943   :  { %2690 = vrot.lane.b32.xlu0 %v5153_v58, %s3770_s3 }
 0x944   :  { %2692 = vrot.lane.b32.xlu1 %v5151_v45, %s3770_s3 }
 0x947   :  { %2698 = vrot.lane.b32.xlu0 %v5161_v0, %s3770_s3 }
 0x948   :  { %2700 = vrot.lane.b32.xlu1 %v5159_v52, %s3770_s3 }
 0x94b   :  { %2758 = vrot.lane.b32.xlu0 %v5180_v30, %s3766_s12 }
 0x94c   :  { %2760 = vrot.lane.b32.xlu1 %v2750_v25, %s3766_s12 }
 0x94f   :  { %2766 = vrot.lane.b32.xlu0 %v5188_v38, %s3766_s12 }
 0x950   :  { %2768 = vrot.lane.b32.xlu1 %v2755_v35, %s3766_s12 }
 0x953   :  { %2786 = vrot.lane.b32.xlu0 %v5180_v30, %s3770_s3 }
 0x954   :  { %2788 = vrot.lane.b32.xlu1 %v2750_v25, %s3770_s3 }
 0x957   :  { %2794 = vrot.lane.b32.xlu0 %v5188_v38, %s3770_s3 }
 0x958   :  { %2796 = vrot.lane.b32.xlu1 %v2755_v35, %s3770_s3 }
 0x95b   :  { %2762 = vrot.lane.b32.xlu0 %v5201_v13, %s3766_s12 }
 0x95c   :  { %2764 = vrot.lane.b32.xlu1 %v2752_v54, %s3766_s12 }
 0x95f   :  { %2770 = vrot.lane.b32.xlu0 %v5208_v15, %s3766_s12 }
 0x960   :  { %2772 = vrot.lane.b32.xlu1 %v2757_v19, %s3766_s12 }
 0x963   :  { %2790 = vrot.lane.b32.xlu0 %v5201_v13, %s3770_s3 }
 0x964   :  { %2792 = vrot.lane.b32.xlu1 %v2752_v54, %s3770_s3 }
 0x967   :  { %2798 = vrot.lane.b32.xlu0 %v5208_v15, %s3770_s3 }
 0x968   :  { %2800 = vrot.lane.b32.xlu1 %v2757_v19, %s3770_s3 }
 0x96b   :  { %2858 = vrot.lane.b32.xlu0 %v5224_v20, %s3766_s12 }
 0x96c   :  { %2860 = vrot.lane.b32.xlu1 %v2850_v57, %s3766_s12 }
 0x96f   :  { %2866 = vrot.lane.b32.xlu0 %v5232_v37, %s3766_s12 }
 0x970   :  { %2868 = vrot.lane.b32.xlu1 %v2855_v33, %s3766_s12 }
 0x973   :  { %2886 = vrot.lane.b32.xlu0 %v5224_v20, %s3770_s3 }
 0x974   :  { %2888 = vrot.lane.b32.xlu1 %v2850_v57, %s3770_s3 }
 0x977   :  { %2894 = vrot.lane.b32.xlu0 %v5232_v37, %s3770_s3 }
 0x978   :  { %2896 = vrot.lane.b32.xlu1 %v2855_v33, %s3770_s3 }
 0x97b   :  { %2862 = vrot.lane.b32.xlu0 %v5245_v3, %s3766_s12 }
 0x97c   :  { %2864 = vrot.lane.b32.xlu1 %v2852_v22, %s3766_s12 }
 0x97f   :  { %2870 = vrot.lane.b32.xlu0 %v5252_v31, %s3766_s12 }
 0x980   :  { %2872 = vrot.lane.b32.xlu1 %v2857_v10, %s3766_s12 }
 0x983   :  { %2890 = vrot.lane.b32.xlu0 %v5245_v3, %s3770_s3 }
 0x984   :  { %2892 = vrot.lane.b32.xlu1 %v2852_v22, %s3770_s3 }
 0x987   :  { %2898 = vrot.lane.b32.xlu0 %v5252_v31, %s3770_s3 }
 0x988   :  { %2900 = vrot.lane.b32.xlu1 %v2857_v10, %s3770_s3 }
 0x99d   :  { %v2659_v18 = vpop.permute.xlu0 %2658 }
 0x99e   :  { %v2661_v28 = vpop.permute.xlu1 %2660 }
 0x99f   :  { %v2674_v45 = vsel %vm1263_vm15, %v2659_v18, %v2661_v28 }
 0x9a0   :  { %v2682_v5 = vmax.f32 %v5131_v41, %v2674_v45 }
 0x9a1   :  { %v2667_v50 = vpop.permute.xlu0 %2666 }
 0x9a2   :  { %v2669_v52 = vpop.permute.xlu1 %2668 }
 0x9a3   :  { %v2676_v24 = vsel %vm1263_vm15, %v2667_v50, %v2669_v52 }
 0x9a4   :  { %v2684_v23 = vmax.f32 %v5140_v46, %v2676_v24 }
 0x9a5   :  { %v2687_v14 = vpop.permute.xlu0 %2686 }
 0x9a6   :  { %v2689_v48 = vpop.permute.xlu1 %2688 }
 0x9a7   :  { %v2702_v8 = vsel %vm1316_vm0, %v2687_v14, %v2689_v48 }
 0x9a8   :  { %v2710_v4 = vmax.f32 %v2682_v5, %v2702_v8 }
 0x9a9   :  { %v2695_v25 = vpop.permute.xlu0 %2694 }
 0x9aa   :  { %v2697_v27 = vpop.permute.xlu1 %2696  ;;  %v2736_v33 = vmax.f32 %v2710_v4, %v5180_v30 }
 0x9ab   :  { %v2704_v34 = vsel %vm1316_vm0, %v2695_v25, %v2697_v27 }
 0x9ac   :  { %v2712_v32 = vmax.f32 %v2684_v23, %v2704_v34 }
 0x9ad   :  { %v2663_v35 = vpop.permute.xlu0 %2662 }
 0x9ae   :  { %v2665_v39 = vpop.permute.xlu1 %2664  ;;  %v2738_v49 = vmax.f32 %v2712_v32, %v5188_v38 }
 0x9af   :  { %v2675_v12 = vsel %vm1263_vm15, %v2663_v35, %v2665_v39 }
 0x9b0   :  { %v2683_v10 = vmax.f32 %v5153_v58, %v2675_v12 }
 0x9b1   :  { %v2671_v55 = vpop.permute.xlu0 %2670 }
 0x9b2   :  { %v2673_v29 = vpop.permute.xlu1 %2672 }
 0x9b3   :  { %v2677_v45 = vsel %vm1263_vm15, %v2671_v55, %v2673_v29 }
 0x9b4   :  { %v2685_v38 = vmax.f32 %v5161_v0, %v2677_v45 }
 0x9b5   :  { %v2691_v63 = vpop.permute.xlu0 %2690 }
 0x9b6   :  { %v2693_v56 = vpop.permute.xlu1 %2692 }
 0x9b7   :  { %v2703_v22 = vsel %vm1316_vm0, %v2691_v63, %v2693_v56 }
 0x9b8   :  { %v2711_v50 = vmax.f32 %v2683_v10, %v2703_v22 }
 0x9b9   :  { %v2699_v41 = vpop.permute.xlu0 %2698 }
 0x9ba   :  { %v2701_v36 = vpop.permute.xlu1 %2700  ;;  %v2737_v34 = vmax.f32 %v2711_v50, %v5201_v13 }
 0x9bb   :  { %v2705_v5 = vsel %vm1316_vm0, %v2699_v41, %v2701_v36 }
 0x9bc   :  { %v2713_v25 = vmax.f32 %v2685_v38, %v2705_v5 }
 0x9bd   :  { %v2759_v54 = vpop.permute.xlu0 %2758 }
 0x9be   :  { %v2761_v40 = vpop.permute.xlu1 %2760  ;;  %v2739_v41 = vmax.f32 %v2713_v25, %v5208_v15 }
 0x9bf   :  { %v2774_v62 = vsel %vm1263_vm15, %v2759_v54, %v2761_v40 }
 0x9c0   :  { %v2782_v42 = vmax.f32 %v2736_v33, %v2774_v62 }
 0x9c1   :  { %v2767_v44 = vpop.permute.xlu0 %2766 }
 0x9c2   :  { %v2769_v53 = vpop.permute.xlu1 %2768 }
 0x9c3   :  { %v2776_v47 = vsel %vm1263_vm15, %v2767_v44, %v2769_v53 }
 0x9c4   :  { %v2784_v52 = vmax.f32 %v2738_v49, %v2776_v47 }
 0x9c5   :  { %v2787_v9 = vpop.permute.xlu0 %2786 }
 0x9c6   :  { %v2789_v19 = vpop.permute.xlu1 %2788 }
 0x9c7   :  { %v2802_v43 = vsel %vm1316_vm0, %v2787_v9, %v2789_v19 }
 0x9c8   :  { %v2810_v51 = vmax.f32 %v2782_v42, %v2802_v43 }
 0x9c9   :  { %v2795_v1 = vpop.permute.xlu0 %2794 }
 0x9ca   :  { %v2797_v46 = vpop.permute.xlu1 %2796  ;;  %v2836_v14 = vmax.f32 %v2810_v51, %v5224_v20 }
 0x9cb   :  { %v2804_v28 = vsel %vm1316_vm0, %v2795_v1, %v2797_v46 }
 0x9cc   :  { %v2812_v48 = vmax.f32 %v2784_v52, %v2804_v28 }
 0x9cd   :  { %v2763_v7 = vpop.permute.xlu0 %2762 }
 0x9ce   :  { %v2765_v17 = vpop.permute.xlu1 %2764  ;;  %v2838_v35 = vmax.f32 %v2812_v48, %v5232_v37 }
 0x9cf   :  { %v2775_v23 = vsel %vm1263_vm15, %v2763_v7, %v2765_v17 }
 0x9d0   :  { %v2783_v20 = vmax.f32 %v2737_v34, %v2775_v23 }
 0x9d1   :  { %v2771_v6 = vpop.permute.xlu0 %2770 }
 0x9d2   :  { %v2773_v21 = vpop.permute.xlu1 %2772 }
 0x9d3   :  { %v2777_v63 = vsel %vm1263_vm15, %v2771_v6, %v2773_v21 }
 0x9d4   :  { %v2785_v44 = vmax.f32 %v2739_v41, %v2777_v63 }
 0x9d5   :  { %v2791_v26 = vpop.permute.xlu0 %2790 }
 0x9d6   :  { %v2793_v2 = vpop.permute.xlu1 %2792 }
 0x9d7   :  { %v2803_v39 = vsel %vm1316_vm0, %v2791_v26, %v2793_v2 }
 0x9d8   :  { %v2811_v40 = vmax.f32 %v2783_v20, %v2803_v39 }
 0x9d9   :  { %v2799_v57 = vpop.permute.xlu0 %2798 }
 0x9da   :  { %v2801_v61 = vpop.permute.xlu1 %2800  ;;  %v2837_v17 = vmax.f32 %v2811_v40, %v5245_v3 }
 0x9db   :  { %v2805_v13 = vsel %vm1316_vm0, %v2799_v57, %v2801_v61 }
 0x9dc   :  { %v2813_v46 = vmax.f32 %v2785_v44, %v2805_v13 }
 0x9dd   :  { %v2859_v16 = vpop.permute.xlu0 %2858 }
 0x9de   :  { %v2861_v11 = vpop.permute.xlu1 %2860 }
 0x9df   :  { %v2874_v24 = vsel %vm1263_vm15, %v2859_v16, %v2861_v11  ;;  %v2839_v16 = vmax.f32 %v2813_v46, %v5252_v31 }
 0x9e0   :  { %v2882_v27 = vmax.f32 %v2836_v14, %v2874_v24 }
 0x9e1   :  { %v2867_v60 = vpop.permute.xlu0 %2866 }
 0x9e2   :  { %v2869_v59 = vpop.permute.xlu1 %2868 }
 0x9e3   :  { %v2876_v32 = vsel %vm1263_vm15, %v2867_v60, %v2869_v59 }
 0x9e4   :  { %v2884_v36 = vmax.f32 %v2838_v35, %v2876_v32 }
 0x9e5   :  { %v2887_v30 = vpop.permute.xlu0 %2886 }
 0x9e6   :  { %v2889_v18 = vpop.permute.xlu1 %2888 }
 0x9e7   :  { %v2902_v8 = vsel %vm1316_vm0, %v2887_v30, %v2889_v18 }
 0x9e8   :  { %v2910_v29 = vmax.f32 %v2882_v27, %v2902_v8 }
 0x9e9   :  { %v2895_v4 = vpop.permute.xlu0 %2894 }
 0x9ea   :  { %v2897_v58 = vpop.permute.xlu1 %2896  ;;  %v2916_v54 = vrot.slane %v2910_v29, 1  ;;  %v2920_v1 = vrot.slane %v2910_v29, 2  ;;  %v2924_v33 = vrot.slane %v2910_v29, 3 }
 0x9eb   :  { %v2904_v0 = vsel %vm1316_vm0, %v2895_v4, %v2897_v58 }
 0x9ec   :  { %v2912_v53 = vmax.f32 %v2884_v36, %v2904_v0  ;;  %v2946_v7 = vsel %vm1162_vm6, %v2910_v29, %v2916_v54 }
 0x9ed   :  { %v2863_v56 = vpop.permute.xlu0 %2862  ;;  %v2949_v57 = vsel %vm2948_vm1, %v2946_v7, %v2920_v1 }
 0x9ee   :  { %v2865_v55 = vpop.permute.xlu1 %2864  ;;  %v2917_v21 = vrot.slane %v2912_v53, 1  ;;  %v2921_v11 = vrot.slane %v2912_v53, 2  ;;  %v2952_v47 = vsel %vm2951_vm2, %v2949_v57, %v2924_v33  ;;  %v2925_v28 = vrot.slane %v2912_v53, 3 }
 0x9ef   :  { %v2875_v37 = vsel %vm1263_vm15, %v2863_v56, %v2865_v55 }
 0x9f0   :  { %v2883_v6 = vmax.f32 %v2837_v17, %v2875_v37  ;;  %v2947_v3 = vsel %vm1162_vm6, %v2912_v53, %v2917_v21  ;;  %vm3012_vm6 = vcmask 195584  }
 0x9f1   :  { %v2871_v9 = vpop.permute.xlu0 %2870  ;;  %v2950_v49 = vsel %vm2948_vm1, %v2947_v3, %v2921_v11 }
 0x9f2   :  { %v2873_v19 = vpop.permute.xlu1 %2872  ;;  %v2953_v24 = vsel %vm2951_vm2, %v2950_v49, %v2925_v28 }
 0x9f3   :  { %v2877_v26 = vsel %vm1263_vm15, %v2871_v9, %v2873_v19 }
 0x9f4   :  { %v2885_v43 = vmax.f32 %v2839_v16, %v2877_v26 }
 0x9f5   :  { %v2891_v2 = vpop.permute.xlu0 %2890 }
 0x9f6   :  { %v2893_v15 = vpop.permute.xlu1 %2892 }
 0x9f7   :  { %v2903_v61 = vsel %vm1316_vm0, %v2891_v2, %v2893_v15 }
 0x9f8   :  { %v2911_v62 = vmax.f32 %v2883_v6, %v2903_v61 }
 0x9f9   :  { %v2899_v42 = vpop.permute.xlu0 %2898 }
 0x9fa   :  { %v2930_v59 = vrot.slane %v2911_v62, 4  ;;  %v2934_v60 = vrot.slane %v2911_v62, 5  ;;  %v2901_v12 = vpop.permute.xlu1 %2900  ;;  %v2938_v51 = vrot.slane %v2911_v62, 6  ;;  %v2942_v18 = vrot.slane %v2911_v62, 7 }
 0x9fb   :  { %v2905_v22 = vsel %vm1316_vm0, %v2899_v42, %v2901_v12 }
 0x9fc   :  { %v2955_v31 = vsel %vm2954_vm5, %v2952_v47, %v2930_v59  ;;  %v2913_v10 = vmax.f32 %v2885_v43, %v2905_v22 }
 0x9fd   :  { %v2958_v30 = vsel %vm2957_vm7, %v2955_v31, %v2934_v60 }
 0x9fe   :  { %v2960_v45 = vsel %vm1552_vm14, %v2958_v30, %v2938_v51  ;;  %v2931_v52 = vrot.slane %v2913_v10, 4  ;;  %v2935_v50 = vrot.slane %v2913_v10, 5  ;;  %v2939_v48 = vrot.slane %v2913_v10, 6 }
 0x9ff   :  { %v2962_v5 = vsel %vm1349_vm13, %v2960_v45, %v2942_v18  ;;  %v2943_v38 = vrot.slane %v2913_v10, 7 }
 0xa00   :  { %v2956_v14 = vsel %vm2954_vm5, %v2953_v24, %v2931_v52  ;;  %2966 = vrot.lane.b32.xlu0 %v2962_v5, %s3766_s12 }
 0xa01   :  { %v2959_v8 = vsel %vm2957_vm7, %v2956_v14, %v2935_v50 }
 0xa02   :  { %v2961_v58 = vsel %vm1552_vm14, %v2959_v8, %v2939_v48 }
 0xa03   :  { %v2963_v4 = vsel %vm1349_vm13, %v2961_v58, %v2943_v38 }
 0xa04   :  { %2972 = vrot.lane.b32.xlu0 %v2962_v5, %s3770_s3  ;;  %2968 = vrot.lane.b32.xlu1 %v2963_v4, %s3766_s12 }
 0xa08   :  { %2978 = vrot.lane.b32.xlu0 %v2962_v5, %s3771_s7  ;;  %2974 = vrot.lane.b32.xlu1 %v2963_v4, %s3770_s3 }
 0xa0c   :  { %2984 = vrot.lane.b32.xlu0 %v2962_v5, %s3772_s8  ;;  %2980 = vrot.lane.b32.xlu1 %v2963_v4, %s3771_s7 }
 0xa10   :  { %2990 = vrot.lane.b32.xlu0 %v2962_v5, %s3773_s1  ;;  %2986 = vrot.lane.b32.xlu1 %v2963_v4, %s3772_s8 }
 0xa14   :  { %2996 = vrot.lane.b32.xlu0 %v2962_v5, %s3774_s25  ;;  %2992 = vrot.lane.b32.xlu1 %v2963_v4, %s3773_s1 }
 0xa18   :  { %3002 = vrot.lane.b32.xlu0 %v2962_v5, %s3775_s26  ;;  %2998 = vrot.lane.b32.xlu1 %v2963_v4, %s3774_s25 }
 0xa1c   :  { %3004 = vrot.lane.b32.xlu1 %v2963_v4, %s3775_s26 }
 0xa72   :  { %v2967_v23 = vpop.permute.xlu0 %2966 }
 0xa73   :  { %v3008_v0 = vsel %vm1193_vm10, %v2962_v5, %v2967_v23 }
 0xa76   :  { %v2969_v27 = vpop.permute.xlu1 %2968  ;;  %v2973_v25 = vpop.permute.xlu0 %2972 }
 0xa77   :  { %v3010_v55 = vsel %vm110_vm4, %v3008_v0, %v2973_v25  ;;  %v3009_v40 = vsel %vm1193_vm10, %v2963_v4, %v2969_v27 }
 0xa7a   :  { %v2975_v34 = vpop.permute.xlu1 %2974  ;;  %v2979_v32 = vpop.permute.xlu0 %2978 }
 0xa7b   :  { %v3013_v36 = vsel %vm3012_vm6, %v3010_v55, %v2979_v32  ;;  %v3011_v54 = vsel %vm110_vm4, %v3009_v40, %v2975_v34 }
 0xa7e   :  { %v2981_v39 = vpop.permute.xlu1 %2980  ;;  %v2985_v35 = vpop.permute.xlu0 %2984 }
 0xa7f   :  { %v3016_v41 = vsel %vm3015_vm8, %v3013_v36, %v2985_v35  ;;  %v3014_v9 = vsel %vm3012_vm6, %v3011_v54, %v2981_v39 }
 0xa82   :  { %v2987_v29 = vpop.permute.xlu1 %2986  ;;  %v2991_v20 = vpop.permute.xlu0 %2990 }
 0xa83   :  { %v3019_v13 = vsel %vm3018_vm9, %v3016_v41, %v2991_v20  ;;  %v3017_v46 = vsel %vm3015_vm8, %v3014_v9, %v2987_v29 }
 0xa86   :  { %v2993_v56 = vpop.permute.xlu1 %2992  ;;  %v2997_v63 = vpop.permute.xlu0 %2996 }
 0xa87   :  { %v3022_v53 = vsel %vm3021_vm11, %v3019_v13, %v2997_v63  ;;  %v3020_v1 = vsel %vm3018_vm9, %v3017_v46, %v2993_v56 }
 0xa8a   :  { %v2999_v44 = vpop.permute.xlu1 %2998  ;;  %v3003_v19 = vpop.permute.xlu0 %3002 }
 0xa8b   :  { %v3025_v37 = vsel %vm3024_vm12, %v3022_v53, %v3003_v19  ;;  %v3023_v17 = vsel %vm3021_vm11, %v3020_v1, %v2999_v44 }
 0xa8c   :  { %3027 = vst.msk [vmem:[#allocation13] sm:$0xff] %vm398_vm3, %v3025_v37 }
 0xa8e   :  { %v3005_v7 = vpop.permute.xlu1 %3004 }
 0xa8f   :  { %v3026_v21 = vsel %vm3024_vm12, %v3023_v17, %v3005_v7 }
 0xa90   :  { %3028 = vst.msk [vmem:[#allocation13 + $0x8] sm:$0xff] %vm398_vm3, %v3026_v21 }
 0xa91   :  { %3739 = shalt.err (!%p3736_p1)
}
 0xa92   :  { %3040 = dma.vmem_to_hbm [thread:$0]  %s3035_s27, 256, %s5348_s9, [#allocation6], %s3758_s14, %s3758_s14, %s3759_s15  }
 0xa93   :  { %3754 = dma.done.wait [#allocation6], 256  }
 0xa94   :  { %3755 = vsyncadd [#allocation6], 4294967040 }
 0xa95   :  { %3044 = vsyncpa [#allocation5], 1 }
 0xa96   :  { %3045 = vsyncpa [#allocation8], 1 }
 0xa97   :  { %3046 = vsyncpa [#allocation11], 1 }
 0xa98   :  { %3047 = vsyncpa [#allocation6], 1 }

</bundles_post_ra>
